<compile_context>
chip_gen: v6e
topology: v6e:2x2x1
jax: 0.10.0
libtpu: 0.0.40
codegen_flags: <defaults>
</compile_context>

<pallas_src>
import functools

import jax
import jax.numpy as jnp
from jax import lax
from jax.experimental import pallas as pl
from jax.experimental.pallas import tpu as pltpu

COORD_PAD = 4
EXTRA_PAD = 1
INITIAL_PASS = 25
PIX_PAD = 4

NEG_INF = -1e9
BIG_DIST = 1e30

_VMEM = pl.BlockSpec(memory_space=pltpu.MemorySpace.VMEM)


def _ln(x, g, b):
    """Row-wise LayerNorm in f32; g/b broadcast from (1, D)."""
    mu = jnp.mean(x, axis=-1, keepdims=True)
    xc = x - mu
    var = jnp.mean(xc * xc, axis=-1, keepdims=True)
    return xc * lax.rsqrt(var + 1e-5) * g + b


def _num_batch_groups(batch):
    """v7x has 2 TensorCores/chip -> keep batch 'parallel'; v5e/v6e fold batch into rows."""
    try:
        kind = jax.devices()[0].device_kind.lower()
    except Exception:  # pragma: no cover
        kind = ""
    n_tc = 2 if "v7" in kind else 1
    return n_tc if (n_tc > 1 and batch % n_tc == 0) else 1


# ----------------- fused transformer encoder stack (all layers, one call) -----------------

def _fused_encoder_kernel(x_ref, bias_ref,
                          in_w_ref, in_b_ref, out_w_ref, out_b_ref,
                          ff1_w_ref, ff1_b_ref, ff2_w_ref, ff2_b_ref,
                          ln1_g_ref, ln1_b_ref, ln2_g_ref, ln2_b_ref,
                          o_ref, *, num_heads, num_layers):
    """One batch-group per grid step; the whole layer stack runs with x resident in vregs.
    # TODO(synk): TransformerEncoderLayerImproved source not provided; implemented as the
    # DeepSVG/SkexGen-style pre-norm layer (norm->attn->add, norm->ffn->add)."""
    x = x_ref[0]                      # (R, D) f32, R = batches_in_group * S
    bias = bias_ref[0]                # (R, R) additive mask (key padding + block-diag batch)
    R, D = x.shape
    H = num_heads
    Dh = D // H
    scale = 1.0 / float(Dh) ** 0.5
    bf16 = jnp.bfloat16

    for l in range(num_layers):       # static unroll; stacked weights stay resident in VMEM
        # --- self-attention block (pre-norm) ---
        x2 = _ln(x, ln1_g_ref[l], ln1_b_ref[l])
        qkv = jnp.dot(x2.astype(bf16), in_w_ref[l],
                      preferred_element_type=jnp.float32) + in_b_ref[l]        # (R, 3D) f32
        q = qkv[:, 0:D] * scale       # fold 1/sqrt(Dh) into q
        k = qkv[:, D:2 * D]
        v = qkv[:, 2 * D:3 * D]
        a = None
        for h in range(H):            # static head loop; out-projection folded in (no scratch)
            sl = slice(h * Dh, (h + 1) * Dh)
            s = lax.dot_general(q[:, sl], k[:, sl], (((1,), (1,)), ((), ())),
                                preferred_element_type=jnp.float32)            # (R, R)
            s = s + bias
            s = s - jnp.max(s, axis=-1, keepdims=True)
            p = jnp.exp(s)
            p = p * pl.reciprocal(jnp.sum(p, axis=-1, keepdims=True), approx=True)
            ah = jnp.dot(p.astype(bf16), v[:, sl].astype(bf16),
                         preferred_element_type=jnp.float32)                   # (R, Dh)
            ph = jnp.dot(ah.astype(bf16), out_w_ref[l, h],
                         preferred_element_type=jnp.float32)                   # (R, D)
            a = ph if a is None else a + ph
        x = x + a + out_b_ref[l]

        # --- feed-forward block (pre-norm, fused ReLU) ---
        x2 = _ln(x, ln2_g_ref[l], ln2_b_ref[l])
        h1 = jnp.maximum(
            jnp.dot(x2.astype(bf16), ff1_w_ref[l],
                    preferred_element_type=jnp.float32) + ff1_b_ref[l], 0.0)
        x = x + jnp.dot(h1.astype(bf16), ff2_w_ref[l],
                        preferred_element_type=jnp.float32) + ff2_b_ref[l]

    o_ref[0] = x


def fused_encoder(xg, bias, p, *, num_heads, num_layers):
    """xg: (G, R, D) f32 grouped activations, bias: (G, R, R) additive mask."""
    G, R, D = xg.shape
    return pl.pallas_call(
        functools.partial(_fused_encoder_kernel, num_heads=num_heads, num_layers=num_layers),
        out_shape=jax.ShapeDtypeStruct((G, R, D), jnp.float32),
        grid=(G,),
        in_specs=[
            pl.BlockSpec((1, R, D), lambda g: (g, 0, 0)),     # activations (per group)
            pl.BlockSpec((1, R, R), lambda g: (g, 0, 0)),     # additive mask (per group)
        ] + [_VMEM] * 12,                                     # stacked weights: VMEM-resident
        out_specs=pl.BlockSpec((1, R, D), lambda g: (g, 0, 0)),
        compiler_params=pltpu.CompilerParams(dimension_semantics=("parallel",)),
    )(xg, bias,
      p["in_w"], p["in_b"], p["out_w"], p["out_b"],
      p["ff1_w"], p["ff1_b"], p["ff2_w"], p["ff2_b"],
      p["ln1_g"], p["ln1_b"], p["ln2_g"], p["ln2_b"])


# ------------------- fused tail: final LN -> down (-> VQ) -> up -------------------

def _tail_novq_kernel(z_ref, g_ref, b_ref, dw_ref, db_ref, uw_ref, ub_ref, o_ref):
    zn = _ln(z_ref[...], g_ref[...], b_ref[...])
    zd = jnp.dot(zn.astype(jnp.bfloat16), dw_ref[...],
                 preferred_element_type=jnp.float32) + db_ref[...]
    o_ref[...] = jnp.dot(zd.astype(jnp.bfloat16), uw_ref[...],
                         preferred_element_type=jnp.float32) + ub_ref[...]


def tail_no_vq(z, params):
    N, D = z.shape
    return pl.pallas_call(
        _tail_novq_kernel,
        out_shape=jax.ShapeDtypeStruct((N, D), jnp.float32),
        in_specs=[_VMEM] * 7,
        out_specs=_VMEM,
    )(z, params["final_ln_g"], params["final_ln_b"],
      params["down_w"], params["down_b"], params["up_w"], params["up_b"])


def _tail_vq_kernel(z_ref, g_ref, b_ref, dw_ref, db_ref, code_ref, uw_ref, ub_ref,
                    o_ref, idx_ref, loss_ref, *, num_code):
    zn = _ln(z_ref[...], g_ref[...], b_ref[...])
    zd = jnp.dot(zn.astype(jnp.bfloat16), dw_ref[...],
                 preferred_element_type=jnp.float32) + db_ref[...]                # (N, cd)
    e = code_ref[...]                                                             # (Cpad, cd) f32

    # squared L2 distances to every (valid) code; distance matmul kept f32 for a clean argmin
    x2 = jnp.sum(zd * zd, axis=-1, keepdims=True)                                 # (N, 1)
    e2 = jnp.sum(e * e, axis=-1)[None, :]                                         # (1, Cpad)
    xe = lax.dot_general(zd, e, (((1,), (1,)), ((), ())),
                         preferred_element_type=jnp.float32)                      # (N, Cpad)
    d = x2 + e2 - 2.0 * xe
    Cpad = d.shape[1]
    iota = lax.broadcasted_iota(jnp.int32, d.shape, 1)
    d = jnp.where(iota < num_code, d, BIG_DIST)              # mask padded codebook rows

    # first argmin (torch.argmin tie-break), one-hot gather of the code vectors
    dmin = jnp.min(d, axis=-1, keepdims=True)
    cand = jnp.where(d <= dmin, iota, Cpad)
    idx = jnp.min(cand, axis=-1, keepdims=True)              # (N, 1) int32
    onehot = (iota == idx).astype(jnp.float32)
    quantized = jnp.dot(onehot, e, preferred_element_type=jnp.float32)            # (N, cd)

    # commitment loss = 0.25 * mse(quantized.detach(), z_down)
    diff = quantized - zd
    l = jnp.mean(jnp.mean(diff * diff, axis=-1, keepdims=True), axis=0, keepdims=True)
    loss_ref[...] = 0.25 * l
    idx_ref[...] = idx

    # straight-through: forward value of z_down + sg(quantized - z_down) == quantized
    o_ref[...] = jnp.dot(quantized.astype(jnp.bfloat16), uw_ref[...],
                         preferred_element_type=jnp.float32) + ub_ref[...]


def tail_vq(z, params):
    N, D = z.shape
    C, cd = params["codebook"].shape
    Cpad = ((C + 127) // 128) * 128
    codebook_p = jnp.pad(params["codebook"], ((0, Cpad - C), (0, 0)))
    return pl.pallas_call(
        functools.partial(_tail_vq_kernel, num_code=C),
        out_shape=(jax.ShapeDtypeStruct((N, D), jnp.float32),
                   jax.ShapeDtypeStruct((N, 1), jnp.int32),
                   jax.ShapeDtypeStruct((1, 1), jnp.float32)),
        in_specs=[_VMEM] * 8,
        out_specs=(_VMEM, _VMEM, _VMEM),
    )(z, params["final_ln_g"], params["final_ln_b"],
      params["down_w"], params["down_b"], codebook_p,
      params["up_w"], params["up_b"])


# --------------------------------- forward pass ---------------------------------

@functools.partial(jax.jit, static_argnames=("epoch", "num_heads", "num_layers", "code_len"))
def param_encoder_forward(params, pixel_v, xy_v, mask, *, epoch, num_heads, num_layers, code_len):
    """Matches PARAMEncoder.forward (inference / eval mode)."""
    bs, seqlen = pixel_v.shape
    D = params["coord_x"].shape[1]

    # embedding gathers + pos add (tiny; kept as jitted XLA glue)
    coord_embed = params["coord_x"][xy_v[..., 0]] + params["coord_y"][xy_v[..., 1]]  # (bs, seq, D)
    pix_embed = params["pixel"][pixel_v]                                             # (bs, seq, D)
    tok = coord_embed + pix_embed
    z_embed = jnp.broadcast_to(params["const"][None, :, :], (bs, code_len, D))
    x = jnp.concatenate([z_embed, tok], axis=1)                                      # (bs, S, D)
    S = code_len + seqlen
    x = x + params["pos"][:S][None, :, :]                  # pos embed (dropout = eval identity)

    # key-padding mask (code tokens never masked)
    if mask is not None:
        full_mask = jnp.concatenate([jnp.zeros((bs, code_len), dtype=bool), mask], axis=1)
    else:
        full_mask = jnp.zeros((bs, S), dtype=bool)

    # chip-aware grouping: G groups of nb batches; attention restricted per-batch by a
    # block-diagonal additive bias when nb > 1 (single-TC chips fold B into rows).
    G = _num_batch_groups(bs)
    nb = bs // G
    R = nb * S
    xg = x.astype(jnp.float32).reshape(G, R, D)
    m = full_mask.reshape(G, R)
    bid = jnp.arange(R, dtype=jnp.int32) // S
    same = bid[:, None] == bid[None, :]
    bias = jnp.where(same[None, :, :] & (~m[:, None, :]), 0.0, NEG_INF).astype(jnp.float32)

    enc = fused_encoder(xg, bias, params, num_heads=num_heads, num_layers=num_layers)
    enc = enc.reshape(bs, S, D)

    # code tokens, batch-major rows (b, c): output needs no transpose, only `selection`
    # gets reordered to PyTorch's seq-major (code_len*bs, 1) layout below.
    z = enc[:, :code_len, :].reshape(bs * code_len, D)

    if epoch < INITIAL_PASS:
        q_up = tail_no_vq(z, params)
        return q_up.reshape(bs, code_len, D), 0.0, None

    q_up, idx, loss = tail_vq(z, params)
    selection = idx.reshape(bs, code_len).T.reshape(code_len * bs, 1)
    return q_up.reshape(bs, code_len, D), loss[0, 0], selection
    # TODO(synk): training-only EMA codebook updates (_ema_cluster_size/_ema_w buffers) are
    # stateful parameter mutations with no inference-time equivalent; omitted.


# ------------------------------ parameter init ------------------------------

def init_params(key, *, embed_dim, num_heads, hidden_dim, num_layers,
                bits, code_len, max_len, num_code, codebook_dim):
    coord_vocab = 2 ** bits + COORD_PAD + EXTRA_PAD
    pixel_vocab = 2 ** bits * 2 ** bits + PIX_PAD + EXTRA_PAD
    keys = iter(jax.random.split(key, 128))

    def nrm(shape, scale=0.02, dtype=jnp.float32):
        return (scale * jax.random.normal(next(keys), shape)).astype(dtype)

    D, Hd, L, H = embed_dim, hidden_dim, num_layers, num_heads
    Dh = D // H
    bf16 = jnp.bfloat16
    params = dict(
        coord_x=nrm((coord_vocab, D), 1.0),
        coord_y=nrm((coord_vocab, D), 1.0),
        pixel=nrm((pixel_vocab, D), 1.0),
        const=nrm((code_len, D), 1.0),
        pos=nrm((max_len + code_len, D), (2.0 / D) ** 0.5),   # kaiming fan_in
        # tail (matmul weights stored bf16 = MXU fast path; biases/LN stay f32)
        down_w=nrm((D, codebook_dim), dtype=bf16),
        down_b=jnp.zeros((1, codebook_dim), jnp.float32),
        up_w=nrm((codebook_dim, D), dtype=bf16),
        up_b=jnp.zeros((1, D), jnp.float32),
        codebook=nrm((num_code, codebook_dim), 1.0),          # VectorQuantizerEMA (normal init)
        final_ln_g=jnp.ones((1, D), jnp.float32),
        final_ln_b=jnp.zeros((1, D), jnp.float32),
        # encoder layer stacks with leading L axis (VMEM-resident for the whole fused stack)
        in_w=nrm((L, D, 3 * D), dtype=bf16),
        in_b=jnp.zeros((L, 1, 3 * D), jnp.float32),
        out_w=nrm((L, H, Dh, D), dtype=bf16),                 # out-proj split per head
        out_b=jnp.zeros((L, 1, D), jnp.float32),
        ff1_w=nrm((L, D, Hd), dtype=bf16),
        ff1_b=jnp.zeros((L, 1, Hd), jnp.float32),
        ff2_w=nrm((L, Hd, D), dtype=bf16),
        ff2_b=jnp.zeros((L, 1, D), jnp.float32),
        ln1_g=jnp.ones((L, 1, D), jnp.float32),
        ln1_b=jnp.zeros((L, 1, D), jnp.float32),
        ln2_g=jnp.ones((L, 1, D), jnp.float32),
        ln2_b=jnp.zeros((L, 1, D), jnp.float32),
    )
    return params


# ----------------------------------- main -----------------------------------

if __name__ == "__main__":
    config = dict(embed_dim=32, num_heads=4, hidden_dim=64, num_layers=2, dropout_rate=0.0)
    quantization_bits = 4
    code_len = 4
    max_len = 16
    num_code = 100
    codebook_dim = 128

    bs, seqlen = 2, 8

    key = jax.random.PRNGKey(0)
    pkey, k1, k2 = jax.random.split(key, 3)
    params = init_params(
        pkey,
        embed_dim=config["embed_dim"], num_heads=config["num_heads"],
        hidden_dim=config["hidden_dim"], num_layers=config["num_layers"],
        bits=quantization_bits, code_len=code_len, max_len=max_len,
        num_code=num_code, codebook_dim=codebook_dim,
    )

    coord_vocab = 2 ** quantization_bits + COORD_PAD + EXTRA_PAD
    pixel_vocab = 2 ** quantization_bits * 2 ** quantization_bits + PIX_PAD + EXTRA_PAD
    pixel_v = jax.random.randint(k1, (bs, seqlen), 0, pixel_vocab, dtype=jnp.int32)
    xy_v = jax.random.randint(k2, (bs, seqlen, 2), 0, coord_vocab, dtype=jnp.int32)
    mask = jnp.zeros((bs, seqlen), dtype=bool).at[:, seqlen - 2:].set(True)  # pad last 2 tokens

    # epoch < INITIAL_PASS branch (down -> up, no VQ)
    out0, loss0, sel0 = param_encoder_forward(
        params, pixel_v, xy_v, mask, epoch=0,
        num_heads=config["num_heads"], num_layers=config["num_layers"], code_len=code_len)
    jax.block_until_ready(out0)
    assert out0.shape == (bs, code_len, config["embed_dim"])
    assert sel0 is None and float(loss0) == 0.0
    assert bool(jnp.all(jnp.isfinite(out0)))

    # epoch >= INITIAL_PASS branch (VQ-VAE quantization)
    out1, loss1, sel1 = param_encoder_forward(
        params, pixel_v, xy_v, mask, epoch=INITIAL_PASS + 1,
        num_heads=config["num_heads"], num_layers=config["num_layers"], code_len=code_len)
    jax.block_until_ready((out1, loss1, sel1))
    assert out1.shape == (bs, code_len, config["embed_dim"])
    assert sel1.shape == (code_len * bs, 1)
    assert bool(jnp.isfinite(loss1)) and bool(jnp.all(jnp.isfinite(out1)))
    assert bool(jnp.all((sel1 >= 0) & (sel1 < num_code)))

    print("KERNEL_OK")
</pallas_src>

<mosaic_0001>
module attributes {stable_mosaic.version = 11 : i64} {
  func.func @_tail_novq_kernel(%arg0: memref<8x32xf32, #tpu.memory_space<vmem>>, %arg1: memref<1x32xf32, #tpu.memory_space<vmem>>, %arg2: memref<1x32xf32, #tpu.memory_space<vmem>>, %arg3: memref<32x128xbf16, #tpu.memory_space<vmem>>, %arg4: memref<1x128xf32, #tpu.memory_space<vmem>>, %arg5: memref<128x32xbf16, #tpu.memory_space<vmem>>, %arg6: memref<1x32xf32, #tpu.memory_space<vmem>>, %arg7: memref<8x32xf32, #tpu.memory_space<vmem>>) attributes {dimension_semantics = [], scalar_prefetch = 0 : i64, scratch_operands = 0 : i64, tpu.core_type = #tpu.core_type<tc>} {
    %c0 = arith.constant 0 : index
    %c0_0 = arith.constant 0 : index
    %0 = vector.load %arg0[%c0, %c0_0] : memref<8x32xf32, #tpu.memory_space<vmem>>, vector<8x32xf32>
    %c0_1 = arith.constant 0 : index
    %c0_2 = arith.constant 0 : index
    %1 = vector.load %arg1[%c0_1, %c0_2] : memref<1x32xf32, #tpu.memory_space<vmem>>, vector<1x32xf32>
    %c0_3 = arith.constant 0 : index
    %c0_4 = arith.constant 0 : index
    %2 = vector.load %arg2[%c0_3, %c0_4] : memref<1x32xf32, #tpu.memory_space<vmem>>, vector<1x32xf32>
    %cst = arith.constant dense<0.000000e+00> : vector<8xf32>
    %3 = vector.multi_reduction <add>, %0, %cst [1] : vector<8x32xf32> to vector<8xf32>
    %4 = vector.shape_cast %3 : vector<8xf32> to vector<8x1xf32>
    %cst_5 = arith.constant 3.200000e+01 : f32
    %5 = vector.broadcast %cst_5 : f32 to vector<8x1xf32>
    %6 = arith.divf %4, %5 : vector<8x1xf32>
    %7 = vector.broadcast %6 : vector<8x1xf32> to vector<8x32xf32>
    %8 = arith.subf %0, %7 : vector<8x32xf32>
    %9 = arith.mulf %8, %8 : vector<8x32xf32>
    %cst_6 = arith.constant dense<0.000000e+00> : vector<8xf32>
    %10 = vector.multi_reduction <add>, %9, %cst_6 [1] : vector<8x32xf32> to vector<8xf32>
    %11 = vector.shape_cast %10 : vector<8xf32> to vector<8x1xf32>
    %cst_7 = arith.constant 3.200000e+01 : f32
    %12 = vector.broadcast %cst_7 : f32 to vector<8x1xf32>
    %13 = arith.divf %11, %12 : vector<8x1xf32>
    %cst_8 = arith.constant 9.99999974E-6 : f32
    %14 = vector.broadcast %cst_8 : f32 to vector<8x1xf32>
    %15 = arith.addf %13, %14 : vector<8x1xf32>
    %16 = math.rsqrt %15 : vector<8x1xf32>
    %17 = vector.broadcast %16 : vector<8x1xf32> to vector<8x32xf32>
    %18 = arith.mulf %8, %17 : vector<8x32xf32>
    %19 = vector.broadcast %1 : vector<1x32xf32> to vector<8x32xf32>
    %20 = arith.mulf %18, %19 : vector<8x32xf32>
    %21 = vector.broadcast %2 : vector<1x32xf32> to vector<8x32xf32>
    %22 = arith.addf %20, %21 : vector<8x32xf32>
    %23 = arith.truncf %22 : vector<8x32xf32> to vector<8x32xbf16>
    %c0_9 = arith.constant 0 : index
    %c0_10 = arith.constant 0 : index
    %24 = vector.load %arg3[%c0_9, %c0_10] : memref<32x128xbf16, #tpu.memory_space<vmem>>, vector<32x128xbf16>
    %cst_11 = arith.constant dense<0.000000e+00> : vector<8x128xf32>
    %25 = tpu.matmul %23, %24, %cst_11 {dimension_numbers = #tpu.dot_dimension_numbers<[1], [0], [0], [1], [0, 0, 1, 1], [], []>} : vector<8x32xbf16>, vector<32x128xbf16>, vector<8x128xf32> -> vector<8x128xf32>
    %c0_12 = arith.constant 0 : index
    %c0_13 = arith.constant 0 : index
    %26 = vector.load %arg4[%c0_12, %c0_13] : memref<1x128xf32, #tpu.memory_space<vmem>>, vector<1x128xf32>
    %27 = vector.broadcast %26 : vector<1x128xf32> to vector<8x128xf32>
    %28 = arith.addf %25, %27 : vector<8x128xf32>
    %29 = arith.truncf %28 : vector<8x128xf32> to vector<8x128xbf16>
    %c0_14 = arith.constant 0 : index
    %c0_15 = arith.constant 0 : index
    %30 = vector.load %arg5[%c0_14, %c0_15] : memref<128x32xbf16, #tpu.memory_space<vmem>>, vector<128x32xbf16>
    %cst_16 = arith.constant dense<0.000000e+00> : vector<8x32xf32>
    %31 = tpu.matmul %29, %30, %cst_16 {dimension_numbers = #tpu.dot_dimension_numbers<[1], [0], [0], [1], [0, 0, 1, 1], [], []>} : vector<8x128xbf16>, vector<128x32xbf16>, vector<8x32xf32> -> vector<8x32xf32>
    %c0_17 = arith.constant 0 : index
    %c0_18 = arith.constant 0 : index
    %32 = vector.load %arg6[%c0_17, %c0_18] : memref<1x32xf32, #tpu.memory_space<vmem>>, vector<1x32xf32>
    %33 = vector.broadcast %32 : vector<1x32xf32> to vector<8x32xf32>
    %34 = arith.addf %31, %33 : vector<8x32xf32>
    %c0_19 = arith.constant 0 : index
    %c0_20 = arith.constant 0 : index
    %35 = vector.load %arg7[%c0_19, %c0_20] : memref<8x32xf32, #tpu.memory_space<vmem>>, vector<8x32xf32>
    tpu.vector_store %arg7[%c0_19, %c0_20], %34 {strides = array<i32>} : memref<8x32xf32, #tpu.memory_space<vmem>>, vector<8x32xf32>,
    return
  }
}

module attributes {stable_mosaic.version = 11 : i64} {
  func.func @_fused_encoder_kernel(%arg0: i32, %arg1: memref<1x24x32xf32, #tpu.memory_space<vmem>>, %arg2: memref<1x24x24xf32, #tpu.memory_space<vmem>>, %arg3: memref<2x32x96xbf16, #tpu.memory_space<vmem>>, %arg4: memref<2x1x96xf32, #tpu.memory_space<vmem>>, %arg5: memref<2x4x8x32xbf16, #tpu.memory_space<vmem>>, %arg6: memref<2x1x32xf32, #tpu.memory_space<vmem>>, %arg7: memref<2x32x64xbf16, #tpu.memory_space<vmem>>, %arg8: memref<2x1x64xf32, #tpu.memory_space<vmem>>, %arg9: memref<2x64x32xbf16, #tpu.memory_space<vmem>>, %arg10: memref<2x1x32xf32, #tpu.memory_space<vmem>>, %arg11: memref<2x1x32xf32, #tpu.memory_space<vmem>>, %arg12: memref<2x1x32xf32, #tpu.memory_space<vmem>>, %arg13: memref<2x1x32xf32, #tpu.memory_space<vmem>>, %arg14: memref<2x1x32xf32, #tpu.memory_space<vmem>>, %arg15: memref<1x24x32xf32, #tpu.memory_space<vmem>>) attributes {dimension_semantics = [#tpu.dimension_semantics<parallel>], iteration_bounds = array<i64: 1>, scalar_prefetch = 0 : i64, scratch_operands = 0 : i64, tpu.core_type = #tpu.core_type<tc>, window_params = [{transform_indices = @transform_0, window_bounds = array<i64: 1, 24, 32>}, {transform_indices = @transform_1, window_bounds = array<i64: 1, 24, 24>}, {pipeline_mode = #tpu.pipeline_mode<synchronous>, transform_indices = @transform_2, window_bounds = array<i64: 2, 32, 96>}, {pipeline_mode = #tpu.pipeline_mode<synchronous>, transform_indices = @transform_3, window_bounds = array<i64: 2, 1, 96>}, {pipeline_mode = #tpu.pipeline_mode<synchronous>, transform_indices = @transform_4, window_bounds = array<i64: 2, 4, 8, 32>}, {pipeline_mode = #tpu.pipeline_mode<synchronous>, transform_indices = @transform_5, window_bounds = array<i64: 2, 1, 32>}, {pipeline_mode = #tpu.pipeline_mode<synchronous>, transform_indices = @transform_6, window_bounds = array<i64: 2, 32, 64>}, {pipeline_mode = #tpu.pipeline_mode<synchronous>, transform_indices = @transform_7, window_bounds = array<i64: 2, 1, 64>}, {pipeline_mode = #tpu.pipeline_mode<synchronous>, transform_indices = @transform_8, window_bounds = array<i64: 2, 64, 32>}, {pipeline_mode = #tpu.pipeline_mode<synchronous>, transform_indices = @transform_9, window_bounds = array<i64: 2, 1, 32>}, {pipeline_mode = #tpu.pipeline_mode<synchronous>, transform_indices = @transform_10, window_bounds = array<i64: 2, 1, 32>}, {pipeline_mode = #tpu.pipeline_mode<synchronous>, transform_indices = @transform_11, window_bounds = array<i64: 2, 1, 32>}, {pipeline_mode = #tpu.pipeline_mode<synchronous>, transform_indices = @transform_12, window_bounds = array<i64: 2, 1, 32>}, {pipeline_mode = #tpu.pipeline_mode<synchronous>, transform_indices = @transform_13, window_bounds = array<i64: 2, 1, 32>}, {transform_indices = @transform_14, window_bounds = array<i64: 1, 24, 32>}]} {
    %c0 = arith.constant 0 : index
    %c0_0 = arith.constant 0 : index
    %c0_1 = arith.constant 0 : index
    %0 = vector.load %arg1[%c0, %c0_0, %c0_1] : memref<1x24x32xf32, #tpu.memory_space<vmem>>, vector<1x24x32xf32>
    %1 = vector.shape_cast %0 : vector<1x24x32xf32> to vector<24x32xf32>
    %c0_2 = arith.constant 0 : index
    %c0_3 = arith.constant 0 : index
    %c0_4 = arith.constant 0 : index
    %2 = vector.load %arg2[%c0_2, %c0_3, %c0_4] : memref<1x24x24xf32, #tpu.memory_space<vmem>>, vector<1x24x24xf32>
    %3 = vector.shape_cast %2 : vector<1x24x24xf32> to vector<24x24xf32>
    %c0_5 = arith.constant 0 : index
    %c0_6 = arith.constant 0 : index
    %c0_7 = arith.constant 0 : index
    %4 = vector.load %arg11[%c0_5, %c0_6, %c0_7] : memref<2x1x32xf32, #tpu.memory_space<vmem>>, vector<1x1x32xf32>
    %5 = vector.shape_cast %4 : vector<1x1x32xf32> to vector<1x32xf32>
    %c0_8 = arith.constant 0 : index
    %c0_9 = arith.constant 0 : index
    %c0_10 = arith.constant 0 : index
    %6 = vector.load %arg12[%c0_8, %c0_9, %c0_10] : memref<2x1x32xf32, #tpu.memory_space<vmem>>, vector<1x1x32xf32>
    %7 = vector.shape_cast %6 : vector<1x1x32xf32> to vector<1x32xf32>
    %cst = arith.constant dense<0.000000e+00> : vector<24xf32>
    %8 = vector.multi_reduction <add>, %1, %cst [1] : vector<24x32xf32> to vector<24xf32>
    %9 = vector.shape_cast %8 : vector<24xf32> to vector<24x1xf32>
    %cst_11 = arith.constant 3.200000e+01 : f32
    %10 = vector.broadcast %cst_11 : f32 to vector<24x1xf32>
    %11 = arith.divf %9, %10 : vector<24x1xf32>
    %12 = vector.broadcast %11 : vector<24x1xf32> to vector<24x32xf32>
    %13 = arith.subf %1, %12 : vector<24x32xf32>
    %14 = arith.mulf %13, %13 : vector<24x32xf32>
    %cst_12 = arith.constant dense<0.000000e+00> : vector<24xf32>
    %15 = vector.multi_reduction <add>, %14, %cst_12 [1] : vector<24x32xf32> to vector<24xf32>
    %16 = vector.shape_cast %15 : vector<24xf32> to vector<24x1xf32>
    %cst_13 = arith.constant 3.200000e+01 : f32
    %17 = vector.broadcast %cst_13 : f32 to vector<24x1xf32>
    %18 = arith.divf %16, %17 : vector<24x1xf32>
    %cst_14 = arith.constant 9.99999974E-6 : f32
    %19 = vector.broadcast %cst_14 : f32 to vector<24x1xf32>
    %20 = arith.addf %18, %19 : vector<24x1xf32>
    %21 = math.rsqrt %20 : vector<24x1xf32>
    %22 = vector.broadcast %21 : vector<24x1xf32> to vector<24x32xf32>
    %23 = arith.mulf %13, %22 : vector<24x32xf32>
    %24 = vector.broadcast %5 : vector<1x32xf32> to vector<24x32xf32>
    %25 = arith.mulf %23, %24 : vector<24x32xf32>
    %26 = vector.broadcast %7 : vector<1x32xf32> to vector<24x32xf32>
    %27 = arith.addf %25, %26 : vector<24x32xf32>
    %28 = arith.truncf %27 : vector<24x32xf32> to vector<24x32xbf16>
    %c0_15 = arith.constant 0 : index
    %c0_16 = arith.constant 0 : index
    %c0_17 = arith.constant 0 : index
    %29 = vector.load %arg3[%c0_15, %c0_16, %c0_17] : memref<2x32x96xbf16, #tpu.memory_space<vmem>>, vector<1x32x96xbf16>
    %30 = vector.shape_cast %29 : vector<1x32x96xbf16> to vector<32x96xbf16>
    %cst_18 = arith.constant dense<0.000000e+00> : vector<24x96xf32>
    %31 = tpu.matmul %28, %30, %cst_18 {dimension_numbers = #tpu.dot_dimension_numbers<[1], [0], [0], [1], [0, 0, 1, 1], [], []>} : vector<24x32xbf16>, vector<32x96xbf16>, vector<24x96xf32> -> vector<24x96xf32>
    %c0_19 = arith.constant 0 : index
    %c0_20 = arith.constant 0 : index
    %c0_21 = arith.constant 0 : index
    %32 = vector.load %arg4[%c0_19, %c0_20, %c0_21] : memref<2x1x96xf32, #tpu.memory_space<vmem>>, vector<1x1x96xf32>
    %33 = vector.shape_cast %32 : vector<1x1x96xf32> to vector<1x96xf32>
    %34 = vector.broadcast %33 : vector<1x96xf32> to vector<24x96xf32>
    %35 = arith.addf %31, %34 : vector<24x96xf32>
    %36 = vector.extract_strided_slice %35 {offsets = [0, 0], sizes = [24, 32], strides = [1, 1]} : vector<24x96xf32> to vector<24x32xf32>
    %cst_22 = arith.constant 0.353553385 : f32
    %37 = vector.broadcast %cst_22 : f32 to vector<24x32xf32>
    %38 = arith.mulf %36, %37 : vector<24x32xf32>
    %39 = vector.extract_strided_slice %35 {offsets = [0, 32], sizes = [24, 32], strides = [1, 1]} : vector<24x96xf32> to vector<24x32xf32>
    %40 = vector.extract_strided_slice %35 {offsets = [0, 64], sizes = [24, 32], strides = [1, 1]} : vector<24x96xf32> to vector<24x32xf32>
    %41 = vector.extract_strided_slice %38 {offsets = [0, 0], sizes = [24, 8], strides = [1, 1]} : vector<24x32xf32> to vector<24x8xf32>
    %42 = vector.extract_strided_slice %39 {offsets = [0, 0], sizes = [24, 8], strides = [1, 1]} : vector<24x32xf32> to vector<24x8xf32>
    %cst_23 = arith.constant dense<0.000000e+00> : vector<24x24xf32>
    %43 = tpu.matmul %41, %42, %cst_23 {dimension_numbers = #tpu.dot_dimension_numbers<[1], [1], [0], [0], [0, 0, 1, 0], [], []>} : vector<24x8xf32>, vector<24x8xf32>, vector<24x24xf32> -> vector<24x24xf32>
    %44 = arith.addf %43, %3 : vector<24x24xf32>
    %cst_24 = arith.constant dense<0xFF800000> : vector<24xf32>
    %45 = vector.multi_reduction <maximumf>, %44, %cst_24 [1] : vector<24x24xf32> to vector<24xf32>
    %46 = vector.shape_cast %45 : vector<24xf32> to vector<24x1xf32>
    %47 = vector.broadcast %46 : vector<24x1xf32> to vector<24x24xf32>
    %48 = arith.subf %44, %47 : vector<24x24xf32>
    %49 = math.exp %48 : vector<24x24xf32>
    %cst_25 = arith.constant dense<0.000000e+00> : vector<24xf32>
    %50 = vector.multi_reduction <add>, %49, %cst_25 [1] : vector<24x24xf32> to vector<24xf32>
    %51 = vector.shape_cast %50 : vector<24xf32> to vector<24x1xf32>
    %52 = tpu.reciprocal %51 {approx = true} : vector<24x1xf32> -> vector<24x1xf32>
    %53 = vector.broadcast %52 : vector<24x1xf32> to vector<24x24xf32>
    %54 = arith.mulf %49, %53 : vector<24x24xf32>
    %55 = arith.truncf %54 : vector<24x24xf32> to vector<24x24xbf16>
    %56 = vector.extract_strided_slice %40 {offsets = [0, 0], sizes = [24, 8], strides = [1, 1]} : vector<24x32xf32> to vector<24x8xf32>
    %57 = arith.truncf %56 : vector<24x8xf32> to vector<24x8xbf16>
    %cst_26 = arith.constant dense<0.000000e+00> : vector<24x8xf32>
    %58 = tpu.matmul %55, %57, %cst_26 {dimension_numbers = #tpu.dot_dimension_numbers<[1], [0], [0], [1], [0, 0, 1, 1], [], []>} : vector<24x24xbf16>, vector<24x8xbf16>, vector<24x8xf32> -> vector<24x8xf32>
    %59 = arith.truncf %58 : vector<24x8xf32> to vector<24x8xbf16>
    %c0_27 = arith.constant 0 : index
    %c0_28 = arith.constant 0 : index
    %c0_29 = arith.constant 0 : index
    %c0_30 = arith.constant 0 : index
    %60 = vector.load %arg5[%c0_27, %c0_28, %c0_29, %c0_30] : memref<2x4x8x32xbf16, #tpu.memory_space<vmem>>, vector<1x1x8x32xbf16>
    %61 = vector.shape_cast %60 : vector<1x1x8x32xbf16> to vector<8x32xbf16>
    %cst_31 = arith.constant dense<0.000000e+00> : vector<24x32xf32>
    %62 = tpu.matmul %59, %61, %cst_31 {dimension_numbers = #tpu.dot_dimension_numbers<[1], [0], [0], [1], [0, 0, 1, 1], [], []>} : vector<24x8xbf16>, vector<8x32xbf16>, vector<24x32xf32> -> vector<24x32xf32>
    %63 = vector.extract_strided_slice %38 {offsets = [0, 8], sizes = [24, 8], strides = [1, 1]} : vector<24x32xf32> to vector<24x8xf32>
    %64 = vector.extract_strided_slice %39 {offsets = [0, 8], sizes = [24, 8], strides = [1, 1]} : vector<24x32xf32> to vector<24x8xf32>
    %cst_32 = arith.constant dense<0.000000e+00> : vector<24x24xf32>
    %65 = tpu.matmul %63, %64, %cst_32 {dimension_numbers = #tpu.dot_dimension_numbers<[1], [1], [0], [0], [0, 0, 1, 0], [], []>} : vector<24x8xf32>, vector<24x8xf32>, vector<24x24xf32> -> vector<24x24xf32>
    %66 = arith.addf %65, %3 : vector<24x24xf32>
    %cst_33 = arith.constant dense<0xFF800000> : vector<24xf32>
    %67 = vector.multi_reduction <maximumf>, %66, %cst_33 [1] : vector<24x24xf32> to vector<24xf32>
    %68 = vector.shape_cast %67 : vector<24xf32> to vector<24x1xf32>
    %69 = vector.broadcast %68 : vector<24x1xf32> to vector<24x24xf32>
    %70 = arith.subf %66, %69 : vector<24x24xf32>
    %71 = math.exp %70 : vector<24x24xf32>
    %cst_34 = arith.constant dense<0.000000e+00> : vector<24xf32>
    %72 = vector.multi_reduction <add>, %71, %cst_34 [1] : vector<24x24xf32> to vector<24xf32>
    %73 = vector.shape_cast %72 : vector<24xf32> to vector<24x1xf32>
    %74 = tpu.reciprocal %73 {approx = true} : vector<24x1xf32> -> vector<24x1xf32>
    %75 = vector.broadcast %74 : vector<24x1xf32> to vector<24x24xf32>
    %76 = arith.mulf %71, %75 : vector<24x24xf32>
    %77 = arith.truncf %76 : vector<24x24xf32> to vector<24x24xbf16>
    %78 = vector.extract_strided_slice %40 {offsets = [0, 8], sizes = [24, 8], strides = [1, 1]} : vector<24x32xf32> to vector<24x8xf32>
    %79 = arith.truncf %78 : vector<24x8xf32> to vector<24x8xbf16>
    %cst_35 = arith.constant dense<0.000000e+00> : vector<24x8xf32>
    %80 = tpu.matmul %77, %79, %cst_35 {dimension_numbers = #tpu.dot_dimension_numbers<[1], [0], [0], [1], [0, 0, 1, 1], [], []>} : vector<24x24xbf16>, vector<24x8xbf16>, vector<24x8xf32> -> vector<24x8xf32>
    %81 = arith.truncf %80 : vector<24x8xf32> to vector<24x8xbf16>
    %c0_36 = arith.constant 0 : index
    %c1 = arith.constant 1 : index
    %c0_37 = arith.constant 0 : index
    %c0_38 = arith.constant 0 : index
    %82 = vector.load %arg5[%c0_36, %c1, %c0_37, %c0_38] : memref<2x4x8x32xbf16, #tpu.memory_space<vmem>>, vector<1x1x8x32xbf16>
    %83 = vector.shape_cast %82 : vector<1x1x8x32xbf16> to vector<8x32xbf16>
    %cst_39 = arith.constant dense<0.000000e+00> : vector<24x32xf32>
    %84 = tpu.matmul %81, %83, %cst_39 {dimension_numbers = #tpu.dot_dimension_numbers<[1], [0], [0], [1], [0, 0, 1, 1], [], []>} : vector<24x8xbf16>, vector<8x32xbf16>, vector<24x32xf32> -> vector<24x32xf32>
    %85 = arith.addf %62, %84 : vector<24x32xf32>
    %86 = vector.extract_strided_slice %38 {offsets = [0, 16], sizes = [24, 8], strides = [1, 1]} : vector<24x32xf32> to vector<24x8xf32>
    %87 = vector.extract_strided_slice %39 {offsets = [0, 16], sizes = [24, 8], strides = [1, 1]} : vector<24x32xf32> to vector<24x8xf32>
    %cst_40 = arith.constant dense<0.000000e+00> : vector<24x24xf32>
    %88 = tpu.matmul %86, %87, %cst_40 {dimension_numbers = #tpu.dot_dimension_numbers<[1], [1], [0], [0], [0, 0, 1, 0], [], []>} : vector<24x8xf32>, vector<24x8xf32>, vector<24x24xf32> -> vector<24x24xf32>
    %89 = arith.addf %88, %3 : vector<24x24xf32>
    %cst_41 = arith.constant dense<0xFF800000> : vector<24xf32>
    %90 = vector.multi_reduction <maximumf>, %89, %cst_41 [1] : vector<24x24xf32> to vector<24xf32>
    %91 = vector.shape_cast %90 : vector<24xf32> to vector<24x1xf32>
    %92 = vector.broadcast %91 : vector<24x1xf32> to vector<24x24xf32>
    %93 = arith.subf %89, %92 : vector<24x24xf32>
    %94 = math.exp %93 : vector<24x24xf32>
    %cst_42 = arith.constant dense<0.000000e+00> : vector<24xf32>
    %95 = vector.multi_reduction <add>, %94, %cst_42 [1] : vector<24x24xf32> to vector<24xf32>
    %96 = vector.shape_cast %95 : vector<24xf32> to vector<24x1xf32>
    %97 = tpu.reciprocal %96 {approx = true} : vector<24x1xf32> -> vector<24x1xf32>
    %98 = vector.broadcast %97 : vector<24x1xf32> to vector<24x24xf32>
    %99 = arith.mulf %94, %98 : vector<24x24xf32>
    %100 = arith.truncf %99 : vector<24x24xf32> to vector<24x24xbf16>
    %101 = vector.extract_strided_slice %40 {offsets = [0, 16], sizes = [24, 8], strides = [1, 1]} : vector<24x32xf32> to vector<24x8xf32>
    %102 = arith.truncf %101 : vector<24x8xf32> to vector<24x8xbf16>
    %cst_43 = arith.constant dense<0.000000e+00> : vector<24x8xf32>
    %103 = tpu.matmul %100, %102, %cst_43 {dimension_numbers = #tpu.dot_dimension_numbers<[1], [0], [0], [1], [0, 0, 1, 1], [], []>} : vector<24x24xbf16>, vector<24x8xbf16>, vector<24x8xf32> -> vector<24x8xf32>
    %104 = arith.truncf %103 : vector<24x8xf32> to vector<24x8xbf16>
    %c0_44 = arith.constant 0 : index
    %c2 = arith.constant 2 : index
    %c0_45 = arith.constant 0 : index
    %c0_46 = arith.constant 0 : index
    %105 = vector.load %arg5[%c0_44, %c2, %c0_45, %c0_46] : memref<2x4x8x32xbf16, #tpu.memory_space<vmem>>, vector<1x1x8x32xbf16>
    %106 = vector.shape_cast %105 : vector<1x1x8x32xbf16> to vector<8x32xbf16>
    %cst_47 = arith.constant dense<0.000000e+00> : vector<24x32xf32>
    %107 = tpu.matmul %104, %106, %cst_47 {dimension_numbers = #tpu.dot_dimension_numbers<[1], [0], [0], [1], [0, 0, 1, 1], [], []>} : vector<24x8xbf16>, vector<8x32xbf16>, vector<24x32xf32> -> vector<24x32xf32>
    %108 = arith.addf %85, %107 : vector<24x32xf32>
    %109 = vector.extract_strided_slice %38 {offsets = [0, 24], sizes = [24, 8], strides = [1, 1]} : vector<24x32xf32> to vector<24x8xf32>
    %110 = vector.extract_strided_slice %39 {offsets = [0, 24], sizes = [24, 8], strides = [1, 1]} : vector<24x32xf32> to vector<24x8xf32>
    %cst_48 = arith.constant dense<0.000000e+00> : vector<24x24xf32>
    %111 = tpu.matmul %109, %110, %cst_48 {dimension_numbers = #tpu.dot_dimension_numbers<[1], [1], [0], [0], [0, 0, 1, 0], [], []>} : vector<24x8xf32>, vector<24x8xf32>, vector<24x24xf32> -> vector<24x24xf32>
    %112 = arith.addf %111, %3 : vector<24x24xf32>
    %cst_49 = arith.constant dense<0xFF800000> : vector<24xf32>
    %113 = vector.multi_reduction <maximumf>, %112, %cst_49 [1] : vector<24x24xf32> to vector<24xf32>
    %114 = vector.shape_cast %113 : vector<24xf32> to vector<24x1xf32>
    %115 = vector.broadcast %114 : vector<24x1xf32> to vector<24x24xf32>
    %116 = arith.subf %112, %115 : vector<24x24xf32>
    %117 = math.exp %116 : vector<24x24xf32>
    %cst_50 = arith.constant dense<0.000000e+00> : vector<24xf32>
    %118 = vector.multi_reduction <add>, %117, %cst_50 [1] : vector<24x24xf32> to vector<24xf32>
    %119 = vector.shape_cast %118 : vector<24xf32> to vector<24x1xf32>
    %120 = tpu.reciprocal %119 {approx = true} : vector<24x1xf32> -> vector<24x1xf32>
    %121 = vector.broadcast %120 : vector<24x1xf32> to vector<24x24xf32>
    %122 = arith.mulf %117, %121 : vector<24x24xf32>
    %123 = arith.truncf %122 : vector<24x24xf32> to vector<24x24xbf16>
    %124 = vector.extract_strided_slice %40 {offsets = [0, 24], sizes = [24, 8], strides = [1, 1]} : vector<24x32xf32> to vector<24x8xf32>
    %125 = arith.truncf %124 : vector<24x8xf32> to vector<24x8xbf16>
    %cst_51 = arith.constant dense<0.000000e+00> : vector<24x8xf32>
    %126 = tpu.matmul %123, %125, %cst_51 {dimension_numbers = #tpu.dot_dimension_numbers<[1], [0], [0], [1], [0, 0, 1, 1], [], []>} : vector<24x24xbf16>, vector<24x8xbf16>, vector<24x8xf32> -> vector<24x8xf32>
    %127 = arith.truncf %126 : vector<24x8xf32> to vector<24x8xbf16>
    %c0_52 = arith.constant 0 : index
    %c3 = arith.constant 3 : index
    %c0_53 = arith.constant 0 : index
    %c0_54 = arith.constant 0 : index
    %128 = vector.load %arg5[%c0_52, %c3, %c0_53, %c0_54] : memref<2x4x8x32xbf16, #tpu.memory_space<vmem>>, vector<1x1x8x32xbf16>
    %129 = vector.shape_cast %128 : vector<1x1x8x32xbf16> to vector<8x32xbf16>
    %cst_55 = arith.constant dense<0.000000e+00> : vector<24x32xf32>
    %130 = tpu.matmul %127, %129, %cst_55 {dimension_numbers = #tpu.dot_dimension_numbers<[1], [0], [0], [1], [0, 0, 1, 1], [], []>} : vector<24x8xbf16>, vector<8x32xbf16>, vector<24x32xf32> -> vector<24x32xf32>
    %131 = arith.addf %108, %130 : vector<24x32xf32>
    %132 = arith.addf %1, %131 : vector<24x32xf32>
    %c0_56 = arith.constant 0 : index
    %c0_57 = arith.constant 0 : index
    %c0_58 = arith.constant 0 : index
    %133 = vector.load %arg6[%c0_56, %c0_57, %c0_58] : memref<2x1x32xf32, #tpu.memory_space<vmem>>, vector<1x1x32xf32>
    %134 = vector.shape_cast %133 : vector<1x1x32xf32> to vector<1x32xf32>
    %135 = vector.broadcast %134 : vector<1x32xf32> to vector<24x32xf32>
    %136 = arith.addf %132, %135 : vector<24x32xf32>
    %c0_59 = arith.constant 0 : index
    %c0_60 = arith.constant 0 : index
    %c0_61 = arith.constant 0 : index
    %137 = vector.load %arg13[%c0_59, %c0_60, %c0_61] : memref<2x1x32xf32, #tpu.memory_space<vmem>>, vector<1x1x32xf32>
    %138 = vector.shape_cast %137 : vector<1x1x32xf32> to vector<1x32xf32>
    %c0_62 = arith.constant 0 : index
    %c0_63 = arith.constant 0 : index
    %c0_64 = arith.constant 0 : index
    %139 = vector.load %arg14[%c0_62, %c0_63, %c0_64] : memref<2x1x32xf32, #tpu.memory_space<vmem>>, vector<1x1x32xf32>
    %140 = vector.shape_cast %139 : vector<1x1x32xf32> to vector<1x32xf32>
    %cst_65 = arith.constant dense<0.000000e+00> : vector<24xf32>
    %141 = vector.multi_reduction <add>, %136, %cst_65 [1] : vector<24x32xf32> to vector<24xf32>
    %142 = vector.shape_cast %141 : vector<24xf32> to vector<24x1xf32>
    %cst_66 = arith.constant 3.200000e+01 : f32
    %143 = vector.broadcast %cst_66 : f32 to vector<24x1xf32>
    %144 = arith.divf %142, %143 : vector<24x1xf32>
    %145 = vector.broadcast %144 : vector<24x1xf32> to vector<24x32xf32>
    %146 = arith.subf %136, %145 : vector<24x32xf32>
    %147 = arith.mulf %146, %146 : vector<24x32xf32>
    %cst_67 = arith.constant dense<0.000000e+00> : vector<24xf32>
    %148 = vector.multi_reduction <add>, %147, %cst_67 [1] : vector<24x32xf32> to vector<24xf32>
    %149 = vector.shape_cast %148 : vector<24xf32> to vector<24x1xf32>
    %cst_68 = arith.constant 3.200000e+01 : f32
    %150 = vector.broadcast %cst_68 : f32 to vector<24x1xf32>
    %151 = arith.divf %149, %150 : vector<24x1xf32>
    %cst_69 = arith.constant 9.99999974E-6 : f32
    %152 = vector.broadcast %cst_69 : f32 to vector<24x1xf32>
    %153 = arith.addf %151, %152 : vector<24x1xf32>
    %154 = math.rsqrt %153 : vector<24x1xf32>
    %155 = vector.broadcast %154 : vector<24x1xf32> to vector<24x32xf32>
    %156 = arith.mulf %146, %155 : vector<24x32xf32>
    %157 = vector.broadcast %138 : vector<1x32xf32> to vector<24x32xf32>
    %158 = arith.mulf %156, %157 : vector<24x32xf32>
    %159 = vector.broadcast %140 : vector<1x32xf32> to vector<24x32xf32>
    %160 = arith.addf %158, %159 : vector<24x32xf32>
    %161 = arith.truncf %160 : vector<24x32xf32> to vector<24x32xbf16>
    %c0_70 = arith.constant 0 : index
    %c0_71 = arith.constant 0 : index
    %c0_72 = arith.constant 0 : index
    %162 = vector.load %arg7[%c0_70, %c0_71, %c0_72] : memref<2x32x64xbf16, #tpu.memory_space<vmem>>, vector<1x32x64xbf16>
    %163 = vector.shape_cast %162 : vector<1x32x64xbf16> to vector<32x64xbf16>
    %cst_73 = arith.constant dense<0.000000e+00> : vector<24x64xf32>
    %164 = tpu.matmul %161, %163, %cst_73 {dimension_numbers = #tpu.dot_dimension_numbers<[1], [0], [0], [1], [0, 0, 1, 1], [], []>} : vector<24x32xbf16>, vector<32x64xbf16>, vector<24x64xf32> -> vector<24x64xf32>
    %c0_74 = arith.constant 0 : index
    %c0_75 = arith.constant 0 : index
    %c0_76 = arith.constant 0 : index
    %165 = vector.load %arg8[%c0_74, %c0_75, %c0_76] : memref<2x1x64xf32, #tpu.memory_space<vmem>>, vector<1x1x64xf32>
    %166 = vector.shape_cast %165 : vector<1x1x64xf32> to vector<1x64xf32>
    %167 = vector.broadcast %166 : vector<1x64xf32> to vector<24x64xf32>
    %168 = arith.addf %164, %167 : vector<24x64xf32>
    %cst_77 = arith.constant 0.000000e+00 : f32
    %169 = vector.broadcast %cst_77 : f32 to vector<24x64xf32>
    %170 = arith.maximumf %168, %169 : vector<24x64xf32>
    %171 = arith.truncf %170 : vector<24x64xf32> to vector<24x64xbf16>
    %c0_78 = arith.constant 0 : index
    %c0_79 = arith.constant 0 : index
    %c0_80 = arith.constant 0 : index
    %172 = vector.load %arg9[%c0_78, %c0_79, %c0_80] : memref<2x64x32xbf16, #tpu.memory_space<vmem>>, vector<1x64x32xbf16>
    %173 = vector.shape_cast %172 : vector<1x64x32xbf16> to vector<64x32xbf16>
    %cst_81 = arith.constant dense<0.000000e+00> : vector<24x32xf32>
    %174 = tpu.matmul %171, %173, %cst_81 {dimension_numbers = #tpu.dot_dimension_numbers<[1], [0], [0], [1], [0, 0, 1, 1], [], []>} : vector<24x64xbf16>, vector<64x32xbf16>, vector<24x32xf32> -> vector<24x32xf32>
    %175 = arith.addf %136, %174 : vector<24x32xf32>
    %c0_82 = arith.constant 0 : index
    %c0_83 = arith.constant 0 : index
    %c0_84 = arith.constant 0 : index
    %176 = vector.load %arg10[%c0_82, %c0_83, %c0_84] : memref<2x1x32xf32, #tpu.memory_space<vmem>>, vector<1x1x32xf32>
    %177 = vector.shape_cast %176 : vector<1x1x32xf32> to vector<1x32xf32>
    %178 = vector.broadcast %177 : vector<1x32xf32> to vector<24x32xf32>
    %179 = arith.addf %175, %178 : vector<24x32xf32>
    %c1_85 = arith.constant 1 : index
    %c0_86 = arith.constant 0 : index
    %c0_87 = arith.constant 0 : index
    %180 = vector.load %arg11[%c1_85, %c0_86, %c0_87] : memref<2x1x32xf32, #tpu.memory_space<vmem>>, vector<1x1x32xf32>
    %181 = vector.shape_cast %180 : vector<1x1x32xf32> to vector<1x32xf32>
    %c1_88 = arith.constant 1 : index
    %c0_89 = arith.constant 0 : index
    %c0_90 = arith.constant 0 : index
    %182 = vector.load %arg12[%c1_88, %c0_89, %c0_90] : memref<2x1x32xf32, #tpu.memory_space<vmem>>, vector<1x1x32xf32>
    %183 = vector.shape_cast %182 : vector<1x1x32xf32> to vector<1x32xf32>
    %cst_91 = arith.constant dense<0.000000e+00> : vector<24xf32>
    %184 = vector.multi_reduction <add>, %179, %cst_91 [1] : vector<24x32xf32> to vector<24xf32>
    %185 = vector.shape_cast %184 : vector<24xf32> to vector<24x1xf32>
    %cst_92 = arith.constant 3.200000e+01 : f32
    %186 = vector.broadcast %cst_92 : f32 to vector<24x1xf32>
    %187 = arith.divf %185, %186 : vector<24x1xf32>
    %188 = vector.broadcast %187 : vector<24x1xf32> to vector<24x32xf32>
    %189 = arith.subf %179, %188 : vector<24x32xf32>
    %190 = arith.mulf %189, %189 : vector<24x32xf32>
    %cst_93 = arith.constant dense<0.000000e+00> : vector<24xf32>
    %191 = vector.multi_reduction <add>, %190, %cst_93 [1] : vector<24x32xf32> to vector<24xf32>
    %192 = vector.shape_cast %191 : vector<24xf32> to vector<24x1xf32>
    %cst_94 = arith.constant 3.200000e+01 : f32
    %193 = vector.broadcast %cst_94 : f32 to vector<24x1xf32>
    %194 = arith.divf %192, %193 : vector<24x1xf32>
    %cst_95 = arith.constant 9.99999974E-6 : f32
    %195 = vector.broadcast %cst_95 : f32 to vector<24x1xf32>
    %196 = arith.addf %194, %195 : vector<24x1xf32>
    %197 = math.rsqrt %196 : vector<24x1xf32>
    %198 = vector.broadcast %197 : vector<24x1xf32> to vector<24x32xf32>
    %199 = arith.mulf %189, %198 : vector<24x32xf32>
    %200 = vector.broadcast %181 : vector<1x32xf32> to vector<24x32xf32>
    %201 = arith.mulf %199, %200 : vector<24x32xf32>
    %202 = vector.broadcast %183 : vector<1x32xf32> to vector<24x32xf32>
    %203 = arith.addf %201, %202 : vector<24x32xf32>
    %204 = arith.truncf %203 : vector<24x32xf32> to vector<24x32xbf16>
    %c1_96 = arith.constant 1 : index
    %c0_97 = arith.constant 0 : index
    %c0_98 = arith.constant 0 : index
    %205 = vector.load %arg3[%c1_96, %c0_97, %c0_98] : memref<2x32x96xbf16, #tpu.memory_space<vmem>>, vector<1x32x96xbf16>
    %206 = vector.shape_cast %205 : vector<1x32x96xbf16> to vector<32x96xbf16>
    %cst_99 = arith.constant dense<0.000000e+00> : vector<24x96xf32>
    %207 = tpu.matmul %204, %206, %cst_99 {dimension_numbers = #tpu.dot_dimension_numbers<[1], [0], [0], [1], [0, 0, 1, 1], [], []>} : vector<24x32xbf16>, vector<32x96xbf16>, vector<24x96xf32> -> vector<24x96xf32>
    %c1_100 = arith.constant 1 : index
    %c0_101 = arith.constant 0 : index
    %c0_102 = arith.constant 0 : index
    %208 = vector.load %arg4[%c1_100, %c0_101, %c0_102] : memref<2x1x96xf32, #tpu.memory_space<vmem>>, vector<1x1x96xf32>
    %209 = vector.shape_cast %208 : vector<1x1x96xf32> to vector<1x96xf32>
    %210 = vector.broadcast %209 : vector<1x96xf32> to vector<24x96xf32>
    %211 = arith.addf %207, %210 : vector<24x96xf32>
    %212 = vector.extract_strided_slice %211 {offsets = [0, 0], sizes = [24, 32], strides = [1, 1]} : vector<24x96xf32> to vector<24x32xf32>
    %cst_103 = arith.constant 0.353553385 : f32
    %213 = vector.broadcast %cst_103 : f32 to vector<24x32xf32>
    %214 = arith.mulf %212, %213 : vector<24x32xf32>
    %215 = vector.extract_strided_slice %211 {offsets = [0, 32], sizes = [24, 32], strides = [1, 1]} : vector<24x96xf32> to vector<24x32xf32>
    %216 = vector.extract_strided_slice %211 {offsets = [0, 64], sizes = [24, 32], strides = [1, 1]} : vector<24x96xf32> to vector<24x32xf32>
    %217 = vector.extract_strided_slice %214 {offsets = [0, 0], sizes = [24, 8], strides = [1, 1]} : vector<24x32xf32> to vector<24x8xf32>
    %218 = vector.extract_strided_slice %215 {offsets = [0, 0], sizes = [24, 8], strides = [1, 1]} : vector<24x32xf32> to vector<24x8xf32>
    %cst_104 = arith.constant dense<0.000000e+00> : vector<24x24xf32>
    %219 = tpu.matmul %217, %218, %cst_104 {dimension_numbers = #tpu.dot_dimension_numbers<[1], [1], [0], [0], [0, 0, 1, 0], [], []>} : vector<24x8xf32>, vector<24x8xf32>, vector<24x24xf32> -> vector<24x24xf32>
    %220 = arith.addf %219, %3 : vector<24x24xf32>
    %cst_105 = arith.constant dense<0xFF800000> : vector<24xf32>
    %221 = vector.multi_reduction <maximumf>, %220, %cst_105 [1] : vector<24x24xf32> to vector<24xf32>
    %222 = vector.shape_cast %221 : vector<24xf32> to vector<24x1xf32>
    %223 = vector.broadcast %222 : vector<24x1xf32> to vector<24x24xf32>
    %224 = arith.subf %220, %223 : vector<24x24xf32>
    %225 = math.exp %224 : vector<24x24xf32>
    %cst_106 = arith.constant dense<0.000000e+00> : vector<24xf32>
    %226 = vector.multi_reduction <add>, %225, %cst_106 [1] : vector<24x24xf32> to vector<24xf32>
    %227 = vector.shape_cast %226 : vector<24xf32> to vector<24x1xf32>
    %228 = tpu.reciprocal %227 {approx = true} : vector<24x1xf32> -> vector<24x1xf32>
    %229 = vector.broadcast %228 : vector<24x1xf32> to vector<24x24xf32>
    %230 = arith.mulf %225, %229 : vector<24x24xf32>
    %231 = arith.truncf %230 : vector<24x24xf32> to vector<24x24xbf16>
    %232 = vector.extract_strided_slice %216 {offsets = [0, 0], sizes = [24, 8], strides = [1, 1]} : vector<24x32xf32> to vector<24x8xf32>
    %233 = arith.truncf %232 : vector<24x8xf32> to vector<24x8xbf16>
    %cst_107 = arith.constant dense<0.000000e+00> : vector<24x8xf32>
    %234 = tpu.matmul %231, %233, %cst_107 {dimension_numbers = #tpu.dot_dimension_numbers<[1], [0], [0], [1], [0, 0, 1, 1], [], []>} : vector<24x24xbf16>, vector<24x8xbf16>, vector<24x8xf32> -> vector<24x8xf32>
    %235 = arith.truncf %234 : vector<24x8xf32> to vector<24x8xbf16>
    %c1_108 = arith.constant 1 : index
    %c0_109 = arith.constant 0 : index
    %c0_110 = arith.constant 0 : index
    %c0_111 = arith.constant 0 : index
    %236 = vector.load %arg5[%c1_108, %c0_109, %c0_110, %c0_111] : memref<2x4x8x32xbf16, #tpu.memory_space<vmem>>, vector<1x1x8x32xbf16>
    %237 = vector.shape_cast %236 : vector<1x1x8x32xbf16> to vector<8x32xbf16>
    %cst_112 = arith.constant dense<0.000000e+00> : vector<24x32xf32>
    %238 = tpu.matmul %235, %237, %cst_112 {dimension_numbers = #tpu.dot_dimension_numbers<[1], [0], [0], [1], [0, 0, 1, 1], [], []>} : vector<24x8xbf16>, vector<8x32xbf16>, vector<24x32xf32> -> vector<24x32xf32>
    %239 = vector.extract_strided_slice %214 {offsets = [0, 8], sizes = [24, 8], strides = [1, 1]} : vector<24x32xf32> to vector<24x8xf32>
    %240 = vector.extract_strided_slice %215 {offsets = [0, 8], sizes = [24, 8], strides = [1, 1]} : vector<24x32xf32> to vector<24x8xf32>
    %cst_113 = arith.constant dense<0.000000e+00> : vector<24x24xf32>
    %241 = tpu.matmul %239, %240, %cst_113 {dimension_numbers = #tpu.dot_dimension_numbers<[1], [1], [0], [0], [0, 0, 1, 0], [], []>} : vector<24x8xf32>, vector<24x8xf32>, vector<24x24xf32> -> vector<24x24xf32>
    %242 = arith.addf %241, %3 : vector<24x24xf32>
    %cst_114 = arith.constant dense<0xFF800000> : vector<24xf32>
    %243 = vector.multi_reduction <maximumf>, %242, %cst_114 [1] : vector<24x24xf32> to vector<24xf32>
    %244 = vector.shape_cast %243 : vector<24xf32> to vector<24x1xf32>
    %245 = vector.broadcast %244 : vector<24x1xf32> to vector<24x24xf32>
    %246 = arith.subf %242, %245 : vector<24x24xf32>
    %247 = math.exp %246 : vector<24x24xf32>
    %cst_115 = arith.constant dense<0.000000e+00> : vector<24xf32>
    %248 = vector.multi_reduction <add>, %247, %cst_115 [1] : vector<24x24xf32> to vector<24xf32>
    %249 = vector.shape_cast %248 : vector<24xf32> to vector<24x1xf32>
    %250 = tpu.reciprocal %249 {approx = true} : vector<24x1xf32> -> vector<24x1xf32>
    %251 = vector.broadcast %250 : vector<24x1xf32> to vector<24x24xf32>
    %252 = arith.mulf %247, %251 : vector<24x24xf32>
    %253 = arith.truncf %252 : vector<24x24xf32> to vector<24x24xbf16>
    %254 = vector.extract_strided_slice %216 {offsets = [0, 8], sizes = [24, 8], strides = [1, 1]} : vector<24x32xf32> to vector<24x8xf32>
    %255 = arith.truncf %254 : vector<24x8xf32> to vector<24x8xbf16>
    %cst_116 = arith.constant dense<0.000000e+00> : vector<24x8xf32>
    %256 = tpu.matmul %253, %255, %cst_116 {dimension_numbers = #tpu.dot_dimension_numbers<[1], [0], [0], [1], [0, 0, 1, 1], [], []>} : vector<24x24xbf16>, vector<24x8xbf16>, vector<24x8xf32> -> vector<24x8xf32>
    %257 = arith.truncf %256 : vector<24x8xf32> to vector<24x8xbf16>
    %c1_117 = arith.constant 1 : index
    %c1_118 = arith.constant 1 : index
    %c0_119 = arith.constant 0 : index
    %c0_120 = arith.constant 0 : index
    %258 = vector.load %arg5[%c1_117, %c1_118, %c0_119, %c0_120] : memref<2x4x8x32xbf16, #tpu.memory_space<vmem>>, vector<1x1x8x32xbf16>
    %259 = vector.shape_cast %258 : vector<1x1x8x32xbf16> to vector<8x32xbf16>
    %cst_121 = arith.constant dense<0.000000e+00> : vector<24x32xf32>
    %260 = tpu.matmul %257, %259, %cst_121 {dimension_numbers = #tpu.dot_dimension_numbers<[1], [0], [0], [1], [0, 0, 1, 1], [], []>} : vector<24x8xbf16>, vector<8x32xbf16>, vector<24x32xf32> -> vector<24x32xf32>
    %261 = arith.addf %238, %260 : vector<24x32xf32>
    %262 = vector.extract_strided_slice %214 {offsets = [0, 16], sizes = [24, 8], strides = [1, 1]} : vector<24x32xf32> to vector<24x8xf32>
    %263 = vector.extract_strided_slice %215 {offsets = [0, 16], sizes = [24, 8], strides = [1, 1]} : vector<24x32xf32> to vector<24x8xf32>
    %cst_122 = arith.constant dense<0.000000e+00> : vector<24x24xf32>
    %264 = tpu.matmul %262, %263, %cst_122 {dimension_numbers = #tpu.dot_dimension_numbers<[1], [1], [0], [0], [0, 0, 1, 0], [], []>} : vector<24x8xf32>, vector<24x8xf32>, vector<24x24xf32> -> vector<24x24xf32>
    %265 = arith.addf %264, %3 : vector<24x24xf32>
    %cst_123 = arith.constant dense<0xFF800000> : vector<24xf32>
    %266 = vector.multi_reduction <maximumf>, %265, %cst_123 [1] : vector<24x24xf32> to vector<24xf32>
    %267 = vector.shape_cast %266 : vector<24xf32> to vector<24x1xf32>
    %268 = vector.broadcast %267 : vector<24x1xf32> to vector<24x24xf32>
    %269 = arith.subf %265, %268 : vector<24x24xf32>
    %270 = math.exp %269 : vector<24x24xf32>
    %cst_124 = arith.constant dense<0.000000e+00> : vector<24xf32>
    %271 = vector.multi_reduction <add>, %270, %cst_124 [1] : vector<24x24xf32> to vector<24xf32>
    %272 = vector.shape_cast %271 : vector<24xf32> to vector<24x1xf32>
    %273 = tpu.reciprocal %272 {approx = true} : vector<24x1xf32> -> vector<24x1xf32>
    %274 = vector.broadcast %273 : vector<24x1xf32> to vector<24x24xf32>
    %275 = arith.mulf %270, %274 : vector<24x24xf32>
    %276 = arith.truncf %275 : vector<24x24xf32> to vector<24x24xbf16>
    %277 = vector.extract_strided_slice %216 {offsets = [0, 16], sizes = [24, 8], strides = [1, 1]} : vector<24x32xf32> to vector<24x8xf32>
    %278 = arith.truncf %277 : vector<24x8xf32> to vector<24x8xbf16>
    %cst_125 = arith.constant dense<0.000000e+00> : vector<24x8xf32>
    %279 = tpu.matmul %276, %278, %cst_125 {dimension_numbers = #tpu.dot_dimension_numbers<[1], [0], [0], [1], [0, 0, 1, 1], [], []>} : vector<24x24xbf16>, vector<24x8xbf16>, vector<24x8xf32> -> vector<24x8xf32>
    %280 = arith.truncf %279 : vector<24x8xf32> to vector<24x8xbf16>
    %c1_126 = arith.constant 1 : index
    %c2_127 = arith.constant 2 : index
    %c0_128 = arith.constant 0 : index
    %c0_129 = arith.constant 0 : index
    %281 = vector.load %arg5[%c1_126, %c2_127, %c0_128, %c0_129] : memref<2x4x8x32xbf16, #tpu.memory_space<vmem>>, vector<1x1x8x32xbf16>
    %282 = vector.shape_cast %281 : vector<1x1x8x32xbf16> to vector<8x32xbf16>
    %cst_130 = arith.constant dense<0.000000e+00> : vector<24x32xf32>
    %283 = tpu.matmul %280, %282, %cst_130 {dimension_numbers = #tpu.dot_dimension_numbers<[1], [0], [0], [1], [0, 0, 1, 1], [], []>} : vector<24x8xbf16>, vector<8x32xbf16>, vector<24x32xf32> -> vector<24x32xf32>
    %284 = arith.addf %261, %283 : vector<24x32xf32>
    %285 = vector.extract_strided_slice %214 {offsets = [0, 24], sizes = [24, 8], strides = [1, 1]} : vector<24x32xf32> to vector<24x8xf32>
    %286 = vector.extract_strided_slice %215 {offsets = [0, 24], sizes = [24, 8], strides = [1, 1]} : vector<24x32xf32> to vector<24x8xf32>
    %cst_131 = arith.constant dense<0.000000e+00> : vector<24x24xf32>
    %287 = tpu.matmul %285, %286, %cst_131 {dimension_numbers = #tpu.dot_dimension_numbers<[1], [1], [0], [0], [0, 0, 1, 0], [], []>} : vector<24x8xf32>, vector<24x8xf32>, vector<24x24xf32> -> vector<24x24xf32>
    %288 = arith.addf %287, %3 : vector<24x24xf32>
    %cst_132 = arith.constant dense<0xFF800000> : vector<24xf32>
    %289 = vector.multi_reduction <maximumf>, %288, %cst_132 [1] : vector<24x24xf32> to vector<24xf32>
    %290 = vector.shape_cast %289 : vector<24xf32> to vector<24x1xf32>
    %291 = vector.broadcast %290 : vector<24x1xf32> to vector<24x24xf32>
    %292 = arith.subf %288, %291 : vector<24x24xf32>
    %293 = math.exp %292 : vector<24x24xf32>
    %cst_133 = arith.constant dense<0.000000e+00> : vector<24xf32>
    %294 = vector.multi_reduction <add>, %293, %cst_133 [1] : vector<24x24xf32> to vector<24xf32>
    %295 = vector.shape_cast %294 : vector<24xf32> to vector<24x1xf32>
    %296 = tpu.reciprocal %295 {approx = true} : vector<24x1xf32> -> vector<24x1xf32>
    %297 = vector.broadcast %296 : vector<24x1xf32> to vector<24x24xf32>
    %298 = arith.mulf %293, %297 : vector<24x24xf32>
    %299 = arith.truncf %298 : vector<24x24xf32> to vector<24x24xbf16>
    %300 = vector.extract_strided_slice %216 {offsets = [0, 24], sizes = [24, 8], strides = [1, 1]} : vector<24x32xf32> to vector<24x8xf32>
    %301 = arith.truncf %300 : vector<24x8xf32> to vector<24x8xbf16>
    %cst_134 = arith.constant dense<0.000000e+00> : vector<24x8xf32>
    %302 = tpu.matmul %299, %301, %cst_134 {dimension_numbers = #tpu.dot_dimension_numbers<[1], [0], [0], [1], [0, 0, 1, 1], [], []>} : vector<24x24xbf16>, vector<24x8xbf16>, vector<24x8xf32> -> vector<24x8xf32>
    %303 = arith.truncf %302 : vector<24x8xf32> to vector<24x8xbf16>
    %c1_135 = arith.constant 1 : index
    %c3_136 = arith.constant 3 : index
    %c0_137 = arith.constant 0 : index
    %c0_138 = arith.constant 0 : index
    %304 = vector.load %arg5[%c1_135, %c3_136, %c0_137, %c0_138] : memref<2x4x8x32xbf16, #tpu.memory_space<vmem>>, vector<1x1x8x32xbf16>
    %305 = vector.shape_cast %304 : vector<1x1x8x32xbf16> to vector<8x32xbf16>
    %cst_139 = arith.constant dense<0.000000e+00> : vector<24x32xf32>
    %306 = tpu.matmul %303, %305, %cst_139 {dimension_numbers = #tpu.dot_dimension_numbers<[1], [0], [0], [1], [0, 0, 1, 1], [], []>} : vector<24x8xbf16>, vector<8x32xbf16>, vector<24x32xf32> -> vector<24x32xf32>
    %307 = arith.addf %284, %306 : vector<24x32xf32>
    %308 = arith.addf %179, %307 : vector<24x32xf32>
    %c1_140 = arith.constant 1 : index
    %c0_141 = arith.constant 0 : index
    %c0_142 = arith.constant 0 : index
    %309 = vector.load %arg6[%c1_140, %c0_141, %c0_142] : memref<2x1x32xf32, #tpu.memory_space<vmem>>, vector<1x1x32xf32>
    %310 = vector.shape_cast %309 : vector<1x1x32xf32> to vector<1x32xf32>
    %311 = vector.broadcast %310 : vector<1x32xf32> to vector<24x32xf32>
    %312 = arith.addf %308, %311 : vector<24x32xf32>
    %c1_143 = arith.constant 1 : index
    %c0_144 = arith.constant 0 : index
    %c0_145 = arith.constant 0 : index
    %313 = vector.load %arg13[%c1_143, %c0_144, %c0_145] : memref<2x1x32xf32, #tpu.memory_space<vmem>>, vector<1x1x32xf32>
    %314 = vector.shape_cast %313 : vector<1x1x32xf32> to vector<1x32xf32>
    %c1_146 = arith.constant 1 : index
    %c0_147 = arith.constant 0 : index
    %c0_148 = arith.constant 0 : index
    %315 = vector.load %arg14[%c1_146, %c0_147, %c0_148] : memref<2x1x32xf32, #tpu.memory_space<vmem>>, vector<1x1x32xf32>
    %316 = vector.shape_cast %315 : vector<1x1x32xf32> to vector<1x32xf32>
    %cst_149 = arith.constant dense<0.000000e+00> : vector<24xf32>
    %317 = vector.multi_reduction <add>, %312, %cst_149 [1] : vector<24x32xf32> to vector<24xf32>
    %318 = vector.shape_cast %317 : vector<24xf32> to vector<24x1xf32>
    %cst_150 = arith.constant 3.200000e+01 : f32
    %319 = vector.broadcast %cst_150 : f32 to vector<24x1xf32>
    %320 = arith.divf %318, %319 : vector<24x1xf32>
    %321 = vector.broadcast %320 : vector<24x1xf32> to vector<24x32xf32>
    %322 = arith.subf %312, %321 : vector<24x32xf32>
    %323 = arith.mulf %322, %322 : vector<24x32xf32>
    %cst_151 = arith.constant dense<0.000000e+00> : vector<24xf32>
    %324 = vector.multi_reduction <add>, %323, %cst_151 [1] : vector<24x32xf32> to vector<24xf32>
    %325 = vector.shape_cast %324 : vector<24xf32> to vector<24x1xf32>
    %cst_152 = arith.constant 3.200000e+01 : f32
    %326 = vector.broadcast %cst_152 : f32 to vector<24x1xf32>
    %327 = arith.divf %325, %326 : vector<24x1xf32>
    %cst_153 = arith.constant 9.99999974E-6 : f32
    %328 = vector.broadcast %cst_153 : f32 to vector<24x1xf32>
    %329 = arith.addf %327, %328 : vector<24x1xf32>
    %330 = math.rsqrt %329 : vector<24x1xf32>
    %331 = vector.broadcast %330 : vector<24x1xf32> to vector<24x32xf32>
    %332 = arith.mulf %322, %331 : vector<24x32xf32>
    %333 = vector.broadcast %314 : vector<1x32xf32> to vector<24x32xf32>
    %334 = arith.mulf %332, %333 : vector<24x32xf32>
    %335 = vector.broadcast %316 : vector<1x32xf32> to vector<24x32xf32>
    %336 = arith.addf %334, %335 : vector<24x32xf32>
    %337 = arith.truncf %336 : vector<24x32xf32> to vector<24x32xbf16>
    %c1_154 = arith.constant 1 : index
    %c0_155 = arith.constant 0 : index
    %c0_156 = arith.constant 0 : index
    %338 = vector.load %arg7[%c1_154, %c0_155, %c0_156] : memref<2x32x64xbf16, #tpu.memory_space<vmem>>, vector<1x32x64xbf16>
    %339 = vector.shape_cast %338 : vector<1x32x64xbf16> to vector<32x64xbf16>
    %cst_157 = arith.constant dense<0.000000e+00> : vector<24x64xf32>
    %340 = tpu.matmul %337, %339, %cst_157 {dimension_numbers = #tpu.dot_dimension_numbers<[1], [0], [0], [1], [0, 0, 1, 1], [], []>} : vector<24x32xbf16>, vector<32x64xbf16>, vector<24x64xf32> -> vector<24x64xf32>
    %c1_158 = arith.constant 1 : index
    %c0_159 = arith.constant 0 : index
    %c0_160 = arith.constant 0 : index
    %341 = vector.load %arg8[%c1_158, %c0_159, %c0_160] : memref<2x1x64xf32, #tpu.memory_space<vmem>>, vector<1x1x64xf32>
    %342 = vector.shape_cast %341 : vector<1x1x64xf32> to vector<1x64xf32>
    %343 = vector.broadcast %342 : vector<1x64xf32> to vector<24x64xf32>
    %344 = arith.addf %340, %343 : vector<24x64xf32>
    %cst_161 = arith.constant 0.000000e+00 : f32
    %345 = vector.broadcast %cst_161 : f32 to vector<24x64xf32>
    %346 = arith.maximumf %344, %345 : vector<24x64xf32>
    %347 = arith.truncf %346 : vector<24x64xf32> to vector<24x64xbf16>
    %c1_162 = arith.constant 1 : index
    %c0_163 = arith.constant 0 : index
    %c0_164 = arith.constant 0 : index
    %348 = vector.load %arg9[%c1_162, %c0_163, %c0_164] : memref<2x64x32xbf16, #tpu.memory_space<vmem>>, vector<1x64x32xbf16>
    %349 = vector.shape_cast %348 : vector<1x64x32xbf16> to vector<64x32xbf16>
    %cst_165 = arith.constant dense<0.000000e+00> : vector<24x32xf32>
    %350 = tpu.matmul %347, %349, %cst_165 {dimension_numbers = #tpu.dot_dimension_numbers<[1], [0], [0], [1], [0, 0, 1, 1], [], []>} : vector<24x64xbf16>, vector<64x32xbf16>, vector<24x32xf32> -> vector<24x32xf32>
    %351 = arith.addf %312, %350 : vector<24x32xf32>
    %c1_166 = arith.constant 1 : index
    %c0_167 = arith.constant 0 : index
    %c0_168 = arith.constant 0 : index
    %352 = vector.load %arg10[%c1_166, %c0_167, %c0_168] : memref<2x1x32xf32, #tpu.memory_space<vmem>>, vector<1x1x32xf32>
    %353 = vector.shape_cast %352 : vector<1x1x32xf32> to vector<1x32xf32>
    %354 = vector.broadcast %353 : vector<1x32xf32> to vector<24x32xf32>
    %355 = arith.addf %351, %354 : vector<24x32xf32>
    %c0_169 = arith.constant 0 : index
    %c0_170 = arith.constant 0 : index
    %c0_171 = arith.constant 0 : index
    %356 = vector.load %arg15[%c0_169, %c0_170, %c0_171] : memref<1x24x32xf32, #tpu.memory_space<vmem>>, vector<1x24x32xf32>
    %357 = vector.shape_cast %356 : vector<1x24x32xf32> to vector<24x32xf32>
    %358 = vector.shape_cast %355 : vector<24x32xf32> to vector<1x24x32xf32>
    tpu.vector_store %arg15[%c0_169, %c0_170, %c0_171], %358 {strides = array<i32>} : memref<1x24x32xf32, #tpu.memory_space<vmem>>, vector<1x24x32xf32>,
    return
  }
  func.func @transform_0(%arg0: i32) -> (i32, i32, i32) {
    %c0_i32 = arith.constant 0 : i32
    %c0_i32_0 = arith.constant 0 : i32
    %c0_i32_1 = arith.constant 0 : i32
    return %arg0, %c0_i32, %c0_i32_0 : i32, i32, i32
  }
  func.func @transform_1(%arg0: i32) -> (i32, i32, i32) {
    %c0_i32 = arith.constant 0 : i32
    %c0_i32_0 = arith.constant 0 : i32
    %c0_i32_1 = arith.constant 0 : i32
    return %arg0, %c0_i32, %c0_i32_0 : i32, i32, i32
  }
  func.func @transform_2(%arg0: i32) -> (i32, i32, i32) {
    %c0_i32 = arith.constant 0 : i32
    %c0_i32_0 = arith.constant 0 : i32
    %c0_i32_1 = arith.constant 0 : i32
    %c0_i32_2 = arith.constant 0 : i32
    return %c0_i32, %c0_i32_0, %c0_i32_1 : i32, i32, i32
  }
  func.func @transform_3(%arg0: i32) -> (i32, i32, i32) {
    %c0_i32 = arith.constant 0 : i32
    %c0_i32_0 = arith.constant 0 : i32
    %c0_i32_1 = arith.constant 0 : i32
    %c0_i32_2 = arith.constant 0 : i32
    return %c0_i32, %c0_i32_0, %c0_i32_1 : i32, i32, i32
  }
  func.func @transform_4(%arg0: i32) -> (i32, i32, i32, i32) {
    %c0_i32 = arith.constant 0 : i32
    %c0_i32_0 = arith.constant 0 : i32
    %c0_i32_1 = arith.constant 0 : i32
    %c0_i32_2 = arith.constant 0 : i32
    %c0_i32_3 = arith.constant 0 : i32
    return %c0_i32, %c0_i32_0, %c0_i32_1, %c0_i32_2 : i32, i32, i32, i32
  }
  func.func @transform_5(%arg0: i32) -> (i32, i32, i32) {
    %c0_i32 = arith.constant 0 : i32
    %c0_i32_0 = arith.constant 0 : i32
    %c0_i32_1 = arith.constant 0 : i32
    %c0_i32_2 = arith.constant 0 : i32
    return %c0_i32, %c0_i32_0, %c0_i32_1 : i32, i32, i32
  }
  func.func @transform_6(%arg0: i32) -> (i32, i32, i32) {
    %c0_i32 = arith.constant 0 : i32
    %c0_i32_0 = arith.constant 0 : i32
    %c0_i32_1 = arith.constant 0 : i32
    %c0_i32_2 = arith.constant 0 : i32
    return %c0_i32, %c0_i32_0, %c0_i32_1 : i32, i32, i32
  }
  func.func @transform_7(%arg0: i32) -> (i32, i32, i32) {
    %c0_i32 = arith.constant 0 : i32
    %c0_i32_0 = arith.constant 0 : i32
    %c0_i32_1 = arith.constant 0 : i32
    %c0_i32_2 = arith.constant 0 : i32
    return %c0_i32, %c0_i32_0, %c0_i32_1 : i32, i32, i32
  }
  func.func @transform_8(%arg0: i32) -> (i32, i32, i32) {
    %c0_i32 = arith.constant 0 : i32
    %c0_i32_0 = arith.constant 0 : i32
    %c0_i32_1 = arith.constant 0 : i32
    %c0_i32_2 = arith.constant 0 : i32
    return %c0_i32, %c0_i32_0, %c0_i32_1 : i32, i32, i32
  }
  func.func @transform_9(%arg0: i32) -> (i32, i32, i32) {
    %c0_i32 = arith.constant 0 : i32
    %c0_i32_0 = arith.constant 0 : i32
    %c0_i32_1 = arith.constant 0 : i32
    %c0_i32_2 = arith.constant 0 : i32
    return %c0_i32, %c0_i32_0, %c0_i32_1 : i32, i32, i32
  }
  func.func @transform_10(%arg0: i32) -> (i32, i32, i32) {
    %c0_i32 = arith.constant 0 : i32
    %c0_i32_0 = arith.constant 0 : i32
    %c0_i32_1 = arith.constant 0 : i32
    %c0_i32_2 = arith.constant 0 : i32
    return %c0_i32, %c0_i32_0, %c0_i32_1 : i32, i32, i32
  }
  func.func @transform_11(%arg0: i32) -> (i32, i32, i32) {
    %c0_i32 = arith.constant 0 : i32
    %c0_i32_0 = arith.constant 0 : i32
    %c0_i32_1 = arith.constant 0 : i32
    %c0_i32_2 = arith.constant 0 : i32
    return %c0_i32, %c0_i32_0, %c0_i32_1 : i32, i32, i32
  }
  func.func @transform_12(%arg0: i32) -> (i32, i32, i32) {
    %c0_i32 = arith.constant 0 : i32
    %c0_i32_0 = arith.constant 0 : i32
    %c0_i32_1 = arith.constant 0 : i32
    %c0_i32_2 = arith.constant 0 : i32
    return %c0_i32, %c0_i32_0, %c0_i32_1 : i32, i32, i32
  }
  func.func @transform_13(%arg0: i32) -> (i32, i32, i32) {
    %c0_i32 = arith.constant 0 : i32
    %c0_i32_0 = arith.constant 0 : i32
    %c0_i32_1 = arith.constant 0 : i32
    %c0_i32_2 = arith.constant 0 : i32
    return %c0_i32, %c0_i32_0, %c0_i32_1 : i32, i32, i32
  }
  func.func @transform_14(%arg0: i32) -> (i32, i32, i32) {
    %c0_i32 = arith.constant 0 : i32
    %c0_i32_0 = arith.constant 0 : i32
    %c0_i32_1 = arith.constant 0 : i32
    return %arg0, %c0_i32, %c0_i32_0 : i32, i32, i32
  }
}

</mosaic_0001>

<bundles_post_ra>
// kernel: param_encoder_forward.3
= control target key start
LH: loop header
LB: loop body
LE: loop exit
PB: predicated region body
PF: predicated region fallthrough
CT: control target
= control target key end

     0   :  { %vm31_vm0 = vcmask 261120   ;;  %s441_s0 = inlined_call_operand.vmem [shape: f32[8,32], index: 0, kind: input, shape index: {}]   ;;  %s442_s1 = inlined_call_operand.vmem [shape: f32[1,32], index: 1, kind: input, shape index: {}]   ;;  %s443_s2 = inlined_call_operand.vmem [shape: f32[1,32], index: 2, kind: input, shape index: {}]   ;;  %s444_s3 = inlined_call_operand.vmem [shape: bf16[32,128], index: 3, kind: input, shape index: {}]   ;;  %s445_s4 = inlined_call_operand.vmem [shape: f32[1,128], index: 4, kind: input, shape index: {}]   ;;  %s446_s5 = inlined_call_operand.vmem [shape: bf16[128,32], index: 5, kind: input, shape index: {}]   ;;  %s447_s6 = inlined_call_operand.vmem [shape: f32[1,32], index: 6, kind: input, shape index: {}]   ;;  %s448_s7 = inlined_call_operand.hbm [shape: f32[8,32], index: 7, kind: output, shape index: {}]  }
   0x1   :  { %v28_v0 = vld [vmem:[%s441_s0] sm:$0xff] }
   0x2   :  { %v32_v1 = vsel %vm31_vm0, %v28_v0, 0.0 }
   0x3   :  { %33 = vadd.xlane.f32.xlu0 %v32_v1 }
   0x4   :  { %12 = vsyncpa [#allocation3], 0  ;;  %v312_v7 = vld [vmem:[%s444_s3 + $0x8] sm:$0xff]   ;;  %v346_v8 = vmov 0.0   ;;  %vm347_vm1 = vmmov 0   ;;  %v313_v9 = vld [vmem:[%s444_s3] sm:$0xff]  }
   0x5   :  { %281 = vmatprep.subr.bf16.mxu0 %v346_v8  ;;  %285 = vmatprep.mubr.msk.bf16.mxu0 %vm347_vm1, %v346_v8  ;;  %v314_v10 = vld [vmem:[%s446_s5 + $0x38] sm:$0xff]   ;;  %v315_v11 = vld [vmem:[%s446_s5 + $0x30] sm:$0xff]   ;;  %v316_v12 = vld [vmem:[%s446_s5 + $0x28] sm:$0xff]   ;;  %s348_s27 = smov [#allocation2]  }
   0x6   :  { %282 = vmatpush3.bf16.msra.mxu0 %v312_v7  ;;  %289 = vmatprep.subr.bf16.mxu1 %v346_v8  ;;  %v317_v13 = vld [vmem:[%s446_s5 + $0x20] sm:$0xff]   ;;  %v318_v14 = vld [vmem:[%s446_s5 + $0x18] sm:$0xff]   ;;  %v319_v15 = vld [vmem:[%s446_s5 + $0x10] sm:$0xff]   ;;  %s246_s0 = sshll.u32 %s348_s27, 4  ;;  %s247_s0 = int_to_ptr.vmem [resolvable:$true] %s246_s0 }
   0x7   :  { %283 = vmatprep.subr.bf16.mxu0 %v346_v8  ;;  %305 = vmatprep.mubr.msk.bf16.mxu1 %vm347_vm1, %v346_v8  ;;  %v320_v16 = vld [vmem:[%s446_s5 + $0x8] sm:$0xff]   ;;  %v254_v21 = vld [vmem:[%s442_s1] ss:$0 sm:$0xff]  ;;  %p329_p1 = scmp.lt.s32.totalorder %s247_s0, %s247_s0 }
   0x8   :  { %290 = vmatpush3.bf16.msra.mxu1 %v314_v10  ;;  %v255_v23 = vld [vmem:[%s443_s2] ss:$0 sm:$0xff] }
   0x9   :  { %291 = vmatprep.subr.bf16.mxu1 %v346_v8  ;;  %v321_v27 = vld [vmem:[%s446_s5] sm:$0xff]  }
   0xa   :  { %284 = vmatpush3.bf16.msra.mxu0 %v313_v9  ;;  %v256_v28 = vld [vmem:[%s445_s4] ss:$0 sm:$0xff]  ;;  %s324_s4 = scalar_lea.vmem %s247_s0, 128 }
   0xb   :  { %v260_v35 = vld [vmem:[%s447_s6] ss:$0 sm:$0xff]  ;;  %p325_p0 = scmp.ne.s32.totalorder %s247_s0, %s324_s4  ;;  %p330_p2 = scmp.lt.s32.totalorder %s324_s4, %s324_s4 }
   0xc   :  { %292 = vmatpush3.bf16.msra.mxu1 %v315_v11 }
   0xd   :  { %293 = vmatprep.subr.bf16.mxu1 %v346_v8  ;;  %p331_p3 = por %p330_p2, %p329_p1 }
   0xf   :  { %p332_p4 = pnand %p331_p3, %p325_p0 }
  0x10   :  { %294 = vmatpush3.bf16.msra.mxu1 %v316_v12 }
  0x11   :  { %295 = vmatprep.subr.bf16.mxu1 %v346_v8 }
  0x14   :  { %296 = vmatpush3.bf16.msra.mxu1 %v317_v13 }
  0x15   :  { %297 = vmatprep.subr.bf16.mxu1 %v346_v8 }
  0x18   :  { %298 = vmatpush3.bf16.msra.mxu1 %v318_v14 }
  0x19   :  { %299 = vmatprep.subr.bf16.mxu1 %v346_v8 }
  0x1c   :  { %300 = vmatpush3.bf16.msra.mxu1 %v319_v15 }
  0x1d   :  { %301 = vmatprep.subr.bf16.mxu1 %v346_v8 }
  0x20   :  { %302 = vmatpush3.bf16.msra.mxu1 %v320_v16 }
  0x21   :  { %303 = vmatprep.subr.bf16.mxu1 %v346_v8 }
  0x24   :  { %304 = vmatpush3.bf16.msra.mxu1 %v321_v27 }
  0x8c   :  { %v34_v2 = vpop.xlane.xlu0 %33 }
  0x8d   :  { %v36_v3 = vmul.f32 0.03125, %v34_v2 }
  0x8f   :  { %v37_v4 = vsub.f32 %v28_v0, %v36_v3 }
  0x91   :  { %v38_v5 = vmul.f32 %v37_v4, %v37_v4 }
  0x93   :  { %v39_v6 = vsel %vm31_vm0, %v38_v5, 0.0 }
  0x94   :  { %40 = vadd.xlane.f32.xlu0 %v39_v6 }
 0x11d   :  { %v41_v17 = vpop.xlane.xlu0 %40 }
 0x11e   :  { %v42_v18 = vmul.f32 0.03125, %v41_v17 }
 0x120   :  { %v43_v19 = vadd.f32 1e-05, %v42_v18 }
 0x122   :  { %322 = vrsqrt.f32 %v43_v19 }
 0x12f   :  { %v323_v20 = vpop.eup %322 }
 0x130   :  { %v45_v22 = vmul.f32 %v323_v20, %v37_v4 }
 0x132   :  { %v52_v24 = vmul.f32 %v254_v21, %v45_v22 }
 0x134   :  { %v59_v25 = vadd.f32 %v255_v23, %v52_v24 }
 0x136   :  { %v60_v26 = vpack.c.bf16 %v59_v25, %v59_v25 }
 0x138   :  { %286 = vmatmul.mubr.msk.bf16.vlgmr.msra.gmra.mxu0 %vm31_vm0, %v60_v26 }
 0x1f8   :  { %v121_v29 = vpop.f32.mrf.mxu0 }
 0x1f9   :  { %v122_v30 = vadd.f32 %v256_v28, %v121_v29 }
 0x1fa   :  { %v287_v31 = vpop.f32.mrf.mxu0 }
 0x1fb   :  { %v127_v32 = vpack.c.bf16 %v122_v30, %v122_v30 }
 0x1fc   :  { %v124_v33 = vpop.f32.mrf.mxu0 }
 0x1fd   :  { %306 = vmatmul.mubr.bf16.vlgmr.msra.gmra.mxu1 %v127_v32 }
 0x1fe   :  { %v288_v34 = vpop.f32.mrf.mxu0 }
 0x2bd   :  { %v233_v36 = vpop.f32.mrf.mxu1 }
 0x2be   :  { %v234_v37 = vadd.f32 %v260_v35, %v233_v36 }
 0x2bf   :  { %v307_v38 = vpop.f32.mrf.mxu1 }
 0x2c0   :  { %239 = vst.msk [vmem:[#allocation2] sm:$0xff] %vm31_vm0, %v234_v37 }
 0x2c1   :  { %v236_v39 = vpop.f32.mrf.mxu1 }
 0x2c2   :  { %335 = shalt.err (!%p332_p4)
}
 0x2c3   :  { %249 = dma.vmem_to_hbm [thread:$0]  %s247_s0, 128, %s448_s7, [#allocation3]   ;;  %v308_v40 = vpop.f32.mrf.mxu1 }
 0x2c4   :  { %344 = dma.done.wait [#allocation3], 128  }
 0x2c5   :  { %345 = vsyncadd [#allocation3], 4294967168 }
 0x2c6   :  { %253 = vsyncpa [#allocation3], 1 }

// kernel: param_encoder_forward.2
= control target key start
LH: loop header
LB: loop body
LE: loop exit
PB: predicated region body
PF: predicated region fallthrough
CT: control target
= control target key end

     0   :  { %vm56_vm0 = vcmask 261120   ;;  %v3731_v48 = vmov 0.0   ;;  %vm3732_vm1 = vmmov 0   ;;  %s3733_s29 = smov 96   ;;  %s3734_s30 = smov 88   ;;  %vm206_vm2 = vcmask 64512   ;;  %s4534_s0 = inlined_call_operand.vmem [shape: f32[1,24,32], index: 0, kind: input, shape index: {}]   ;;  %s4535_s2 = inlined_call_operand.vmem [shape: bf16[2,32,96], index: 2, kind: input, shape index: {}]   ;;  %s4536_s10 = inlined_call_operand.vmem [shape: f32[2,1,32], index: 10, kind: input, shape index: {}]   ;;  %s4537_s11 = inlined_call_operand.vmem [shape: f32[2,1,32], index: 11, kind: input, shape index: {}]   ;;  %s4538_s3 = inlined_call_operand.vmem [shape: f32[2,1,96], index: 3, kind: input, shape index: {}]   ;;  %s4539_s1 = inlined_call_operand.vmem [shape: f32[1,24,24], index: 1, kind: input, shape index: {}]   ;;  %s4540_s4 = inlined_call_operand.vmem [shape: bf16[2,4,8,32], index: 4, kind: input, shape index: {}]   ;;  %s4541_s5 = inlined_call_operand.vmem [shape: f32[2,1,32], index: 5, kind: input, shape index: {}]   ;;  %s4542_s6 = inlined_call_operand.vmem [shape: bf16[2,32,64], index: 6, kind: input, shape index: {}]   ;;  %s4543_s8 = inlined_call_operand.vmem [shape: bf16[2,64,32], index: 8, kind: input, shape index: {}]   ;;  %s4544_s12 = inlined_call_operand.vmem [shape: f32[2,1,32], index: 12, kind: input, shape index: {}]   ;;  %s4545_s13 = inlined_call_operand.vmem [shape: f32[2,1,32], index: 13, kind: input, shape index: {}]   ;;  %s4546_s7 = inlined_call_operand.vmem [shape: f32[2,1,64], index: 7, kind: input, shape index: {}]   ;;  %s4547_s9 = inlined_call_operand.vmem [shape: f32[2,1,32], index: 9, kind: input, shape index: {}]   ;;  %s4548_s14 = inlined_call_operand.vmem [shape: f32[1,24,32], index: 14, kind: output, shape index: {}]  }
   0x1   :  { %v48_v0 = vld [vmem:[%s4534_s0] sm:$0xff]  ;;  %v50_v1 = vld [vmem:[%s4534_s0 + $0x10] sm:$0xff]  ;;  %v49_v2 = vld [vmem:[%s4534_s0 + $0x8] sm:$0xff]  ;;  %s3735_s15 = smov 120   ;;  %vm302_vm3 = vcmask 195584   ;;  %s3736_s22 = smov 64  }
   0x2   :  { %v57_v3 = vsel %vm56_vm0, %v48_v0, 0.0  ;;  %v63_v4 = vsel %vm56_vm0, %v50_v1, 0.0  ;;  %v60_v5 = vsel %vm56_vm0, %v49_v2, 0.0  ;;  %v3589_v21 = vld [vmem:[%s4535_s2 + $0x8] sm:$0xff]   ;;  %v3590_v22 = vld [vmem:[%s4535_s2] sm:$0xff]   ;;  %vm353_vm4 = vcmask 1043456  }
   0x3   :  { %58 = vadd.xlane.f32.xlu0 %v57_v3  ;;  %64 = vadd.xlane.f32.xlu1 %v63_v4  ;;  %v2985_v34 = vld [vmem:[%s4536_s10] ss:$0 sm:$0xff]  ;;  %s3737_s23 = smov 56   ;;  %s3738_s24 = smov 80   ;;  %vm1445_vm5 = vcmask 523264  }
   0x4   :  { %3272 = vmatprep.subr.bf16.mxu1 %v3589_v21  ;;  %v2986_v40 = vld [vmem:[%s4537_s11] ss:$0 sm:$0xff]  ;;  %s3739_s25 = smov 112   ;;  %s3740_s26 = smov 72  }
   0x5   :  { %3273 = vmatpush3.bf16.msra.mxu1 %v3589_v21  ;;  %v2987_v49 = vld [vmem:[%s4538_s3] ss:$0 sm:$0xff]  ;;  %s4553_s27 = smov 104   ;;  %s4551_s19 = smov 48  }
   0x6   :  { %3274 = vmatprep.subr.bf16.mxu1 %v3590_v22  ;;  %s4549_s28 = smov 40   ;;  %s4557_s18 = smov 40  }
   0x7   :  { %61 = vadd.xlane.f32.xlu0 %v60_v5  ;;  %v3920_v5 = vld [vmem:[%s4539_s1] sm:$0xff] }
   0x9   :  { %3275 = vmatpush3.bf16.msra.mxu1 %v3590_v22 }
   0xa   :  { %3280 = vmatprep.subr.mxu1 %v3731_v48 }
  0x8c   :  { %v59_v6 = vpop.xlane.xlu0 %58  ;;  %v65_v7 = vpop.xlane.xlu1 %64 }
  0x8d   :  { %v67_v8 = vmul.f32 0.03125, %v59_v6  ;;  %v69_v9 = vmul.f32 0.03125, %v65_v7 }
  0x8f   :  { %v70_v10 = vsub.f32 %v48_v0, %v67_v8  ;;  %v72_v11 = vsub.f32 %v50_v1, %v69_v9  ;;  %v3926_v9 = vld [vmem:[%s4539_s1 + $0x8] sm:$0xff] }
  0x90   :  { %v62_v12 = vpop.xlane.xlu0 %61 }
  0x91   :  { %v68_v13 = vmul.f32 0.03125, %v62_v12  ;;  %v73_v14 = vmul.f32 %v70_v10, %v70_v10  ;;  %v75_v15 = vmul.f32 %v72_v11, %v72_v11 }
  0x93   :  { %v71_v16 = vsub.f32 %v49_v2, %v68_v13  ;;  %v76_v17 = vsel %vm56_vm0, %v73_v14, 0.0  ;;  %v82_v18 = vsel %vm56_vm0, %v75_v15, 0.0  ;;  %v3933_v14 = vld [vmem:[%s4539_s1 + $0x10] sm:$0xff] }
  0x94   :  { %77 = vadd.xlane.f32.xlu1 %v76_v17 }
  0x95   :  { %v74_v19 = vmul.f32 %v71_v16, %v71_v16 }
  0x97   :  { %v79_v20 = vsel %vm56_vm0, %v74_v19, 0.0 }
  0x98   :  { %83 = vadd.xlane.f32.xlu1 %v82_v18  ;;  %80 = vadd.xlane.f32.xlu0 %v79_v20 }
 0x11d   :  { %v78_v23 = vpop.xlane.xlu1 %77 }
 0x11e   :  { %v85_v24 = vmul.f32 0.03125, %v78_v23 }
 0x120   :  { %v88_v25 = vadd.f32 1e-05, %v85_v24 }
 0x121   :  { %v84_v26 = vpop.xlane.xlu1 %83  ;;  %v81_v27 = vpop.xlane.xlu0 %80 }
 0x122   :  { %3605 = vrsqrt.f32 %v88_v25  ;;  %v87_v28 = vmul.f32 0.03125, %v84_v26  ;;  %v86_v29 = vmul.f32 0.03125, %v81_v27 }
 0x124   :  { %v90_v30 = vadd.f32 1e-05, %v87_v28  ;;  %v89_v31 = vadd.f32 1e-05, %v86_v29 }
 0x126   :  { %3607 = vrsqrt.f32 %v90_v30 }
 0x127   :  { %3609 = vrsqrt.f32 %v89_v31 }
 0x12f   :  { %v3606_v32 = vpop.eup %3605 }
 0x130   :  { %v94_v33 = vmul.f32 %v3606_v32, %v70_v10 }
 0x132   :  { %v103_v39 = vmul.f32 %v2985_v34, %v94_v33 }
 0x133   :  { %v3608_v35 = vpop.eup %3607 }
 0x134   :  { %v3610_v36 = vpop.eup %3609  ;;  %v96_v37 = vmul.f32 %v3608_v35, %v72_v11  ;;  %v112_v44 = vadd.f32 %v2986_v40, %v103_v39 }
 0x135   :  { %v95_v38 = vmul.f32 %v3610_v36, %v71_v16 }
 0x136   :  { %v105_v41 = vmul.f32 %v2985_v34, %v96_v37 }
 0x137   :  { %v104_v42 = vmul.f32 %v2985_v34, %v95_v38 }
 0x138   :  { %v114_v43 = vadd.f32 %v2986_v40, %v105_v41 }
 0x139   :  { %v113_v45 = vadd.f32 %v2986_v40, %v104_v42 }
 0x13a   :  { %v116_v46 = vpack.c.bf16 %v114_v43, %v114_v43 }
 0x13b   :  { %v115_v47 = vpack.c.bf16 %v113_v45, %v112_v44 }
 0x13d   :  { %3276 = vmatprep.mubr.msk.bf16.mxu1 %vm56_vm0, %v115_v47 }
 0x13e   :  { %3277 = vmatmul.mubr.msk.bf16.vlgmr.msra.gmra.mxu1 %vm56_vm0, %v116_v46 }
 0x13f   :  { %3286 = vmatprep.mubr.msk.f32.mxu1 %vm3732_vm1, %v3731_v48 }
 0x1fe   :  { %v3278_v50 = vpop.f32.mrf.mxu1 }
 0x1ff   :  { %v3852_v51 = vadd.f32 %v3278_v50, %v2987_v49 }
 0x200   :  { %v180_v52 = vpop.f32.mrf.mxu1 }
 0x201   :  { %204 = vrot.lane.b32.xlu0 %v3852_v51, %s3733_s29  ;;  %v3858_v55 = vadd.f32 %v2987_v49, %v180_v52  ;;  %v3874_v58 = vmul.f32 0.35355338, %v3852_v51  ;;  %v3946_v32 = vpack.c.bf16 %v3852_v51, %v3852_v51 }
 0x202   :  { %v3279_v53 = vpop.f32.mrf.mxu1 }
 0x203   :  { %v3867_v57 = vmul.f32 0.35355338, %v3858_v55 }
 0x204   :  { %v183_v54 = vpop.f32.mrf.mxu1 }
 0x205   :  { %v3860_v56 = vadd.f32 %v2987_v49, %v183_v54 }
 0x207   :  { %416 = vrot.lane.b32.xlu0 %v3860_v56, %s3734_s30  ;;  %202 = vrot.lane.b32.xlu1 %v3860_v56, %s3733_s29  ;;  %v3883_v59 = vmul.f32 0.35355338, %v3860_v56 }
 0x20b   :  { %200 = vrot.lane.b32.xlu1 %v3858_v55, %s3733_s29  ;;  %408 = vrot.lane.b32.xlu0 %v3867_v57, %s3735_s15 }
 0x20f   :  { %418 = vrot.lane.b32.xlu1 %v3852_v51, %s3734_s30  ;;  %412 = vrot.lane.b32.xlu0 %v3874_v58, %s3735_s15 }
 0x213   :  { %414 = vrot.lane.b32.xlu1 %v3858_v55, %s3734_s30 }
 0x217   :  { %410 = vrot.lane.b32.xlu1 %v3883_v59, %s3735_s15 }
 0x273   :  { %v205_v60 = vpop.permute.xlu0 %204 }
 0x274   :  { %3281 = vmatpush3.xpose.msk.msra.mxu1 %vm206_vm2, %v205_v60 }
 0x275   :  { %3282 = vmatprep.subr.mxu1 %v3731_v48 }
 0x279   :  { %v203_v61 = vpop.permute.xlu1 %202  ;;  %v417_v0 = vpop.permute.xlu0 %416 }
 0x27a   :  { %3283 = vmatpush3.xpose.msk.msra.mxu1 %vm206_vm2, %v203_v61 }
 0x27b   :  { %3284 = vmatprep.subr.mxu1 %v3731_v48 }
 0x27d   :  { %v201_v62 = vpop.permute.xlu1 %200  ;;  %v409_v2 = vpop.permute.xlu0 %408 }
 0x27e   :  { %3285 = vmatpush3.xpose.msk.msra.mxu1 %vm206_vm2, %v201_v62 }
 0x27f   :  { %3303 = vmatprep.subr.mxu1 %v3731_v48 }
 0x281   :  { %v419_v63 = vpop.permute.xlu1 %418  ;;  %3287 = vmatmul.mubr.msk.f32.vlgmr.msra.gmra.mxu1 %vm206_vm2, %v3867_v57  ;;  %v413_v4 = vpop.permute.xlu0 %412 }
 0x282   :  { %3304 = vmatpush3.xpose.msk.msra.mxu1 %vm206_vm2, %v419_v63  ;;  %3289 = vmatprep.mubr.msk.f32.mxu1 %vm3732_vm1, %v3731_v48 }
 0x283   :  { %3305 = vmatprep.subr.mxu1 %v3731_v48 }
 0x285   :  { %3290 = vmatmul.mubr.msk.f32.gmra.mxu1 %vm206_vm2, %v3883_v59  ;;  %v415_v1 = vpop.permute.xlu1 %414 }
 0x286   :  { %3306 = vmatpush3.xpose.msk.msra.mxu1 %vm206_vm2, %v417_v0  ;;  %3292 = vmatprep.mubr.msk.f32.mxu1 %vm3732_vm1, %v3731_v48 }
 0x287   :  { %3307 = vmatprep.subr.mxu1 %v3731_v48 }
 0x289   :  { %3293 = vmatmul.mubr.msk.f32.gmra.mxu1 %vm206_vm2, %v3874_v58  ;;  %v411_v3 = vpop.permute.xlu1 %410 }
 0x28a   :  { %3308 = vmatpush3.xpose.msk.msra.mxu1 %vm206_vm2, %v415_v1  ;;  %3309 = vmatprep.mubr.msk.f32.mxu1 %vm3732_vm1, %v3731_v48 }
 0x28d   :  { %3310 = vmatmul.mubr.msk.f32.vlgmr.msra.gmra.mxu1 %vm206_vm2, %v409_v2 }
 0x28e   :  { %3312 = vmatprep.mubr.msk.f32.mxu1 %vm3732_vm1, %v3731_v48 }
 0x291   :  { %3313 = vmatmul.mubr.msk.f32.gmra.mxu1 %vm206_vm2, %v411_v3 }
 0x292   :  { %3315 = vmatprep.mubr.msk.f32.mxu1 %vm3732_vm1, %v3731_v48 }
 0x295   :  { %3316 = vmatmul.mubr.msk.f32.gmra.mxu1 %vm206_vm2, %v413_v4 }
 0x341   :  { %v288_v6 = vpop.f32.mrf.mxu1 }
 0x342   :  { %v289_v7 = vadd.f32 %v288_v6, %v3920_v5 }
 0x343   :  { %v3288_v8 = vpop.f32.mrf.mxu1 }
 0x344   :  { %v303_v10 = vsel %vm302_vm3, %v289_v7, -inf }
 0x345   :  { %304 = vmax.xlane.f32.xlu1 %v303_v10  ;;  %v293_v11 = vpop.f32.mrf.mxu1  ;;  %v3968_v10 = vpack.c.bf16 %v3860_v56, %v3858_v55 }
 0x346   :  { %v294_v12 = vadd.f32 %v293_v11, %v3926_v9 }
 0x347   :  { %v3291_v13 = vpop.f32.mrf.mxu1 }
 0x348   :  { %v306_v15 = vsel %vm302_vm3, %v294_v12, -inf }
 0x349   :  { %307 = vmax.xlane.f32.xlu0 %v306_v15  ;;  %v298_v16 = vpop.f32.mrf.mxu1 }
 0x34a   :  { %v299_v17 = vadd.f32 %v298_v16, %v3933_v14 }
 0x34b   :  { %v3294_v18 = vpop.f32.mrf.mxu1 }
 0x34c   :  { %v309_v19 = vsel %vm302_vm3, %v299_v17, -inf }
 0x34d   :  { %310 = vmax.xlane.f32.xlu0 %v309_v19  ;;  %v498_v20 = vpop.f32.mrf.mxu1 }
 0x34e   :  { %v499_v21 = vadd.f32 %v498_v20, %v3920_v5 }
 0x34f   :  { %v3311_v22 = vpop.f32.mrf.mxu1 }
 0x350   :  { %v512_v23 = vsel %vm302_vm3, %v499_v21, -inf }
 0x351   :  { %513 = vmax.xlane.f32.xlu0 %v512_v23  ;;  %v503_v24 = vpop.f32.mrf.mxu1 }
 0x352   :  { %v504_v25 = vadd.f32 %v503_v24, %v3926_v9 }
 0x353   :  { %v3314_v26 = vpop.f32.mrf.mxu1 }
 0x354   :  { %v515_v27 = vsel %vm302_vm3, %v504_v25, -inf }
 0x355   :  { %516 = vmax.xlane.f32.xlu1 %v515_v27  ;;  %v508_v28 = vpop.f32.mrf.mxu1 }
 0x356   :  { %v509_v29 = vadd.f32 %v508_v28, %v3933_v14 }
 0x357   :  { %v3317_v30 = vpop.f32.mrf.mxu1 }
 0x358   :  { %v518_v31 = vsel %vm302_vm3, %v509_v29, -inf }
 0x359   :  { %519 = vmax.xlane.f32.xlu0 %v518_v31 }
 0x366   :  { %344 = vrot.lane.b32.xlu1 %v3946_v32, %s3736_s22 }
 0x3ce   :  { %v305_v33 = vpop.xlane.xlu1 %304 }
 0x3cf   :  { %v312_v34 = vsub.f32 %v289_v7, %v305_v33  ;;  %v407_v33 = vld [vmem:[%s4540_s4] sm:$0xf] }
 0x3d0   :  { %3563 = vmatprep.subr.msk.bf16.mxu1 %vm353_vm4, %v407_v33 }
 0x3d1   :  { %v315_v35 = vmul.f32 1.442695, %v312_v34  ;;  %v677_v34 = vsel %vm353_vm4, %v407_v33, 0 }
 0x3d2   :  { %v308_v36 = vpop.xlane.xlu0 %307  ;;  %3333 = vmatpush3.bf16.msra.mxu1 %v677_v34 }
 0x3d3   :  { %3611 = vpow2.f32 %v315_v35  ;;  %v313_v37 = vsub.f32 %v294_v12, %v308_v36  ;;  %v3008_v35 = vld [vmem:[%s4540_s4 + $0x4] sm:$0xf] }
 0x3d4   :  { %v620_v36 = vsel %vm353_vm4, %v3008_v35, 0 }
 0x3d5   :  { %v317_v38 = vmul.f32 1.442695, %v313_v37 }
 0x3d6   :  { %v311_v39 = vpop.xlane.xlu0 %310 }
 0x3d7   :  { %3613 = vpow2.f32 %v317_v38  ;;  %v314_v40 = vsub.f32 %v299_v17, %v311_v39 }
 0x3d9   :  { %v319_v41 = vmul.f32 1.442695, %v314_v40 }
 0x3da   :  { %v514_v42 = vpop.xlane.xlu0 %513 }
 0x3db   :  { %3615 = vpow2.f32 %v319_v41  ;;  %v521_v43 = vsub.f32 %v499_v21, %v514_v42 }
 0x3dd   :  { %v524_v44 = vmul.f32 1.442695, %v521_v43 }
 0x3de   :  { %v517_v45 = vpop.xlane.xlu1 %516 }
 0x3df   :  { %3617 = vpow2.f32 %v524_v44  ;;  %v522_v46 = vsub.f32 %v504_v25, %v517_v45 }
 0x3e0   :  { %v3612_v47 = vpop.eup %3611 }
 0x3e1   :  { %v526_v49 = vmul.f32 1.442695, %v522_v46  ;;  %v321_v50 = vsel %vm302_vm3, %v3612_v47, 0.0 }
 0x3e2   :  { %322 = vadd.xlane.f32.xlu1 %v321_v50  ;;  %v345_v52 = vpop.permute.xlu1 %344  ;;  %v520_v53 = vpop.xlane.xlu0 %519 }
 0x3e3   :  { %3619 = vpow2.f32 %v526_v49  ;;  %v523_v54 = vsub.f32 %v509_v29, %v520_v53  ;;  %3560 = vmatprep.subr.msk.bf16.mxu0 %vm353_vm4, %v345_v52  ;;  %v355_v60 = vsel %vm353_vm4, %v345_v52, 0 }
 0x3e4   :  { %v3614_v61 = vpop.eup %3613  ;;  %3296 = vmatpush3.bf16.msra.mxu0 %v355_v60 }
 0x3e5   :  { %v528_v62 = vmul.f32 1.442695, %v523_v54  ;;  %v324_v63 = vsel %vm302_vm3, %v3614_v61, 0.0 }
 0x3e6   :  { %325 = vadd.xlane.f32.xlu0 %v324_v63 }
 0x3e7   :  { %3621 = vpow2.f32 %v528_v62 }
 0x3e8   :  { %v3616_v0 = vpop.eup %3615 }
 0x3e9   :  { %v327_v1 = vsel %vm302_vm3, %v3616_v0, 0.0 }
 0x3ea   :  { %328 = vadd.xlane.f32.xlu1 %v327_v1 }
 0x3ec   :  { %v3955_v2 = vpop.eup %3617 }
 0x3ed   :  { %v530_v3 = vsel %vm302_vm3, %v3955_v2, 0.0 }
 0x3ee   :  { %531 = vadd.xlane.f32.xlu0 %v530_v3 }
 0x3f0   :  { %v3620_v4 = vpop.eup %3619 }
 0x3f1   :  { %v533_v6 = vsel %vm302_vm3, %v3620_v4, 0.0 }
 0x3f2   :  { %534 = vadd.xlane.f32.xlu1 %v533_v6 }
 0x3f4   :  { %v3960_v7 = vpop.eup %3621 }
 0x3f5   :  { %v536_v8 = vsel %vm302_vm3, %v3960_v7, 0.0 }
 0x3f6   :  { %537 = vadd.xlane.f32.xlu0 %v536_v8 }
 0x403   :  { %549 = vrot.lane.b32.xlu1 %v3946_v32, %s3737_s23 }
 0x407   :  { %547 = vrot.lane.b32.xlu1 %v3968_v10, %s3737_s23 }
 0x40b   :  { %737 = vrot.lane.b32.xlu1 %v3852_v51, %s3738_s24 }
 0x40c   :  { %342 = vrot.lane.b32.xlu0 %v3968_v10, %s3736_s22 }
 0x40f   :  { %733 = vrot.lane.b32.xlu1 %v3858_v55, %s3738_s24 }
 0x410   :  { %735 = vrot.lane.b32.xlu0 %v3860_v56, %s3738_s24 }
 0x413   :  { %729 = vrot.lane.b32.xlu1 %v3883_v59, %s3739_s25 }
 0x414   :  { %727 = vrot.lane.b32.xlu0 %v3867_v57, %s3739_s25 }
 0x417   :  { %1002 = vrot.lane.b32.xlu1 %v3852_v51, %s3740_s26 }
 0x418   :  { %731 = vrot.lane.b32.xlu0 %v3874_v58, %s3739_s25 }
 0x41b   :  { %998 = vrot.lane.b32.xlu1 %v3858_v55, %s3740_s26 }
 0x41c   :  { %1000 = vrot.lane.b32.xlu0 %v3860_v56, %s3740_s26 }
 0x41f   :  { %994 = vrot.lane.b32.xlu1 %v3883_v59, %s4553_s27 }
 0x420   :  { %992 = vrot.lane.b32.xlu0 %v3867_v57, %s4553_s27 }
 0x424   :  { %996 = vrot.lane.b32.xlu0 %v3874_v58, %s4553_s27 }
 0x46b   :  { %v323_v51 = vpop.xlane.xlu1 %322 }
 0x46c   :  { %3623 = vrcp.f32 %v323_v51 }
 0x46f   :  { %v326_v11 = vpop.xlane.xlu0 %325 }
 0x470   :  { %3625 = vrcp.f32 %v326_v11 }
 0x473   :  { %v329_v12 = vpop.xlane.xlu1 %328 }
 0x474   :  { %3627 = vrcp.f32 %v329_v12 }
 0x477   :  { %v532_v55 = vpop.xlane.xlu0 %531 }
 0x478   :  { %3629 = vrcp.f32 %v532_v55 }
 0x479   :  { %v3624_v13 = vpop.eup %3623 }
 0x47a   :  { %v333_v16 = vmul.f32 %v3624_v13, %v3612_v47 }
 0x47b   :  { %v535_v56 = vpop.xlane.xlu1 %534 }
 0x47c   :  { %3631 = vrcp.f32 %v535_v56 }
 0x47d   :  { %v3626_v15 = vpop.eup %3625 }
 0x47e   :  { %v334_v59 = vmul.f32 %v3626_v15, %v3614_v61 }
 0x47f   :  { %v538_v17 = vpop.xlane.xlu0 %537  ;;  %v550_v19 = vpop.permute.xlu1 %549 }
 0x480   :  { %3633 = vrcp.f32 %v538_v17  ;;  %v336_v57 = vpack.c.bf16 %v334_v59, %v333_v16  ;;  %v559_v23 = vsel %vm353_vm4, %v550_v19, 0 }
 0x481   :  { %v3628_v18 = vpop.eup %3627 }
 0x482   :  { %3299 = vmatprep.mubr.msk.bf16.mxu0 %vm302_vm3, %v336_v57  ;;  %v335_v58 = vmul.f32 %v3628_v18, %v3616_v0 }
 0x483   :  { %v343_v20 = vpop.permute.xlu0 %342  ;;  %v548_v25 = vpop.permute.xlu1 %547 }
 0x484   :  { %3297 = vmatprep.subr.bf16.mxu0 %v343_v20  ;;  %v337_v21 = vpack.c.bf16 %v335_v58, %v335_v58 }
 0x485   :  { %3298 = vmatpush3.bf16.msra.mxu0 %v343_v20  ;;  %v3630_v22 = vpop.eup %3629 }
 0x486   :  { %3561 = vmatprep.subr.msk.bf16.mxu0 %vm353_vm4, %v550_v19  ;;  %v542_v26 = vmul.f32 %v3630_v22, %v3955_v2 }
 0x487   :  { %v738_v45 = vpop.permute.xlu1 %737  ;;  %v736_v50 = vpop.permute.xlu0 %735 }
 0x488   :  { %3300 = vmatmul.mubr.msk.bf16.vlgmr.msra.gmra.mxu0 %vm302_vm3, %v337_v21 }
 0x489   :  { %v3632_v24 = vpop.eup %3631  ;;  %3319 = vmatpush3.bf16.msra.mxu0 %v559_v23 }
 0x48a   :  { %3320 = vmatprep.subr.bf16.mxu0 %v548_v25  ;;  %v543_v27 = vmul.f32 %v3632_v24, %v3620_v4 }
 0x48b   :  { %v734_v53 = vpop.permute.xlu1 %733  ;;  %v728_v54 = vpop.permute.xlu0 %727 }
 0x48c   :  { %v545_v28 = vpack.c.bf16 %v543_v27, %v542_v26 }
 0x48d   :  { %v3634_v29 = vpop.eup %3633  ;;  %3321 = vmatpush3.bf16.msra.mxu0 %v548_v25 }
 0x48e   :  { %3322 = vmatprep.mubr.msk.bf16.mxu0 %vm302_vm3, %v545_v28  ;;  %v544_v30 = vmul.f32 %v3634_v29, %v3960_v7  ;;  %3562 = vmatprep.subr.msk.bf16.mxu0 %vm353_vm4, %v3008_v35 }
 0x48f   :  { %v730_v60 = vpop.permute.xlu1 %729  ;;  %v732_v61 = vpop.permute.xlu0 %731 }
 0x490   :  { %v546_v31 = vpack.c.bf16 %v544_v30, %v544_v30 }
 0x492   :  { %3323 = vmatmul.mubr.msk.bf16.vlgmr.msra.gmra.mxu0 %vm302_vm3, %v546_v31 }
 0x493   :  { %3327 = vmatpush3.bf16.msra.mxu0 %v620_v36  ;;  %v1003_v62 = vpop.permute.xlu1 %1002  ;;  %v1001_v63 = vpop.permute.xlu0 %1000 }
 0x494   :  { %3338 = vmatprep.subr.mxu0 %v3731_v48 }
 0x497   :  { %v999_v0 = vpop.permute.xlu1 %998  ;;  %v993_v1 = vpop.permute.xlu0 %992 }
 0x49b   :  { %v995_v2 = vpop.permute.xlu1 %994  ;;  %v997_v3 = vpop.permute.xlu0 %996 }
 0x548   :  { %v3301_v37 = vpop.f32.mrf.mxu0 }
 0x549   :  { %v406_v42 = vpack.c.bf16 %v3301_v37, %v3301_v37 }
 0x54a   :  { %v391_v38 = vpop.f32.mrf.mxu0 }
 0x54c   :  { %v3302_v39 = vpop.f32.mrf.mxu0 }
 0x54e   :  { %v394_v40 = vpop.f32.mrf.mxu0 }
 0x54f   :  { %v405_v41 = vpack.c.bf16 %v394_v40, %v391_v38 }
 0x551   :  { %3334 = vmatprep.mubr.msk.bf16.mxu1 %vm206_vm2, %v405_v41 }
 0x552   :  { %v3324_v43 = vpop.f32.mrf.mxu0  ;;  %3335 = vmatmul.mubr.msk.bf16.vlgmr.msra.gmra.mxu1 %vm206_vm2, %v406_v42 }
 0x553   :  { %v610_v52 = vpack.c.bf16 %v3324_v43, %v3324_v43 }
 0x554   :  { %v595_v44 = vpop.f32.mrf.mxu0 }
 0x556   :  { %v3325_v46 = vpop.f32.mrf.mxu0 }
 0x558   :  { %v598_v47 = vpop.f32.mrf.mxu0 }
 0x559   :  { %v609_v49 = vpack.c.bf16 %v598_v47, %v595_v44 }
 0x55b   :  { %3328 = vmatprep.mubr.msk.bf16.mxu0 %vm206_vm2, %v609_v49 }
 0x55c   :  { %3329 = vmatmul.mubr.msk.bf16.vlgmr.msra.gmra.mxu0 %vm206_vm2, %v610_v52 }
 0x55d   :  { %3339 = vmatpush3.xpose.msk.msra.mxu0 %vm206_vm2, %v738_v45  ;;  %3344 = vmatprep.mubr.msk.f32.mxu0 %vm3732_vm1, %v3731_v48 }
 0x55e   :  { %3340 = vmatprep.subr.mxu0 %v3731_v48 }
 0x561   :  { %3341 = vmatpush3.xpose.msk.msra.mxu0 %vm206_vm2, %v736_v50 }
 0x562   :  { %3342 = vmatprep.subr.mxu0 %v3731_v48 }
 0x565   :  { %3343 = vmatpush3.xpose.msk.msra.mxu0 %vm206_vm2, %v734_v53 }
 0x566   :  { %3367 = vmatprep.subr.mxu0 %v3731_v48 }
 0x568   :  { %3345 = vmatmul.mubr.msk.f32.vlgmr.msra.gmra.mxu0 %vm206_vm2, %v728_v54 }
 0x569   :  { %3368 = vmatpush3.xpose.msk.msra.mxu0 %vm206_vm2, %v1003_v62  ;;  %3347 = vmatprep.mubr.msk.f32.mxu0 %vm3732_vm1, %v3731_v48 }
 0x56a   :  { %3369 = vmatprep.subr.mxu0 %v3731_v48 }
 0x56c   :  { %3348 = vmatmul.mubr.msk.f32.gmra.mxu0 %vm206_vm2, %v730_v60 }
 0x56d   :  { %3370 = vmatpush3.xpose.msk.msra.mxu0 %vm206_vm2, %v1001_v63  ;;  %3350 = vmatprep.mubr.msk.f32.mxu0 %vm3732_vm1, %v3731_v48 }
 0x56e   :  { %3371 = vmatprep.subr.mxu0 %v3731_v48 }
 0x570   :  { %3351 = vmatmul.mubr.msk.f32.gmra.mxu0 %vm206_vm2, %v732_v61 }
 0x571   :  { %3372 = vmatpush3.xpose.msk.msra.mxu0 %vm206_vm2, %v999_v0  ;;  %3373 = vmatprep.mubr.msk.f32.mxu0 %vm3732_vm1, %v3731_v48 }
 0x574   :  { %3374 = vmatmul.mubr.msk.f32.vlgmr.msra.gmra.mxu0 %vm206_vm2, %v993_v1 }
 0x575   :  { %3376 = vmatprep.mubr.msk.f32.mxu0 %vm3732_vm1, %v3731_v48 }
 0x578   :  { %3377 = vmatmul.mubr.msk.f32.gmra.mxu0 %vm206_vm2, %v995_v2 }
 0x579   :  { %3379 = vmatprep.mubr.msk.f32.mxu0 %vm3732_vm1, %v3731_v48 }
 0x57c   :  { %3380 = vmatmul.mubr.msk.f32.gmra.mxu0 %vm206_vm2, %v997_v3 }
 0x612   :  { %v3336_v4 = vpop.f32.mrf.mxu1 }
 0x614   :  { %v713_v6 = vpop.f32.mrf.mxu1 }
 0x616   :  { %v3337_v7 = vpop.f32.mrf.mxu1 }
 0x61c   :  { %v3330_v8 = vpop.f32.mrf.mxu0 }
 0x61d   :  { %v4050_v51 = vadd.f32 %v3336_v4, %v3330_v8 }
 0x61e   :  { %v656_v11 = vpop.f32.mrf.mxu0 }
 0x61f   :  { %v4052_v12 = vadd.f32 %v713_v6, %v656_v11 }
 0x620   :  { %v3331_v55 = vpop.f32.mrf.mxu0 }
 0x622   :  { %v4054_v13 = vpop.f32.mrf.mxu0 }
 0x628   :  { %v817_v56 = vpop.f32.mrf.mxu0 }
 0x629   :  { %v818_v15 = vadd.f32 %v817_v56, %v3920_v5 }
 0x62a   :  { %v3346_v16 = vpop.f32.mrf.mxu0 }
 0x62b   :  { %v831_v59 = vsel %vm302_vm3, %v818_v15, -inf }
 0x62c   :  { %832 = vmax.xlane.f32.xlu1 %v831_v59  ;;  %v822_v17 = vpop.f32.mrf.mxu0 }
 0x62d   :  { %v823_v57 = vadd.f32 %v822_v17, %v3926_v9 }
 0x62e   :  { %v3349_v18 = vpop.f32.mrf.mxu0 }
 0x62f   :  { %v834_v58 = vsel %vm302_vm3, %v823_v57, -inf }
 0x630   :  { %835 = vmax.xlane.f32.xlu0 %v834_v58  ;;  %v827_v19 = vpop.f32.mrf.mxu0 }
 0x631   :  { %v828_v20 = vadd.f32 %v827_v19, %v3933_v14 }
 0x632   :  { %v3352_v21 = vpop.f32.mrf.mxu0 }
 0x633   :  { %v837_v22 = vsel %vm302_vm3, %v828_v20, -inf  ;;  %v3021_v21 = vld [vmem:[%s4540_s4 + $0x8] sm:$0xf] }
 0x634   :  { %838 = vmax.xlane.f32.xlu0 %v837_v22  ;;  %v1082_v23 = vpop.f32.mrf.mxu0  ;;  %v939_v22 = vsel %vm353_vm4, %v3021_v21, 0 }
 0x635   :  { %v1083_v45 = vadd.f32 %v1082_v23, %v3920_v5 }
 0x636   :  { %v3375_v24 = vpop.f32.mrf.mxu0 }
 0x637   :  { %v1096_v49 = vsel %vm302_vm3, %v1083_v45, -inf  ;;  %v716_v24 = vpop.f32.mrf.mxu1 }
 0x638   :  { %v1087_v25 = vpop.f32.mrf.mxu0 }
 0x639   :  { %v1088_v46 = vadd.f32 %v1087_v25, %v3926_v9 }
 0x63a   :  { %v3378_v26 = vpop.f32.mrf.mxu0 }
 0x63b   :  { %v1099_v52 = vsel %vm302_vm3, %v1088_v46, -inf }
 0x63c   :  { %v1092_v27 = vpop.f32.mrf.mxu0 }
 0x63d   :  { %v1093_v47 = vadd.f32 %v1092_v27, %v3933_v14 }
 0x63e   :  { %v3381_v28 = vpop.f32.mrf.mxu0 }
 0x63f   :  { %v1102_v50 = vsel %vm302_vm3, %v1093_v47, -inf }
 0x6b5   :  { %v833_v29 = vpop.xlane.xlu1 %832 }
 0x6b6   :  { %v840_v30 = vsub.f32 %v818_v15, %v833_v29 }
 0x6b8   :  { %v843_v31 = vmul.f32 1.442695, %v840_v30 }
 0x6b9   :  { %v836_v33 = vpop.xlane.xlu0 %835 }
 0x6ba   :  { %3635 = vpow2.f32 %v843_v31  ;;  %v841_v34 = vsub.f32 %v823_v57, %v836_v33 }
 0x6bc   :  { %v845_v35 = vmul.f32 1.442695, %v841_v34 }
 0x6bd   :  { %v839_v36 = vpop.xlane.xlu0 %838 }
 0x6be   :  { %3637 = vpow2.f32 %v845_v35  ;;  %v842_v37 = vsub.f32 %v828_v20, %v839_v36 }
 0x6c0   :  { %v847_v38 = vmul.f32 1.442695, %v842_v37 }
 0x6c2   :  { %3639 = vpow2.f32 %v847_v38 }
 0x6c7   :  { %v3636_v39 = vpop.eup %3635 }
 0x6c8   :  { %v849_v40 = vsel %vm302_vm3, %v3636_v39, 0.0 }
 0x6c9   :  { %850 = vadd.xlane.f32.xlu0 %v849_v40 }
 0x6cb   :  { %v3638_v41 = vpop.eup %3637 }
 0x6cc   :  { %v852_v42 = vsel %vm302_vm3, %v3638_v41, 0.0 }
 0x6cd   :  { %853 = vadd.xlane.f32.xlu1 %v852_v42 }
 0x6cf   :  { %v3640_v43 = vpop.eup %3639 }
 0x6d0   :  { %v855_v44 = vsel %vm302_vm3, %v3640_v43, 0.0 }
 0x6d1   :  { %856 = vadd.xlane.f32.xlu0 %v855_v44 }
 0x6de   :  { %868 = vrot.lane.b32.xlu1 %v3946_v32, %s4551_s19 }
 0x6e7   :  { %866 = vrot.lane.b32.xlu0 %v3968_v10, %s4551_s19 }
 0x702   :  { %1097 = vmax.xlane.f32.xlu1 %v1096_v49 }
 0x706   :  { %1103 = vmax.xlane.f32.xlu1 %v1102_v50  ;;  %1100 = vmax.xlane.f32.xlu0 %v1099_v52  ;;  %v717_v52 = vadd.f32 %v716_v24, %v4054_v13  ;;  %v3725_v13 = vld [vmem:[%s4534_s0 + $0x10] sm:$0xff] }
 0x752   :  { %v851_v53 = vpop.xlane.xlu0 %850 }
 0x753   :  { %3641 = vrcp.f32 %v851_v53 }
 0x756   :  { %v854_v54 = vpop.xlane.xlu1 %853 }
 0x757   :  { %3643 = vrcp.f32 %v854_v54 }
 0x75a   :  { %v869_v60 = vpop.permute.xlu1 %868  ;;  %v857_v61 = vpop.xlane.xlu0 %856 }
 0x75b   :  { %v878_v5 = vsel %vm353_vm4, %v869_v60, 0  ;;  %3645 = vrcp.f32 %v857_v61  ;;  %3564 = vmatprep.subr.msk.bf16.mxu1 %vm353_vm4, %v869_v60 }
 0x75c   :  { %3354 = vmatpush3.bf16.msra.mxu1 %v878_v5 }
 0x75e   :  { %v867_v9 = vpop.permute.xlu0 %866 }
 0x75f   :  { %3355 = vmatprep.subr.bf16.mxu1 %v867_v9 }
 0x760   :  { %3356 = vmatpush3.bf16.msra.mxu1 %v867_v9  ;;  %v3642_v14 = vpop.eup %3641 }
 0x761   :  { %v861_v63 = vmul.f32 %v3642_v14, %v3636_v39  ;;  %3565 = vmatprep.subr.msk.bf16.mxu1 %vm353_vm4, %v3021_v21 }
 0x764   :  { %v3644_v62 = vpop.eup %3643 }
 0x765   :  { %v862_v0 = vmul.f32 %v3644_v62, %v3638_v41 }
 0x767   :  { %v864_v1 = vpack.c.bf16 %v862_v0, %v861_v63 }
 0x768   :  { %v3646_v2 = vpop.eup %3645 }
 0x769   :  { %3357 = vmatprep.mubr.msk.bf16.mxu1 %vm302_vm3, %v864_v1  ;;  %v863_v3 = vmul.f32 %v3646_v2, %v3640_v43  ;;  %v3032_v43 = vld [vmem:[%s4540_s4 + $0xc] sm:$0xf] }
 0x76a   :  { %3567 = vmatprep.subr.msk.bf16.mxu0 %vm353_vm4, %v3032_v43  ;;  %v1204_v44 = vsel %vm353_vm4, %v3032_v43, 0 }
 0x76b   :  { %v865_v4 = vpack.c.bf16 %v863_v3, %v863_v3  ;;  %3391 = vmatpush3.bf16.msra.mxu0 %v1204_v44  ;;  %v3726_v3 = vld [vmem:[%s4534_s0] sm:$0xff] }
 0x76d   :  { %3358 = vmatmul.mubr.msk.bf16.vlgmr.msra.gmra.mxu1 %vm302_vm3, %v865_v4 }
 0x76e   :  { %3362 = vmatpush3.bf16.msra.mxu1 %v939_v22 }
 0x78b   :  { %v1098_v6 = vpop.xlane.xlu1 %1097 }
 0x78c   :  { %v1105_v7 = vsub.f32 %v1083_v45, %v1098_v6  ;;  %v3035_v6 = vld [vmem:[%s4541_s5] ss:$0 sm:$0xff] }
 0x78e   :  { %v1108_v8 = vmul.f32 1.442695, %v1105_v7 }
 0x78f   :  { %v1104_v11 = vpop.xlane.xlu1 %1103  ;;  %v1101_v55 = vpop.xlane.xlu0 %1100 }
 0x790   :  { %3647 = vpow2.f32 %v1108_v8  ;;  %v1107_v56 = vsub.f32 %v1093_v47, %v1104_v11  ;;  %v1106_v15 = vsub.f32 %v1088_v46, %v1101_v55 }
 0x792   :  { %v1112_v16 = vmul.f32 1.442695, %v1107_v56  ;;  %v1110_v59 = vmul.f32 1.442695, %v1106_v15  ;;  %v3727_v56 = vld [vmem:[%s4534_s0 + $0x8] sm:$0xff] }
 0x794   :  { %3649 = vpow2.f32 %v1112_v16 }
 0x795   :  { %3651 = vpow2.f32 %v1110_v59 }
 0x79d   :  { %v3648_v17 = vpop.eup %3647 }
 0x79e   :  { %v1114_v57 = vsel %vm302_vm3, %v3648_v17, 0.0 }
 0x79f   :  { %1115 = vadd.xlane.f32.xlu0 %v1114_v57 }
 0x7a1   :  { %v3650_v18 = vpop.eup %3649 }
 0x7a2   :  { %v3652_v58 = vpop.eup %3651  ;;  %v1120_v19 = vsel %vm302_vm3, %v3650_v18, 0.0 }
 0x7a3   :  { %1121 = vadd.xlane.f32.xlu0 %v1120_v19  ;;  %v1117_v20 = vsel %vm302_vm3, %v3652_v58, 0.0 }
 0x7a4   :  { %1118 = vadd.xlane.f32.xlu1 %v1117_v20 }
 0x7b5   :  { %1133 = vrot.lane.b32.xlu1 %v3946_v32, %s4549_s28 }
 0x7b9   :  { %1131 = vrot.lane.b32.xlu0 %v3968_v10, %s4549_s28 }
 0x828   :  { %v1116_v23 = vpop.xlane.xlu0 %1115 }
 0x829   :  { %3653 = vrcp.f32 %v1116_v23 }
 0x82c   :  { %v1122_v25 = vpop.xlane.xlu0 %1121 }
 0x82d   :  { %v1119_v26 = vpop.xlane.xlu1 %1118  ;;  %3655 = vrcp.f32 %v1122_v25  ;;  %v3359_v27 = vpop.f32.mrf.mxu1 }
 0x82e   :  { %3657 = vrcp.f32 %v1119_v26  ;;  %v929_v34 = vpack.c.bf16 %v3359_v27, %v3359_v27 }
 0x82f   :  { %v914_v28 = vpop.f32.mrf.mxu1 }
 0x830   :  { %v1132_v10 = vpop.permute.xlu0 %1131 }
 0x831   :  { %v1134_v29 = vpop.permute.xlu1 %1133  ;;  %v3360_v30 = vpop.f32.mrf.mxu1 }
 0x832   :  { %3566 = vmatprep.subr.msk.bf16.mxu1 %vm353_vm4, %v1134_v29  ;;  %v1143_v32 = vsel %vm353_vm4, %v1134_v29, 0 }
 0x833   :  { %v917_v31 = vpop.f32.mrf.mxu1 }
 0x834   :  { %v928_v33 = vpack.c.bf16 %v917_v31, %v914_v28 }
 0x836   :  { %3363 = vmatprep.mubr.msk.bf16.mxu1 %vm206_vm2, %v928_v33  ;;  %v3654_v35 = vpop.eup %3653  ;;  %v3591_v33 = vld [vmem:[%s4542_s6 + $0x8] sm:$0xff]  }
 0x837   :  { %3364 = vmatmul.mubr.msk.bf16.vlgmr.msra.gmra.mxu1 %vm206_vm2, %v929_v34  ;;  %v1126_v39 = vmul.f32 %v3654_v35, %v3648_v17  ;;  %v3592_v34 = vld [vmem:[%s4542_s6] sm:$0xff]  }
 0x838   :  { %3383 = vmatpush3.bf16.msra.mxu1 %v1143_v32  ;;  %v3593_v32 = vld [vmem:[%s4543_s8 + $0x18] sm:$0xff]  }
 0x839   :  { %3384 = vmatprep.subr.bf16.mxu1 %v1132_v10  ;;  %3404 = vmatprep.subr.bf16.mxu0 %v3593_v32 }
 0x83a   :  { %v3656_v36 = vpop.eup %3655 }
 0x83b   :  { %v3658_v37 = vpop.eup %3657  ;;  %v1128_v38 = vmul.f32 %v3656_v36, %v3650_v18 }
 0x83c   :  { %3385 = vmatpush3.bf16.msra.mxu1 %v1132_v10  ;;  %v1127_v40 = vmul.f32 %v3658_v37, %v3652_v58 }
 0x83d   :  { %v1130_v41 = vpack.c.bf16 %v1128_v38, %v1128_v38  ;;  %3396 = vmatprep.subr.bf16.mxu1 %v3591_v33 }
 0x83e   :  { %v1129_v42 = vpack.c.bf16 %v1127_v40, %v1126_v39 }
 0x840   :  { %3386 = vmatprep.mubr.msk.bf16.mxu1 %vm302_vm3, %v1129_v42 }
 0x841   :  { %3387 = vmatmul.mubr.msk.bf16.vlgmr.msra.gmra.mxu1 %vm302_vm3, %v1130_v41 }
 0x842   :  { %3397 = vmatpush3.bf16.msra.mxu1 %v3591_v33 }
 0x843   :  { %3398 = vmatprep.subr.bf16.mxu1 %v3592_v34 }
 0x846   :  { %3399 = vmatpush3.bf16.msra.mxu1 %v3592_v34 }
 0x8f7   :  { %v3365_v45 = vpop.f32.mrf.mxu1 }
 0x8f8   :  { %v991_v46 = vadd.f32 %v3365_v45, %v4050_v51  ;;  %v3036_v45 = vld [vmem:[%s4544_s12] ss:$0 sm:$0xff] }
 0x8f9   :  { %v975_v47 = vpop.f32.mrf.mxu1 }
 0x8fa   :  { %v989_v49 = vadd.f32 %v975_v47, %v4052_v12 }
 0x8fb   :  { %v3366_v50 = vpop.f32.mrf.mxu1 }
 0x8fd   :  { %v978_v53 = vpop.f32.mrf.mxu1 }
 0x8fe   :  { %v990_v54 = vadd.f32 %v978_v53, %v717_v52  ;;  %v3037_v53 = vld [vmem:[%s4545_s13] ss:$0 sm:$0xff] }
 0x901   :  { %v3388_v60 = vpop.f32.mrf.mxu1 }
 0x902   :  { %v1194_v62 = vpack.c.bf16 %v3388_v60, %v3388_v60 }
 0x903   :  { %v1179_v61 = vpop.f32.mrf.mxu1 }
 0x905   :  { %v3389_v5 = vpop.f32.mrf.mxu1 }
 0x907   :  { %v1182_v9 = vpop.f32.mrf.mxu1 }
 0x908   :  { %v1193_v14 = vpack.c.bf16 %v1182_v9, %v1179_v61 }
 0x90a   :  { %3392 = vmatprep.mubr.msk.bf16.mxu0 %vm206_vm2, %v1193_v14 }
 0x90b   :  { %3393 = vmatmul.mubr.msk.bf16.vlgmr.msra.gmra.mxu0 %vm206_vm2, %v1194_v62 }
 0x90c   :  { %3405 = vmatpush3.bf16.msra.mxu0 %v3593_v32 }
 0x9cb   :  { %v3394_v63 = vpop.f32.mrf.mxu0 }
 0x9cc   :  { %v1256_v51 = vadd.f32 %v3394_v63, %v991_v46  ;;  %v3594_v63 = vld [vmem:[%s4543_s8 + $0x10] sm:$0xff]  }
 0x9cd   :  { %v1240_v0 = vpop.f32.mrf.mxu0  ;;  %3406 = vmatprep.subr.bf16.mxu0 %v3594_v63 }
 0x9ce   :  { %v1254_v1 = vadd.f32 %v1240_v0, %v989_v49  ;;  %v1259_v2 = vadd.f32 %v3725_v13, %v1256_v51  ;;  %3407 = vmatpush3.bf16.msra.mxu0 %v3594_v63  ;;  %v3595_v51 = vld [vmem:[%s4543_s8 + $0x8] sm:$0xff]   ;;  %v3596_v0 = vld [vmem:[%s4543_s8] sm:$0xff]  }
 0x9cf   :  { %v3395_v12 = vpop.f32.mrf.mxu0  ;;  %3408 = vmatprep.subr.bf16.mxu0 %v3595_v51 }
 0x9d0   :  { %v1257_v4 = vadd.f32 %v3726_v3, %v1254_v1  ;;  %v4118_v55 = vadd.f32 %v3035_v6, %v1259_v2  ;;  %v3038_v12 = vld [vmem:[%s4546_s7] ss:$0 sm:$0xff] }
 0x9d1   :  { %v1243_v7 = vpop.f32.mrf.mxu0 }
 0x9d2   :  { %v4116_v8 = vadd.f32 %v3035_v6, %v1257_v4  ;;  %v1255_v11 = vadd.f32 %v1243_v7, %v990_v54  ;;  %v1278_v57 = vsel %vm56_vm0, %v4118_v55, 0.0  ;;  %3409 = vmatpush3.bf16.msra.mxu0 %v3595_v51 }
 0x9d3   :  { %3410 = vmatprep.subr.bf16.mxu0 %v3596_v0 }
 0x9d4   :  { %v1258_v15 = vadd.f32 %v3727_v56, %v1255_v11  ;;  %v1272_v16 = vsel %vm56_vm0, %v4116_v8, 0.0 }
 0x9d5   :  { %1273 = vadd.xlane.f32.xlu1 %v1272_v16 }
 0x9d6   :  { %v4125_v59 = vadd.f32 %v3035_v6, %v1258_v15  ;;  %3411 = vmatpush3.bf16.msra.mxu0 %v3596_v0 }
 0x9d8   :  { %v1275_v17 = vsel %vm56_vm0, %v4125_v59, 0.0 }
 0x9d9   :  { %1276 = vadd.xlane.f32.xlu0 %v1275_v17  ;;  %1279 = vadd.xlane.f32.xlu1 %v1278_v57 }
 0xa5e   :  { %v1274_v18 = vpop.xlane.xlu1 %1273 }
 0xa5f   :  { %v1281_v58 = vmul.f32 0.03125, %v1274_v18 }
 0xa61   :  { %v1284_v19 = vsub.f32 %v4116_v8, %v1281_v58 }
 0xa62   :  { %v1277_v20 = vpop.xlane.xlu0 %1276  ;;  %v1280_v21 = vpop.xlane.xlu1 %1279 }
 0xa63   :  { %v1282_v22 = vmul.f32 0.03125, %v1277_v20  ;;  %v1283_v23 = vmul.f32 0.03125, %v1280_v21  ;;  %v1287_v24 = vmul.f32 %v1284_v19, %v1284_v19  ;;  %v3049_v20 = vld [vmem:[%s4547_s9] ss:$0 sm:$0xff] }
 0xa65   :  { %v1285_v25 = vsub.f32 %v4125_v59, %v1282_v22  ;;  %v1286_v26 = vsub.f32 %v4118_v55, %v1283_v23  ;;  %v1290_v27 = vsel %vm56_vm0, %v1287_v24, 0.0 }
 0xa66   :  { %1291 = vadd.xlane.f32.xlu0 %v1290_v27 }
 0xa67   :  { %v1288_v28 = vmul.f32 %v1285_v25, %v1285_v25  ;;  %v1289_v29 = vmul.f32 %v1286_v26, %v1286_v26 }
 0xa69   :  { %v1293_v30 = vsel %vm56_vm0, %v1288_v28, 0.0  ;;  %v1296_v31 = vsel %vm56_vm0, %v1289_v29, 0.0 }
 0xa6a   :  { %1294 = vadd.xlane.f32.xlu1 %v1293_v30  ;;  %1297 = vadd.xlane.f32.xlu0 %v1296_v31 }
 0xaef   :  { %v1292_v10 = vpop.xlane.xlu0 %1291 }
 0xaf0   :  { %v1299_v35 = vmul.f32 0.03125, %v1292_v10 }
 0xaf2   :  { %v1302_v36 = vadd.f32 1e-05, %v1299_v35 }
 0xaf3   :  { %v1298_v37 = vpop.xlane.xlu0 %1297  ;;  %v1295_v38 = vpop.xlane.xlu1 %1294 }
 0xaf4   :  { %3659 = vrsqrt.f32 %v1302_v36  ;;  %v1301_v39 = vmul.f32 0.03125, %v1298_v37  ;;  %v1300_v40 = vmul.f32 0.03125, %v1295_v38 }
 0xaf6   :  { %v1304_v41 = vadd.f32 1e-05, %v1301_v39  ;;  %v1303_v42 = vadd.f32 1e-05, %v1300_v40 }
 0xaf8   :  { %3661 = vrsqrt.f32 %v1304_v41  ;;  %v3597_v41 = vld [vmem:[%s4535_s2 + $0x18] sm:$0xff]  }
 0xaf9   :  { %3663 = vrsqrt.f32 %v1303_v42  ;;  %v3598_v42 = vld [vmem:[%s4535_s2 + $0x10] sm:$0xff]   ;;  %3416 = vmatprep.subr.bf16.mxu1 %v3597_v41 }
 0xb01   :  { %v3660_v43 = vpop.eup %3659 }
 0xb02   :  { %v1308_v44 = vmul.f32 %v3660_v43, %v1284_v19 }
 0xb04   :  { %v1317_v52 = vmul.f32 %v3036_v45, %v1308_v44 }
 0xb05   :  { %v3662_v46 = vpop.eup %3661 }
 0xb06   :  { %v3664_v47 = vpop.eup %3663  ;;  %v1310_v49 = vmul.f32 %v3662_v46, %v1286_v26  ;;  %v1326_v5 = vadd.f32 %v3037_v53, %v1317_v52 }
 0xb07   :  { %v1309_v50 = vmul.f32 %v3664_v47, %v1285_v25 }
 0xb08   :  { %v1319_v54 = vmul.f32 %v3036_v45, %v1310_v49 }
 0xb09   :  { %v1318_v60 = vmul.f32 %v3036_v45, %v1309_v50 }
 0xb0a   :  { %v1328_v61 = vadd.f32 %v3037_v53, %v1319_v54 }
 0xb0b   :  { %v1327_v9 = vadd.f32 %v3037_v53, %v1318_v60  ;;  %v3052_v60 = vld [vmem:[%s4536_s10 + $0x1] ss:$0 sm:$0xff] }
 0xb0c   :  { %v1330_v14 = vpack.c.bf16 %v1328_v61, %v1328_v61 }
 0xb0d   :  { %v1329_v62 = vpack.c.bf16 %v1327_v9, %v1326_v5  ;;  %v3053_v5 = vld [vmem:[%s4537_s11 + $0x1] ss:$0 sm:$0xff] }
 0xb0f   :  { %3400 = vmatprep.mubr.msk.bf16.mxu1 %vm56_vm0, %v1329_v62 }
 0xb10   :  { %3401 = vmatmul.mubr.msk.bf16.vlgmr.msra.gmra.mxu1 %vm56_vm0, %v1330_v14 }
 0xb11   :  { %3417 = vmatpush3.bf16.msra.mxu1 %v3597_v41 }
 0xb12   :  { %3418 = vmatprep.subr.bf16.mxu1 %v3598_v42 }
 0xb15   :  { %3419 = vmatpush3.bf16.msra.mxu1 %v3598_v42 }
 0xb16   :  { %3424 = vmatprep.subr.mxu1 %v3731_v48 }
 0xbd0   :  { %v3402_v1 = vpop.f32.mrf.mxu1 }
 0xbd1   :  { %v1403_v2 = vadd.f32 %v3402_v1, %v3038_v12 }
 0xbd2   :  { %v1394_v13 = vpop.f32.mrf.mxu1 }
 0xbd3   :  { %v1395_v4 = vadd.f32 %v3038_v12, %v1394_v13  ;;  %v1410_v11 = vmax.f32 %v1403_v2, 0.0 }
 0xbd4   :  { %v3403_v3 = vpop.f32.mrf.mxu1 }
 0xbd5   :  { %v1408_v56 = vmax.f32 %v1395_v4, 0.0  ;;  %v1412_v17 = vpack.c.bf16 %v1410_v11, %v1410_v11 }
 0xbd6   :  { %v1397_v6 = vpop.f32.mrf.mxu1 }
 0xbd7   :  { %v1398_v7 = vadd.f32 %v3038_v12, %v1397_v6  ;;  %v3059_v6 = vld [vmem:[%s4538_s3 + $0x1] ss:$0 sm:$0xff] }
 0xbd9   :  { %v1409_v15 = vmax.f32 %v1398_v7, 0.0 }
 0xbdb   :  { %v1411_v16 = vpack.c.bf16 %v1409_v15, %v1408_v56 }
 0xbdd   :  { %3412 = vmatprep.mubr.msk.bf16.mxu0 %vm1445_vm5, %v1411_v16 }
 0xbde   :  { %3413 = vmatmul.mubr.msk.bf16.vlgmr.msra.gmra.mxu0 %vm1445_vm5, %v1412_v17 }
 0xc9e   :  { %v3414_v57 = vpop.f32.mrf.mxu0 }
 0xc9f   :  { %v1502_v58 = vadd.f32 %v3414_v57, %v4118_v55 }
 0xca0   :  { %v1486_v18 = vpop.f32.mrf.mxu0 }
 0xca1   :  { %v1500_v19 = vadd.f32 %v1486_v18, %v4116_v8  ;;  %v4175_v24 = vadd.f32 %v3049_v20, %v1502_v58 }
 0xca2   :  { %v3415_v21 = vpop.f32.mrf.mxu0 }
 0xca3   :  { %v4173_v22 = vadd.f32 %v3049_v20, %v1500_v19  ;;  %v1523_v8 = vsel %vm56_vm0, %v4175_v24, 0.0 }
 0xca4   :  { %v1489_v23 = vpop.f32.mrf.mxu0 }
 0xca5   :  { %v1501_v25 = vadd.f32 %v1489_v23, %v4125_v59  ;;  %v1517_v26 = vsel %vm56_vm0, %v4173_v22, 0.0 }
 0xca6   :  { %1518 = vadd.xlane.f32.xlu1 %v1517_v26 }
 0xca7   :  { %v4180_v27 = vadd.f32 %v3049_v20, %v1501_v25 }
 0xca9   :  { %v1520_v55 = vsel %vm56_vm0, %v4180_v27, 0.0 }
 0xcaa   :  { %1524 = vadd.xlane.f32.xlu1 %v1523_v8  ;;  %1521 = vadd.xlane.f32.xlu0 %v1520_v55 }
 0xd2f   :  { %v1519_v28 = vpop.xlane.xlu1 %1518 }
 0xd30   :  { %v1526_v29 = vmul.f32 0.03125, %v1519_v28 }
 0xd32   :  { %v1529_v30 = vsub.f32 %v4173_v22, %v1526_v29 }
 0xd33   :  { %v1525_v31 = vpop.xlane.xlu1 %1524  ;;  %v1522_v59 = vpop.xlane.xlu0 %1521 }
 0xd34   :  { %v1528_v33 = vmul.f32 0.03125, %v1525_v31  ;;  %v1527_v34 = vmul.f32 0.03125, %v1522_v59  ;;  %v1532_v32 = vmul.f32 %v1529_v30, %v1529_v30  ;;  %v4278_v31 = vld [vmem:[%s4539_s1] sm:$0xff] }
 0xd36   :  { %v1531_v10 = vsub.f32 %v4175_v24, %v1528_v33  ;;  %v1530_v35 = vsub.f32 %v4180_v27, %v1527_v34  ;;  %v1535_v36 = vsel %vm56_vm0, %v1532_v32, 0.0 }
 0xd37   :  { %1536 = vadd.xlane.f32.xlu0 %v1535_v36 }
 0xd38   :  { %v1534_v37 = vmul.f32 %v1531_v10, %v1531_v10  ;;  %v1533_v38 = vmul.f32 %v1530_v35, %v1530_v35 }
 0xd3a   :  { %v1541_v39 = vsel %vm56_vm0, %v1534_v37, 0.0  ;;  %v1538_v40 = vsel %vm56_vm0, %v1533_v38, 0.0 }
 0xd3b   :  { %1542 = vadd.xlane.f32.xlu0 %v1541_v39  ;;  %1539 = vadd.xlane.f32.xlu1 %v1538_v40  ;;  %v4292_v39 = vld [vmem:[%s4539_s1 + $0x10] sm:$0xff] }
 0xdc0   :  { %v1537_v43 = vpop.xlane.xlu0 %1536 }
 0xdc1   :  { %v1544_v44 = vmul.f32 0.03125, %v1537_v43 }
 0xdc3   :  { %v1547_v45 = vadd.f32 1e-05, %v1544_v44 }
 0xdc4   :  { %v1540_v46 = vpop.xlane.xlu1 %1539  ;;  %v1543_v47 = vpop.xlane.xlu0 %1542 }
 0xdc5   :  { %3665 = vrsqrt.f32 %v1547_v45  ;;  %v1545_v49 = vmul.f32 0.03125, %v1540_v46  ;;  %v1546_v50 = vmul.f32 0.03125, %v1543_v47 }
 0xdc7   :  { %v1548_v52 = vadd.f32 1e-05, %v1545_v49  ;;  %v1549_v53 = vadd.f32 1e-05, %v1546_v50 }
 0xdc9   :  { %3667 = vrsqrt.f32 %v1548_v52 }
 0xdca   :  { %3669 = vrsqrt.f32 %v1549_v53 }
 0xdd2   :  { %v3666_v54 = vpop.eup %3665 }
 0xdd3   :  { %v1553_v61 = vmul.f32 %v3666_v54, %v1529_v30 }
 0xdd5   :  { %v1562_v9 = vmul.f32 %v3052_v60, %v1553_v61 }
 0xdd6   :  { %v3668_v14 = vpop.eup %3667 }
 0xdd7   :  { %v3670_v62 = vpop.eup %3669  ;;  %v1554_v63 = vmul.f32 %v3668_v14, %v1530_v35  ;;  %v1571_v51 = vadd.f32 %v3053_v5, %v1562_v9 }
 0xdd8   :  { %v1555_v0 = vmul.f32 %v3670_v62, %v1531_v10  ;;  %v4285_v10 = vld [vmem:[%s4539_s1 + $0x8] sm:$0xff]  ;;  %s4555_s1 = smov 104  }
 0xdd9   :  { %v1563_v1 = vmul.f32 %v3052_v60, %v1554_v63 }
 0xdda   :  { %v1564_v12 = vmul.f32 %v3052_v60, %v1555_v0 }
 0xddb   :  { %v1572_v13 = vadd.f32 %v3053_v5, %v1563_v1 }
 0xddc   :  { %v1573_v2 = vadd.f32 %v3053_v5, %v1564_v12 }
 0xddd   :  { %v1574_v3 = vpack.c.bf16 %v1572_v13, %v1571_v51 }
 0xdde   :  { %v1575_v4 = vpack.c.bf16 %v1573_v2, %v1573_v2 }
 0xddf   :  { %3420 = vmatprep.mubr.msk.bf16.mxu1 %vm56_vm0, %v1574_v3 }
 0xde0   :  { %3421 = vmatmul.mubr.msk.bf16.vlgmr.msra.gmra.mxu1 %vm56_vm0, %v1575_v4 }
 0xde1   :  { %3430 = vmatprep.mubr.msk.f32.mxu1 %vm3732_vm1, %v3731_v48 }
 0xea0   :  { %v3422_v7 = vpop.f32.mrf.mxu1 }
 0xea1   :  { %v4212_v11 = vadd.f32 %v3422_v7, %v3059_v6 }
 0xea2   :  { %v1641_v56 = vpop.f32.mrf.mxu1 }
 0xea3   :  { %1665 = vrot.lane.b32.xlu1 %v4212_v11, %s3733_s29  ;;  %v4216_v16 = vadd.f32 %v3059_v6, %v1641_v56  ;;  %v4241_v19 = vmul.f32 0.35355338, %v4212_v11 }
 0xea4   :  { %v3423_v15 = vpop.f32.mrf.mxu1 }
 0xea5   :  { %v4236_v58 = vmul.f32 0.35355338, %v4216_v16 }
 0xea6   :  { %v1644_v17 = vpop.f32.mrf.mxu1 }
 0xea7   :  { %v4218_v57 = vadd.f32 %v3059_v6, %v1644_v17  ;;  %1661 = vrot.lane.b32.xlu1 %v4216_v16, %s3733_s29 }
 0xea9   :  { %1663 = vrot.lane.b32.xlu0 %v4218_v57, %s3733_s29  ;;  %v4231_v18 = vmul.f32 0.35355338, %v4218_v57 }
 0xeab   :  { %1877 = vrot.lane.b32.xlu1 %v4212_v11, %s3734_s30 }
 0xead   :  { %1873 = vrot.lane.b32.xlu0 %v4216_v16, %s3734_s30 }
 0xeaf   :  { %1875 = vrot.lane.b32.xlu1 %v4218_v57, %s3734_s30 }
 0xeb1   :  { %1869 = vrot.lane.b32.xlu0 %v4231_v18, %s3735_s15 }
 0xeb3   :  { %1867 = vrot.lane.b32.xlu1 %v4236_v58, %s3735_s15 }
 0xeb7   :  { %1871 = vrot.lane.b32.xlu1 %v4241_v19, %s3735_s15 }
 0xf15   :  { %v1666_v20 = vpop.permute.xlu1 %1665 }
 0xf16   :  { %3425 = vmatpush3.xpose.msk.msra.mxu1 %vm206_vm2, %v1666_v20 }
 0xf17   :  { %3426 = vmatprep.subr.mxu1 %v3731_v48 }
 0xf19   :  { %v1662_v21 = vpop.permute.xlu1 %1661 }
 0xf1b   :  { %v1664_v23 = vpop.permute.xlu0 %1663 }
 0xf1c   :  { %3427 = vmatpush3.xpose.msk.msra.mxu1 %vm206_vm2, %v1664_v23 }
 0xf1d   :  { %3428 = vmatprep.subr.mxu1 %v3731_v48  ;;  %v1878_v25 = vpop.permute.xlu1 %1877 }
 0xf1f   :  { %v1874_v8 = vpop.permute.xlu0 %1873 }
 0xf20   :  { %3429 = vmatpush3.xpose.msk.msra.mxu1 %vm206_vm2, %v1662_v21 }
 0xf21   :  { %3447 = vmatprep.subr.mxu1 %v3731_v48  ;;  %v1876_v26 = vpop.permute.xlu1 %1875 }
 0xf23   :  { %3431 = vmatmul.mubr.msk.f32.vlgmr.msra.gmra.mxu1 %vm206_vm2, %v4236_v58  ;;  %v1870_v28 = vpop.permute.xlu0 %1869 }
 0xf24   :  { %3448 = vmatpush3.xpose.msk.msra.mxu1 %vm206_vm2, %v1878_v25  ;;  %3433 = vmatprep.mubr.msk.f32.mxu1 %vm3732_vm1, %v3731_v48 }
 0xf25   :  { %3449 = vmatprep.subr.mxu1 %v3731_v48  ;;  %v1868_v55 = vpop.permute.xlu1 %1867 }
 0xf27   :  { %3434 = vmatmul.mubr.msk.f32.gmra.mxu1 %vm206_vm2, %v4231_v18 }
 0xf28   :  { %3450 = vmatpush3.xpose.msk.msra.mxu1 %vm206_vm2, %v1876_v26  ;;  %3436 = vmatprep.mubr.msk.f32.mxu1 %vm3732_vm1, %v3731_v48 }
 0xf29   :  { %3451 = vmatprep.subr.mxu1 %v3731_v48  ;;  %v1872_v29 = vpop.permute.xlu1 %1871 }
 0xf2b   :  { %3437 = vmatmul.mubr.msk.f32.gmra.mxu1 %vm206_vm2, %v4241_v19 }
 0xf2c   :  { %3452 = vmatpush3.xpose.msk.msra.mxu1 %vm206_vm2, %v1874_v8  ;;  %3453 = vmatprep.mubr.msk.f32.mxu1 %vm3732_vm1, %v3731_v48 }
 0xf2f   :  { %3454 = vmatmul.mubr.msk.f32.vlgmr.msra.gmra.mxu1 %vm206_vm2, %v1868_v55 }
 0xf30   :  { %3456 = vmatprep.mubr.msk.f32.mxu1 %vm3732_vm1, %v3731_v48 }
 0xf33   :  { %3457 = vmatmul.mubr.msk.f32.gmra.mxu1 %vm206_vm2, %v1870_v28  ;;  %v4312_v28 = vpack.c.bf16 %v4218_v57, %v4216_v16 }
 0xf34   :  { %3459 = vmatprep.mubr.msk.f32.mxu1 %vm3732_vm1, %v3731_v48 }
 0xf37   :  { %3460 = vmatmul.mubr.msk.f32.gmra.mxu1 %vm206_vm2, %v1872_v29  ;;  %v4318_v29 = vpack.c.bf16 %v4212_v11, %v4212_v11 }
 0xfe3   :  { %v1748_v30 = vpop.f32.mrf.mxu1 }
 0xfe4   :  { %v1749_v59 = vadd.f32 %v4278_v31, %v1748_v30 }
 0xfe5   :  { %v3432_v33 = vpop.f32.mrf.mxu1 }
 0xfe6   :  { %v1762_v34 = vsel %vm302_vm3, %v1749_v59, -inf }
 0xfe7   :  { %1763 = vmax.xlane.f32.xlu0 %v1762_v34  ;;  %v1753_v32 = vpop.f32.mrf.mxu1 }
 0xfe8   :  { %v1754_v35 = vadd.f32 %v4285_v10, %v1753_v32 }
 0xfe9   :  { %v3435_v36 = vpop.f32.mrf.mxu1 }
 0xfea   :  { %v1765_v37 = vsel %vm302_vm3, %v1754_v35, -inf }
 0xfeb   :  { %1766 = vmax.xlane.f32.xlu1 %v1765_v37  ;;  %v1758_v38 = vpop.f32.mrf.mxu1 }
 0xfec   :  { %v1759_v40 = vadd.f32 %v4292_v39, %v1758_v38 }
 0xfed   :  { %v3438_v41 = vpop.f32.mrf.mxu1 }
 0xfee   :  { %v1768_v42 = vsel %vm302_vm3, %v1759_v40, -inf }
 0xfef   :  { %1769 = vmax.xlane.f32.xlu0 %v1768_v42  ;;  %v1957_v43 = vpop.f32.mrf.mxu1 }
 0xff0   :  { %v1958_v44 = vadd.f32 %v4278_v31, %v1957_v43 }
 0xff1   :  { %v3455_v45 = vpop.f32.mrf.mxu1 }
 0xff2   :  { %v1971_v46 = vsel %vm302_vm3, %v1958_v44, -inf }
 0xff3   :  { %1972 = vmax.xlane.f32.xlu0 %v1971_v46  ;;  %v1962_v47 = vpop.f32.mrf.mxu1 }
 0xff4   :  { %v1963_v49 = vadd.f32 %v4285_v10, %v1962_v47 }
 0xff5   :  { %v3458_v50 = vpop.f32.mrf.mxu1 }
 0xff6   :  { %v1974_v52 = vsel %vm302_vm3, %v1963_v49, -inf }
 0xff7   :  { %1975 = vmax.xlane.f32.xlu0 %v1974_v52  ;;  %v1967_v53 = vpop.f32.mrf.mxu1 }
 0xff8   :  { %v1968_v54 = vadd.f32 %v4292_v39, %v1967_v53 }
 0xff9   :  { %v3461_v60 = vpop.f32.mrf.mxu1 }
 0xffa   :  { %v1977_v61 = vsel %vm302_vm3, %v1968_v54, -inf }
 0xffb   :  { %1978 = vmax.xlane.f32.xlu1 %v1977_v61 }
0x1070   :  { %v1764_v5 = vpop.xlane.xlu0 %1763 }
0x1071   :  { %v1771_v9 = vsub.f32 %v1749_v59, %v1764_v5 }
0x1073   :  { %v1774_v14 = vmul.f32 1.442695, %v1771_v9 }
0x1074   :  { %v1767_v62 = vpop.xlane.xlu1 %1766 }
0x1075   :  { %3671 = vpow2.f32 %v1774_v14  ;;  %v1772_v63 = vsub.f32 %v1754_v35, %v1767_v62  ;;  %v3072_v62 = vld [vmem:[%s4540_s4 + $0x10] sm:$0xf] }
0x1076   :  { %3571 = vmatprep.subr.msk.bf16.mxu1 %vm353_vm4, %v3072_v62 }
0x1077   :  { %v1776_v51 = vmul.f32 1.442695, %v1772_v63  ;;  %v2136_v63 = vsel %vm353_vm4, %v3072_v62, 0 }
0x1078   :  { %v1770_v0 = vpop.xlane.xlu0 %1769  ;;  %3477 = vmatpush3.bf16.msra.mxu1 %v2136_v63 }
0x1079   :  { %3673 = vpow2.f32 %v1776_v51  ;;  %v1773_v1 = vsub.f32 %v1759_v40, %v1770_v0  ;;  %v3081_v51 = vld [vmem:[%s4540_s4 + $0x14] sm:$0xf] }
0x107a   :  { %v2079_v0 = vsel %vm353_vm4, %v3081_v51, 0 }
0x107b   :  { %v1778_v12 = vmul.f32 1.442695, %v1773_v1 }
0x107c   :  { %v1973_v13 = vpop.xlane.xlu0 %1972 }
0x107d   :  { %3675 = vpow2.f32 %v1778_v12  ;;  %v1980_v2 = vsub.f32 %v1958_v44, %v1973_v13 }
0x107f   :  { %v1983_v3 = vmul.f32 1.442695, %v1980_v2 }
0x1080   :  { %v1976_v4 = vpop.xlane.xlu0 %1975 }
0x1081   :  { %3677 = vpow2.f32 %v1983_v3  ;;  %v1981_v6 = vsub.f32 %v1963_v49, %v1976_v4 }
0x1082   :  { %v3672_v7 = vpop.eup %3671 }
0x1083   :  { %v1985_v56 = vmul.f32 1.442695, %v1981_v6  ;;  %v1780_v15 = vsel %vm302_vm3, %v3672_v7, 0.0 }
0x1084   :  { %1781 = vadd.xlane.f32.xlu0 %v1780_v15  ;;  %v1979_v30 = vpop.xlane.xlu1 %1978 }
0x1085   :  { %3679 = vpow2.f32 %v1985_v56  ;;  %v1982_v59 = vsub.f32 %v1968_v54, %v1979_v30 }
0x1086   :  { %v3674_v17 = vpop.eup %3673 }
0x1087   :  { %v1783_v20 = vsel %vm302_vm3, %v3674_v17, 0.0  ;;  %v1987_v33 = vmul.f32 1.442695, %v1982_v59 }
0x1088   :  { %1784 = vadd.xlane.f32.xlu1 %v1783_v20 }
0x1089   :  { %3681 = vpow2.f32 %v1987_v33 }
0x108a   :  { %v3676_v21 = vpop.eup %3675 }
0x108b   :  { %v1786_v23 = vsel %vm302_vm3, %v3676_v21, 0.0 }
0x108c   :  { %1787 = vadd.xlane.f32.xlu0 %v1786_v23 }
0x108e   :  { %v4305_v25 = vpop.eup %3677 }
0x108f   :  { %v1989_v26 = vsel %vm302_vm3, %v4305_v25, 0.0 }
0x1090   :  { %1990 = vadd.xlane.f32.xlu1 %v1989_v26 }
0x1092   :  { %v3680_v8 = vpop.eup %3679 }
0x1093   :  { %v1992_v55 = vsel %vm302_vm3, %v3680_v8, 0.0 }
0x1094   :  { %1993 = vadd.xlane.f32.xlu0 %v1992_v55 }
0x1096   :  { %v3682_v34 = vpop.eup %3681 }
0x1097   :  { %v1995_v32 = vsel %vm302_vm3, %v3682_v34, 0.0 }
0x10a1   :  { %1801 = vrot.lane.b32.xlu1 %v4312_v28, %s3736_s22 }
0x10a5   :  { %2008 = vrot.lane.b32.xlu1 %v4318_v29, %s3737_s23 }
0x10aa   :  { %1803 = vrot.lane.b32.xlu0 %v4318_v29, %s3736_s22 }
0x10ae   :  { %2196 = vrot.lane.b32.xlu0 %v4212_v11, %s3738_s24 }
0x10b2   :  { %2192 = vrot.lane.b32.xlu0 %v4216_v16, %s3738_s24 }
0x10b6   :  { %2188 = vrot.lane.b32.xlu0 %v4231_v18, %s3739_s25 }
0x10ba   :  { %2461 = vrot.lane.b32.xlu0 %v4212_v11, %s3740_s26 }
0x10be   :  { %2457 = vrot.lane.b32.xlu0 %v4216_v16, %s3740_s26 }
0x10c2   :  { %2453 = vrot.lane.b32.xlu0 %v4231_v18, %s4555_s1 }
0x10c9   :  { %1996 = vadd.xlane.f32.xlu1 %v1995_v32 }
0x10da   :  { %2006 = vrot.lane.b32.xlu1 %v4312_v28, %s3737_s23 }
0x10de   :  { %2194 = vrot.lane.b32.xlu1 %v4218_v57, %s3738_s24 }
0x10e2   :  { %2186 = vrot.lane.b32.xlu1 %v4236_v58, %s3739_s25 }
0x10e6   :  { %2190 = vrot.lane.b32.xlu1 %v4241_v19, %s3739_s25 }
0x10ea   :  { %2459 = vrot.lane.b32.xlu1 %v4218_v57, %s3740_s26  ;;  %s4556_s26 = smov 48  }
0x10ee   :  { %2451 = vrot.lane.b32.xlu1 %v4236_v58, %s4555_s1 }
0x10f2   :  { %2455 = vrot.lane.b32.xlu1 %v4241_v19, %s4555_s1 }
0x110d   :  { %v1782_v11 = vpop.xlane.xlu0 %1781 }
0x110e   :  { %3683 = vrcp.f32 %v1782_v11 }
0x1111   :  { %v1785_v16 = vpop.xlane.xlu1 %1784 }
0x1112   :  { %3685 = vrcp.f32 %v1785_v16 }
0x1115   :  { %v1788_v18 = vpop.xlane.xlu0 %1787 }
0x1116   :  { %3687 = vrcp.f32 %v1788_v18 }
0x1119   :  { %v1991_v35 = vpop.xlane.xlu1 %1990 }
0x111a   :  { %3689 = vrcp.f32 %v1991_v35 }
0x111b   :  { %v3684_v36 = vpop.eup %3683 }
0x111c   :  { %v1792_v40 = vmul.f32 %v3684_v36, %v3672_v7 }
0x111d   :  { %v1994_v37 = vpop.xlane.xlu0 %1993  ;;  %v1802_v41 = vpop.permute.xlu1 %1801 }
0x111e   :  { %3691 = vrcp.f32 %v1994_v37 }
0x111f   :  { %v3686_v38 = vpop.eup %3685 }
0x1120   :  { %v1793_v57 = vmul.f32 %v3686_v38, %v3674_v17 }
0x1121   :  { %v1804_v42 = vpop.permute.xlu0 %1803  ;;  %v2009_v45 = vpop.permute.xlu1 %2008 }
0x1122   :  { %v1813_v58 = vsel %vm353_vm4, %v1804_v42, 0  ;;  %3568 = vmatprep.subr.msk.bf16.mxu0 %vm353_vm4, %v1804_v42  ;;  %v1795_v19 = vpack.c.bf16 %v1793_v57, %v1792_v40  ;;  %v2018_v49 = vsel %vm353_vm4, %v2009_v45, 0 }
0x1123   :  { %v3688_v43 = vpop.eup %3687  ;;  %3440 = vmatpush3.bf16.msra.mxu0 %v1813_v58 }
0x1124   :  { %3441 = vmatprep.subr.bf16.mxu0 %v1802_v41  ;;  %3443 = vmatprep.mubr.msk.bf16.mxu0 %vm302_vm3, %v1795_v19  ;;  %v1794_v44 = vmul.f32 %v3688_v43, %v3676_v21 }
0x1125   :  { %v2197_v56 = vpop.permute.xlu0 %2196 }
0x1126   :  { %v1796_v46 = vpack.c.bf16 %v1794_v44, %v1794_v44 }
0x1127   :  { %3442 = vmatpush3.bf16.msra.mxu0 %v1802_v41  ;;  %v3690_v47 = vpop.eup %3689 }
0x1128   :  { %3569 = vmatprep.subr.msk.bf16.mxu0 %vm353_vm4, %v2009_v45  ;;  %v2001_v52 = vmul.f32 %v3690_v47, %v4305_v25 }
0x1129   :  { %v2193_v25 = vpop.permute.xlu0 %2192 }
0x112a   :  { %3444 = vmatmul.mubr.msk.bf16.vlgmr.msra.gmra.mxu0 %vm302_vm3, %v1796_v46 }
0x112b   :  { %v3692_v50 = vpop.eup %3691  ;;  %3463 = vmatpush3.bf16.msra.mxu0 %v2018_v49 }
0x112c   :  { %v2002_v53 = vmul.f32 %v3692_v50, %v3680_v8 }
0x112d   :  { %v2189_v8 = vpop.permute.xlu0 %2188 }
0x112e   :  { %v2004_v54 = vpack.c.bf16 %v2002_v53, %v2001_v52 }
0x1130   :  { %3466 = vmatprep.mubr.msk.bf16.mxu0 %vm302_vm3, %v2004_v54 }
0x1131   :  { %v2462_v30 = vpop.permute.xlu0 %2461 }
0x1135   :  { %v2458_v33 = vpop.permute.xlu0 %2457 }
0x1139   :  { %v2454_v32 = vpop.permute.xlu0 %2453 }
0x1152   :  { %v1997_v60 = vpop.xlane.xlu1 %1996 }
0x1153   :  { %3693 = vrcp.f32 %v1997_v60 }
0x1156   :  { %v2007_v61 = vpop.permute.xlu1 %2006 }
0x1157   :  { %3464 = vmatprep.subr.bf16.mxu0 %v2007_v61 }
0x1158   :  { %3465 = vmatpush3.bf16.msra.mxu0 %v2007_v61 }
0x1159   :  { %3570 = vmatprep.subr.msk.bf16.mxu0 %vm353_vm4, %v3081_v51 }
0x115a   :  { %v2195_v21 = vpop.permute.xlu1 %2194 }
0x115e   :  { %v2187_v26 = vpop.permute.xlu1 %2186 }
0x1160   :  { %v3694_v5 = vpop.eup %3693 }
0x1161   :  { %v2003_v9 = vmul.f32 %v3694_v5, %v3682_v34 }
0x1162   :  { %v2191_v55 = vpop.permute.xlu1 %2190 }
0x1163   :  { %v2005_v14 = vpack.c.bf16 %v2003_v9, %v2003_v9 }
0x1165   :  { %3467 = vmatmul.mubr.msk.bf16.vlgmr.msra.gmra.mxu0 %vm302_vm3, %v2005_v14 }
0x1166   :  { %3471 = vmatpush3.bf16.msra.mxu0 %v2079_v0  ;;  %v2460_v59 = vpop.permute.xlu1 %2459 }
0x1167   :  { %3482 = vmatprep.subr.mxu0 %v3731_v48 }
0x116a   :  { %v2452_v34 = vpop.permute.xlu1 %2451 }
0x116e   :  { %v2456_v11 = vpop.permute.xlu1 %2455 }
0x11ea   :  { %v3445_v1 = vpop.f32.mrf.mxu0 }
0x11eb   :  { %v1864_v4 = vpack.c.bf16 %v3445_v1, %v3445_v1 }
0x11ec   :  { %v1849_v12 = vpop.f32.mrf.mxu0 }
0x11ee   :  { %v3446_v13 = vpop.f32.mrf.mxu0 }
0x11f0   :  { %v1852_v2 = vpop.f32.mrf.mxu0 }
0x11f1   :  { %v1863_v3 = vpack.c.bf16 %v1852_v2, %v1849_v12 }
0x11f3   :  { %3478 = vmatprep.mubr.msk.bf16.mxu1 %vm206_vm2, %v1863_v3 }
0x11f4   :  { %3479 = vmatmul.mubr.msk.bf16.vlgmr.msra.gmra.mxu1 %vm206_vm2, %v1864_v4 }
0x1225   :  { %v3468_v6 = vpop.f32.mrf.mxu0 }
0x1226   :  { %v2069_v23 = vpack.c.bf16 %v3468_v6, %v3468_v6 }
0x1227   :  { %v2054_v7 = vpop.f32.mrf.mxu0 }
0x1229   :  { %v3469_v15 = vpop.f32.mrf.mxu0 }
0x122b   :  { %v2057_v17 = vpop.f32.mrf.mxu0 }
0x122c   :  { %v2068_v20 = vpack.c.bf16 %v2057_v17, %v2054_v7 }
0x122e   :  { %3472 = vmatprep.mubr.msk.bf16.mxu0 %vm206_vm2, %v2068_v20 }
0x122f   :  { %3473 = vmatmul.mubr.msk.bf16.vlgmr.msra.gmra.mxu0 %vm206_vm2, %v2069_v23 }
0x1230   :  { %3483 = vmatpush3.xpose.msk.msra.mxu0 %vm206_vm2, %v2197_v56  ;;  %3488 = vmatprep.mubr.msk.f32.mxu0 %vm3732_vm1, %v3731_v48 }
0x1231   :  { %3484 = vmatprep.subr.mxu0 %v3731_v48 }
0x1234   :  { %3485 = vmatpush3.xpose.msk.msra.mxu0 %vm206_vm2, %v2195_v21 }
0x1235   :  { %3486 = vmatprep.subr.mxu0 %v3731_v48 }
0x1238   :  { %3487 = vmatpush3.xpose.msk.msra.mxu0 %vm206_vm2, %v2193_v25 }
0x1239   :  { %3511 = vmatprep.subr.mxu0 %v3731_v48 }
0x123b   :  { %3489 = vmatmul.mubr.msk.f32.vlgmr.msra.gmra.mxu0 %vm206_vm2, %v2187_v26 }
0x123c   :  { %3512 = vmatpush3.xpose.msk.msra.mxu0 %vm206_vm2, %v2462_v30  ;;  %3491 = vmatprep.mubr.msk.f32.mxu0 %vm3732_vm1, %v3731_v48 }
0x123d   :  { %3513 = vmatprep.subr.mxu0 %v3731_v48 }
0x123f   :  { %3492 = vmatmul.mubr.msk.f32.gmra.mxu0 %vm206_vm2, %v2189_v8 }
0x1240   :  { %3514 = vmatpush3.xpose.msk.msra.mxu0 %vm206_vm2, %v2460_v59  ;;  %3494 = vmatprep.mubr.msk.f32.mxu0 %vm3732_vm1, %v3731_v48 }
0x1241   :  { %3515 = vmatprep.subr.mxu0 %v3731_v48 }
0x1243   :  { %3495 = vmatmul.mubr.msk.f32.gmra.mxu0 %vm206_vm2, %v2191_v55 }
0x1244   :  { %3516 = vmatpush3.xpose.msk.msra.mxu0 %vm206_vm2, %v2458_v33  ;;  %3517 = vmatprep.mubr.msk.f32.mxu0 %vm3732_vm1, %v3731_v48 }
0x1247   :  { %3518 = vmatmul.mubr.msk.f32.vlgmr.msra.gmra.mxu0 %vm206_vm2, %v2452_v34 }
0x1248   :  { %3520 = vmatprep.mubr.msk.f32.mxu0 %vm3732_vm1, %v3731_v48 }
0x124b   :  { %3521 = vmatmul.mubr.msk.f32.gmra.mxu0 %vm206_vm2, %v2454_v32 }
0x124c   :  { %3523 = vmatprep.mubr.msk.f32.mxu0 %vm3732_vm1, %v3731_v48 }
0x124f   :  { %3524 = vmatmul.mubr.msk.f32.gmra.mxu0 %vm206_vm2, %v2456_v11 }
0x12b4   :  { %v3480_v16 = vpop.f32.mrf.mxu1 }
0x12b6   :  { %v2172_v18 = vpop.f32.mrf.mxu1 }
0x12b8   :  { %v3481_v35 = vpop.f32.mrf.mxu1 }
0x12ef   :  { %v3474_v36 = vpop.f32.mrf.mxu0 }
0x12f0   :  { %v4404_v37 = vadd.f32 %v3480_v16, %v3474_v36 }
0x12f1   :  { %v2115_v38 = vpop.f32.mrf.mxu0 }
0x12f2   :  { %v4406_v40 = vadd.f32 %v2172_v18, %v2115_v38 }
0x12f3   :  { %v3475_v57 = vpop.f32.mrf.mxu0 }
0x12f5   :  { %v4408_v41 = vpop.f32.mrf.mxu0 }
0x12fb   :  { %v2276_v42 = vpop.f32.mrf.mxu0 }
0x12fc   :  { %v2277_v58 = vadd.f32 %v4278_v31, %v2276_v42 }
0x12fd   :  { %v3490_v19 = vpop.f32.mrf.mxu0 }
0x12fe   :  { %v2290_v48 = vsel %vm302_vm3, %v2277_v58, -inf }
0x12ff   :  { %2291 = vmax.xlane.f32.xlu0 %v2290_v48  ;;  %v2281_v43 = vpop.f32.mrf.mxu0 }
0x1300   :  { %v2282_v44 = vadd.f32 %v4285_v10, %v2281_v43 }
0x1301   :  { %v3493_v45 = vpop.f32.mrf.mxu0 }
0x1302   :  { %v2293_v46 = vsel %vm302_vm3, %v2282_v44, -inf }
0x1303   :  { %2294 = vmax.xlane.f32.xlu1 %v2293_v46  ;;  %v2286_v47 = vpop.f32.mrf.mxu0 }
0x1304   :  { %v2287_v49 = vadd.f32 %v4292_v39, %v2286_v47 }
0x1305   :  { %v3496_v50 = vpop.f32.mrf.mxu0 }
0x1306   :  { %v2296_v52 = vsel %vm302_vm3, %v2287_v49, -inf }
0x1307   :  { %2297 = vmax.xlane.f32.xlu0 %v2296_v52  ;;  %v2541_v53 = vpop.f32.mrf.mxu0 }
0x1308   :  { %v2542_v20 = vadd.f32 %v4278_v31, %v2541_v53  ;;  %v3094_v53 = vld [vmem:[%s4540_s4 + $0x18] sm:$0xf] }
0x1309   :  { %v3519_v54 = vpop.f32.mrf.mxu0 }
0x130a   :  { %v2555_v25 = vsel %vm302_vm3, %v2542_v20, -inf  ;;  %v2398_v54 = vsel %vm353_vm4, %v3094_v53, 0 }
0x130b   :  { %v2546_v60 = vpop.f32.mrf.mxu0 }
0x130c   :  { %v2547_v17 = vadd.f32 %v4285_v10, %v2546_v60 }
0x130d   :  { %v3522_v61 = vpop.f32.mrf.mxu0 }
0x130e   :  { %v2558_v23 = vsel %vm302_vm3, %v2547_v17, -inf  ;;  %v2175_v61 = vpop.f32.mrf.mxu1 }
0x130f   :  { %v2551_v5 = vpop.f32.mrf.mxu0 }
0x1310   :  { %v2552_v21 = vadd.f32 %v4292_v39, %v2551_v5 }
0x1311   :  { %v3525_v9 = vpop.f32.mrf.mxu0 }
0x1312   :  { %v2561_v26 = vsel %vm302_vm3, %v2552_v21, -inf }
0x1388   :  { %v2292_v14 = vpop.xlane.xlu0 %2291 }
0x1389   :  { %v2299_v62 = vsub.f32 %v2277_v58, %v2292_v14 }
0x138b   :  { %v2302_v63 = vmul.f32 1.442695, %v2299_v62 }
0x138c   :  { %v2295_v51 = vpop.xlane.xlu1 %2294 }
0x138d   :  { %3695 = vpow2.f32 %v2302_v63  ;;  %v2300_v0 = vsub.f32 %v2282_v44, %v2295_v51 }
0x138f   :  { %v2304_v1 = vmul.f32 1.442695, %v2300_v0 }
0x1390   :  { %v2298_v12 = vpop.xlane.xlu0 %2297 }
0x1391   :  { %3697 = vpow2.f32 %v2304_v1  ;;  %v2301_v13 = vsub.f32 %v2287_v49, %v2298_v12 }
0x1393   :  { %v2306_v2 = vmul.f32 1.442695, %v2301_v13 }
0x1395   :  { %3699 = vpow2.f32 %v2306_v2 }
0x139a   :  { %v3696_v3 = vpop.eup %3695 }
0x139b   :  { %v2308_v4 = vsel %vm302_vm3, %v3696_v3, 0.0 }
0x139c   :  { %2309 = vadd.xlane.f32.xlu0 %v2308_v4 }
0x139e   :  { %v3698_v6 = vpop.eup %3697 }
0x139f   :  { %v2311_v7 = vsel %vm302_vm3, %v3698_v6, 0.0 }
0x13a0   :  { %2312 = vadd.xlane.f32.xlu0 %v2311_v7 }
0x13a2   :  { %v3700_v56 = vpop.eup %3699 }
0x13a3   :  { %v2314_v15 = vsel %vm302_vm3, %v3700_v56, 0.0 }
0x13a4   :  { %2315 = vadd.xlane.f32.xlu1 %v2314_v15 }
0x13b5   :  { %2325 = vrot.lane.b32.xlu1 %v4312_v28, %s4556_s26 }
0x13b6   :  { %2327 = vrot.lane.b32.xlu0 %v4318_v29, %s4556_s26 }
0x13d5   :  { %2559 = vmax.xlane.f32.xlu0 %v2558_v23 }
0x13d9   :  { %2556 = vmax.xlane.f32.xlu1 %v2555_v25  ;;  %2562 = vmax.xlane.f32.xlu0 %v2561_v26 }
0x1425   :  { %v2310_v8 = vpop.xlane.xlu0 %2309 }
0x1426   :  { %3701 = vrcp.f32 %v2310_v8 }
0x1429   :  { %v2313_v55 = vpop.xlane.xlu0 %2312 }
0x142a   :  { %3703 = vrcp.f32 %v2313_v55  ;;  %v2176_v55 = vadd.f32 %v2175_v61, %v4408_v41  ;;  %v3109_v41 = vld [vmem:[%s4541_s5 + $0x1] ss:$0 sm:$0xff] }
0x142d   :  { %v2328_v30 = vpop.permute.xlu0 %2327  ;;  %v2316_v59 = vpop.xlane.xlu1 %2315 }
0x142e   :  { %v2337_v10 = vsel %vm353_vm4, %v2328_v30, 0  ;;  %3705 = vrcp.f32 %v2316_v59  ;;  %3572 = vmatprep.subr.msk.bf16.mxu1 %vm353_vm4, %v2328_v30 }
0x142f   :  { %3498 = vmatpush3.bf16.msra.mxu1 %v2337_v10 }
0x1431   :  { %v2326_v31 = vpop.permute.xlu1 %2325 }
0x1432   :  { %3499 = vmatprep.subr.bf16.mxu1 %v2326_v31 }
0x1433   :  { %3500 = vmatpush3.bf16.msra.mxu1 %v2326_v31  ;;  %v3702_v39 = vpop.eup %3701 }
0x1434   :  { %v2320_v34 = vmul.f32 %v3702_v39, %v3696_v3  ;;  %3573 = vmatprep.subr.msk.bf16.mxu1 %vm353_vm4, %v3094_v53 }
0x1437   :  { %v3704_v33 = vpop.eup %3703 }
0x1438   :  { %v2321_v32 = vmul.f32 %v3704_v33, %v3698_v6 }
0x143a   :  { %v2323_v11 = vpack.c.bf16 %v2321_v32, %v2320_v34 }
0x143b   :  { %v3706_v16 = vpop.eup %3705 }
0x143c   :  { %3501 = vmatprep.mubr.msk.bf16.mxu1 %vm302_vm3, %v2323_v11  ;;  %v2322_v18 = vmul.f32 %v3706_v16, %v3700_v56 }
0x143e   :  { %v2324_v35 = vpack.c.bf16 %v2322_v18, %v2322_v18 }
0x1440   :  { %3502 = vmatmul.mubr.msk.bf16.vlgmr.msra.gmra.mxu1 %vm302_vm3, %v2324_v35 }
0x1441   :  { %3506 = vmatpush3.bf16.msra.mxu1 %v2398_v54 }
0x145e   :  { %v2560_v36 = vpop.xlane.xlu0 %2559 }
0x145f   :  { %v2565_v38 = vsub.f32 %v2547_v17, %v2560_v36  ;;  %v3105_v17 = vld [vmem:[%s4540_s4 + $0x1c] sm:$0xf] }
0x1460   :  { %3575 = vmatprep.subr.msk.bf16.mxu0 %vm353_vm4, %v3105_v17 }
0x1461   :  { %v2569_v57 = vmul.f32 1.442695, %v2565_v38 }
0x1462   :  { %v2563_v42 = vpop.xlane.xlu0 %2562  ;;  %v2557_v58 = vpop.xlane.xlu1 %2556 }
0x1463   :  { %3707 = vpow2.f32 %v2569_v57  ;;  %v2566_v19 = vsub.f32 %v2552_v21, %v2563_v42  ;;  %v2564_v48 = vsub.f32 %v2542_v20, %v2557_v58  ;;  %v2663_v20 = vsel %vm353_vm4, %v3105_v17, 0 }
0x1464   :  { %3535 = vmatpush3.bf16.msra.mxu0 %v2663_v20 }
0x1465   :  { %v2567_v43 = vmul.f32 1.442695, %v2564_v48  ;;  %v2571_v44 = vmul.f32 1.442695, %v2566_v19 }
0x1467   :  { %3709 = vpow2.f32 %v2567_v43 }
0x1468   :  { %3711 = vpow2.f32 %v2571_v44 }
0x1470   :  { %v3708_v45 = vpop.eup %3707 }
0x1471   :  { %v2576_v46 = vsel %vm302_vm3, %v3708_v45, 0.0 }
0x1472   :  { %2577 = vadd.xlane.f32.xlu0 %v2576_v46 }
0x1474   :  { %v3710_v47 = vpop.eup %3709 }
0x1475   :  { %v2573_v49 = vsel %vm302_vm3, %v3710_v47, 0.0  ;;  %v3712_v50 = vpop.eup %3711 }
0x1476   :  { %2574 = vadd.xlane.f32.xlu1 %v2573_v49  ;;  %v2579_v52 = vsel %vm302_vm3, %v3712_v50, 0.0 }
0x147a   :  { %2580 = vadd.xlane.f32.xlu1 %v2579_v52 }
0x1488   :  { %2592 = vrot.lane.b32.xlu0 %v4318_v29, %s4557_s18 }
0x148b   :  { %2590 = vrot.lane.b32.xlu1 %v4312_v28, %s4557_s18 }
0x14fb   :  { %v2578_v60 = vpop.xlane.xlu0 %2577 }
0x14fc   :  { %3713 = vrcp.f32 %v2578_v60 }
0x14ff   :  { %v2593_v5 = vpop.permute.xlu0 %2592  ;;  %v2575_v9 = vpop.xlane.xlu1 %2574 }
0x1500   :  { %v3503_v14 = vpop.f32.mrf.mxu1  ;;  %3574 = vmatprep.subr.msk.bf16.mxu1 %vm353_vm4, %v2593_v5  ;;  %3715 = vrcp.f32 %v2575_v9  ;;  %v2602_v28 = vsel %vm353_vm4, %v2593_v5, 0 }
0x1501   :  { %v2388_v12 = vpack.c.bf16 %v3503_v14, %v3503_v14 }
0x1502   :  { %v2373_v62 = vpop.f32.mrf.mxu1 }
0x1503   :  { %v2581_v63 = vpop.xlane.xlu1 %2580 }
0x1504   :  { %v3504_v51 = vpop.f32.mrf.mxu1  ;;  %3717 = vrcp.f32 %v2581_v63  ;;  %v3600_v63 = vld [vmem:[%s4542_s6 + $0x10] sm:$0xff]  }
0x1505   :  { %v3601_v51 = vld [vmem:[%s4543_s8 + $0x38] sm:$0xff]  }
0x1506   :  { %v2376_v0 = vpop.f32.mrf.mxu1  ;;  %3548 = vmatprep.subr.bf16.mxu0 %v3601_v51 }
0x1507   :  { %v2387_v1 = vpack.c.bf16 %v2376_v0, %v2373_v62  ;;  %v2591_v29 = vpop.permute.xlu1 %2590  ;;  %v3599_v62 = vld [vmem:[%s4542_s6 + $0x18] sm:$0xff]  }
0x1509   :  { %3507 = vmatprep.mubr.msk.bf16.mxu1 %vm206_vm2, %v2387_v1  ;;  %v3714_v13 = vpop.eup %3713 }
0x150a   :  { %3508 = vmatmul.mubr.msk.bf16.vlgmr.msra.gmra.mxu1 %vm206_vm2, %v2388_v12  ;;  %v2586_v4 = vmul.f32 %v3714_v13, %v3708_v45 }
0x150b   :  { %3527 = vmatpush3.bf16.msra.mxu1 %v2602_v28 }
0x150c   :  { %3528 = vmatprep.subr.bf16.mxu1 %v2591_v29 }
0x150d   :  { %v3716_v2 = vpop.eup %3715 }
0x150e   :  { %v2585_v3 = vmul.f32 %v3716_v2, %v3710_v47 }
0x150f   :  { %3529 = vmatpush3.bf16.msra.mxu1 %v2591_v29 }
0x1510   :  { %v2588_v6 = vpack.c.bf16 %v2586_v4, %v2585_v3  ;;  %3540 = vmatprep.subr.bf16.mxu1 %v3599_v62 }
0x1511   :  { %v3718_v7 = vpop.eup %3717 }
0x1512   :  { %3530 = vmatprep.mubr.msk.bf16.mxu1 %vm302_vm3, %v2588_v6  ;;  %v2587_v56 = vmul.f32 %v3718_v7, %v3712_v50 }
0x1514   :  { %v2589_v15 = vpack.c.bf16 %v2587_v56, %v2587_v56  ;;  %v3112_v56 = vld [vmem:[%s4544_s12 + $0x1] ss:$0 sm:$0xff] }
0x1516   :  { %3531 = vmatmul.mubr.msk.bf16.vlgmr.msra.gmra.mxu1 %vm302_vm3, %v2589_v15 }
0x1517   :  { %3541 = vmatpush3.bf16.msra.mxu1 %v3599_v62 }
0x1518   :  { %3542 = vmatprep.subr.bf16.mxu1 %v3600_v63 }
0x151b   :  { %3543 = vmatpush3.bf16.msra.mxu1 %v3600_v63 }
0x15ca   :  { %v3509_v21 = vpop.f32.mrf.mxu1 }
0x15cb   :  { %v2450_v23 = vadd.f32 %v3509_v21, %v4404_v37  ;;  %v3113_v21 = vld [vmem:[%s4545_s13 + $0x1] ss:$0 sm:$0xff] }
0x15cc   :  { %v2434_v25 = vpop.f32.mrf.mxu1 }
0x15cd   :  { %v2448_v26 = vadd.f32 %v2434_v25, %v4406_v40 }
0x15ce   :  { %v3510_v8 = vpop.f32.mrf.mxu1 }
0x15d0   :  { %v2437_v30 = vpop.f32.mrf.mxu1 }
0x15d1   :  { %v2449_v59 = vadd.f32 %v2437_v30, %v2176_v55 }
0x15d6   :  { %v3532_v10 = vpop.f32.mrf.mxu1 }
0x15d7   :  { %v2653_v32 = vpack.c.bf16 %v3532_v10, %v3532_v10 }
0x15d8   :  { %v2638_v31 = vpop.f32.mrf.mxu1 }
0x15da   :  { %v3533_v39 = vpop.f32.mrf.mxu1 }
0x15db   :  { %v3602_v39 = vld [vmem:[%s4543_s8 + $0x30] sm:$0xff]  }
0x15dc   :  { %v2641_v33 = vpop.f32.mrf.mxu1 }
0x15dd   :  { %v2652_v34 = vpack.c.bf16 %v2641_v33, %v2638_v31  ;;  %v3603_v33 = vld [vmem:[%s4543_s8 + $0x28] sm:$0xff]  }
0x15df   :  { %3536 = vmatprep.mubr.msk.bf16.mxu0 %vm206_vm2, %v2652_v34  ;;  %v3604_v34 = vld [vmem:[%s4543_s8 + $0x20] sm:$0xff]  }
0x15e0   :  { %3537 = vmatmul.mubr.msk.bf16.vlgmr.msra.gmra.mxu0 %vm206_vm2, %v2653_v32 }
0x15e1   :  { %3549 = vmatpush3.bf16.msra.mxu0 %v3601_v51 }
0x15e2   :  { %3550 = vmatprep.subr.bf16.mxu0 %v3602_v39 }
0x15e5   :  { %3551 = vmatpush3.bf16.msra.mxu0 %v3602_v39 }
0x15e6   :  { %3552 = vmatprep.subr.bf16.mxu0 %v3603_v33 }
0x15e9   :  { %3553 = vmatpush3.bf16.msra.mxu0 %v3603_v33 }
0x15ea   :  { %3554 = vmatprep.subr.bf16.mxu0 %v3604_v34 }
0x15ed   :  { %3555 = vmatpush3.bf16.msra.mxu0 %v3604_v34 }
0x16a0   :  { %v3538_v11 = vpop.f32.mrf.mxu0 }
0x16a1   :  { %v2715_v40 = vadd.f32 %v3538_v11, %v2450_v23  ;;  %v3119_v11 = vld [vmem:[%s4546_s7 + $0x1] ss:$0 sm:$0xff] }
0x16a2   :  { %v2699_v37 = vpop.f32.mrf.mxu0 }
0x16a3   :  { %v2713_v16 = vadd.f32 %v2699_v37, %v2448_v26  ;;  %v2718_v42 = vadd.f32 %v2715_v40, %v4175_v24 }
0x16a4   :  { %v3539_v18 = vpop.f32.mrf.mxu0 }
0x16a5   :  { %v2716_v35 = vadd.f32 %v2713_v16, %v4173_v22  ;;  %v4473_v43 = vadd.f32 %v3109_v41, %v2718_v42 }
0x16a6   :  { %v2702_v36 = vpop.f32.mrf.mxu0 }
0x16a7   :  { %v4465_v38 = vadd.f32 %v3109_v41, %v2716_v35  ;;  %v2714_v57 = vadd.f32 %v2702_v36, %v2449_v59  ;;  %v2740_v44 = vsel %vm56_vm0, %v4473_v43, 0.0 }
0x16a9   :  { %v2717_v58 = vadd.f32 %v2714_v57, %v4180_v27  ;;  %v2734_v19 = vsel %vm56_vm0, %v4465_v38, 0.0 }
0x16aa   :  { %2735 = vadd.xlane.f32.xlu1 %v2734_v19 }
0x16ab   :  { %v4471_v48 = vadd.f32 %v3109_v41, %v2717_v58 }
0x16ad   :  { %v2737_v22 = vsel %vm56_vm0, %v4471_v48, 0.0 }
0x16ae   :  { %2738 = vadd.xlane.f32.xlu0 %v2737_v22 }
0x16b2   :  { %2741 = vadd.xlane.f32.xlu0 %v2740_v44  ;;  %v3139_v44 = vld [vmem:[%s4547_s9 + $0x1] ss:$0 sm:$0xff] }
0x1733   :  { %v2736_v45 = vpop.xlane.xlu1 %2735 }
0x1734   :  { %v2743_v24 = vmul.f32 0.03125, %v2736_v45 }
0x1736   :  { %v2746_v27 = vsub.f32 %v4465_v38, %v2743_v24 }
0x1737   :  { %v2739_v46 = vpop.xlane.xlu0 %2738 }
0x1738   :  { %v2744_v47 = vmul.f32 0.03125, %v2739_v46  ;;  %v2749_v49 = vmul.f32 %v2746_v27, %v2746_v27 }
0x173a   :  { %v2747_v50 = vsub.f32 %v4471_v48, %v2744_v47  ;;  %v2752_v52 = vsel %vm56_vm0, %v2749_v49, 0.0 }
0x173b   :  { %v2742_v53 = vpop.xlane.xlu0 %2741  ;;  %2753 = vadd.xlane.f32.xlu1 %v2752_v52 }
0x173c   :  { %v2745_v54 = vmul.f32 0.03125, %v2742_v53  ;;  %v2750_v60 = vmul.f32 %v2747_v50, %v2747_v50 }
0x173e   :  { %v2748_v61 = vsub.f32 %v4473_v43, %v2745_v54  ;;  %v2755_v5 = vsel %vm56_vm0, %v2750_v60, 0.0 }
0x173f   :  { %2756 = vadd.xlane.f32.xlu0 %v2755_v5 }
0x1740   :  { %v2751_v9 = vmul.f32 %v2748_v61, %v2748_v61 }
0x1742   :  { %v2758_v14 = vsel %vm56_vm0, %v2751_v9, 0.0 }
0x1743   :  { %2759 = vadd.xlane.f32.xlu1 %v2758_v14 }
0x17c4   :  { %v2754_v0 = vpop.xlane.xlu1 %2753 }
0x17c5   :  { %v2761_v1 = vmul.f32 0.03125, %v2754_v0 }
0x17c7   :  { %v2764_v12 = vadd.f32 1e-05, %v2761_v1 }
0x17c8   :  { %v2757_v28 = vpop.xlane.xlu0 %2756 }
0x17c9   :  { %3719 = vrsqrt.f32 %v2764_v12  ;;  %v2762_v29 = vmul.f32 0.03125, %v2757_v28 }
0x17cb   :  { %v2765_v13 = vadd.f32 1e-05, %v2762_v29 }
0x17cc   :  { %v2760_v2 = vpop.xlane.xlu1 %2759 }
0x17cd   :  { %3721 = vrsqrt.f32 %v2765_v13  ;;  %v2763_v3 = vmul.f32 0.03125, %v2760_v2 }
0x17cf   :  { %v2766_v4 = vadd.f32 1e-05, %v2763_v3 }
0x17d1   :  { %3723 = vrsqrt.f32 %v2766_v4 }
0x17d6   :  { %v3720_v6 = vpop.eup %3719 }
0x17d7   :  { %v2770_v7 = vmul.f32 %v3720_v6, %v2746_v27 }
0x17d9   :  { %v2779_v20 = vmul.f32 %v3112_v56, %v2770_v7 }
0x17da   :  { %v3722_v15 = vpop.eup %3721 }
0x17db   :  { %v2771_v17 = vmul.f32 %v3722_v15, %v2747_v50  ;;  %v2788_v8 = vadd.f32 %v3113_v21, %v2779_v20 }
0x17dd   :  { %v2780_v23 = vmul.f32 %v3112_v56, %v2771_v17 }
0x17de   :  { %v3724_v25 = vpop.eup %3723 }
0x17df   :  { %v2772_v26 = vmul.f32 %v3724_v25, %v2748_v61  ;;  %v2789_v55 = vadd.f32 %v3113_v21, %v2780_v23 }
0x17e1   :  { %v2791_v30 = vpack.c.bf16 %v2789_v55, %v2788_v8  ;;  %v2781_v59 = vmul.f32 %v3112_v56, %v2772_v26 }
0x17e3   :  { %3544 = vmatprep.mubr.msk.bf16.mxu1 %vm56_vm0, %v2791_v30  ;;  %v2790_v10 = vadd.f32 %v3113_v21, %v2781_v59 }
0x17e5   :  { %v2792_v31 = vpack.c.bf16 %v2790_v10, %v2790_v10 }
0x17e7   :  { %3545 = vmatmul.mubr.msk.bf16.vlgmr.msra.gmra.mxu1 %vm56_vm0, %v2792_v31 }
0x18a7   :  { %v3546_v32 = vpop.f32.mrf.mxu1 }
0x18a8   :  { %v2867_v16 = vadd.f32 %v3546_v32, %v3119_v11 }
0x18a9   :  { %v2858_v37 = vpop.f32.mrf.mxu1 }
0x18aa   :  { %v2859_v40 = vadd.f32 %v3119_v11, %v2858_v37  ;;  %v2874_v36 = vmax.f32 %v2867_v16, 0.0 }
0x18ab   :  { %v3547_v18 = vpop.f32.mrf.mxu1 }
0x18ac   :  { %v2872_v57 = vmax.f32 %v2859_v40, 0.0  ;;  %v2876_v19 = vpack.c.bf16 %v2874_v36, %v2874_v36 }
0x18ad   :  { %v2861_v35 = vpop.f32.mrf.mxu1 }
0x18ae   :  { %v2862_v41 = vadd.f32 %v3119_v11, %v2861_v35 }
0x18b0   :  { %v2873_v42 = vmax.f32 %v2862_v41, 0.0 }
0x18b2   :  { %v2875_v58 = vpack.c.bf16 %v2873_v42, %v2872_v57 }
0x18b4   :  { %3556 = vmatprep.mubr.msk.bf16.mxu0 %vm1445_vm5, %v2875_v58 }
0x18b5   :  { %3557 = vmatmul.mubr.msk.bf16.vlgmr.msra.gmra.mxu0 %vm1445_vm5, %v2876_v19 }
0x1975   :  { %v3558_v22 = vpop.f32.mrf.mxu0 }
0x1976   :  { %v2966_v45 = vadd.f32 %v3558_v22, %v4473_v43 }
0x1977   :  { %v2950_v24 = vpop.f32.mrf.mxu0 }
0x1978   :  { %v2977_v27 = vadd.f32 %v3139_v44, %v2966_v45  ;;  %v2964_v46 = vadd.f32 %v2950_v24, %v4465_v38 }
0x1979   :  { %v3559_v47 = vpop.f32.mrf.mxu0 }
0x197a   :  { %2980 = vst.msk [vmem:[%s4548_s14 + $0x10] sm:$0xff] %vm56_vm0, %v2977_v27  ;;  %v2975_v49 = vadd.f32 %v3139_v44, %v2964_v46 }
0x197b   :  { %v2953_v50 = vpop.f32.mrf.mxu0 }
0x197c   :  { %2978 = vst.msk [vmem:[%s4548_s14] sm:$0xff] %vm56_vm0, %v2975_v49  ;;  %v2965_v52 = vadd.f32 %v2953_v50, %v4471_v48 }
0x197e   :  { %v2976_v43 = vadd.f32 %v3139_v44, %v2965_v52 }
0x1980   :  { %2979 = vst.msk [vmem:[%s4548_s14 + $0x8] sm:$0xff] %vm56_vm0, %v2976_v43 }

</bundles_post_ra>
